<compile_context>
chip_gen: v7x
topology: tpu7x:2x2x1
jax: 0.10.0
libtpu: 0.0.40
codegen_flags: <defaults>
</compile_context>

<pallas_src>
import math

import jax
import jax.numpy as jnp
from jax.experimental import pallas as pl
from jax.experimental.pallas import tpu as pltpu

CH = 32       # all activations are zero-padded to 32 channels inside the kernel
KMAX = 7      # every conv weight is zero-padded to 7 taps (uniform MXU shape)
PMAX = 3      # 'same' padding of the largest kernel (k=7 -> pad 3)
HALO = 8      # left halo width -> sublane-aligned center start
OFF0 = HALO - PMAX   # pad-buffer start of tap t = 0

# channel plan of the 12 convs in each branch (net1/net2/net3; only K differs)
_BRANCH_CH = [(32, 32), (32, 32), (32, 16), (16, 16), (16, 32), (32, 32),
              (32, 32), (32, 32), (32, 16), (16, 16), (16, 32), (32, 32)]


def _round_up(x, m):
    return (x + m - 1) // m * m


# ------------------------------------------------------------- parameters ----
def _init_conv(key, K, cin, cout):
    # Matches torch.nn.Conv1d default init U(+-1/sqrt(cin*K)).
    # Layout (K, Cin, Cout) == transpose of torch's (Cout, Cin, K).
    kw, kb = jax.random.split(key)
    s = 1.0 / math.sqrt(cin * K)
    w = jax.random.uniform(kw, (K, cin, cout), minval=-s, maxval=s,
                           dtype=jnp.float32)
    b = jax.random.uniform(kb, (cout,), minval=-s, maxval=s, dtype=jnp.float32)
    return w, b


def init_params(key, datanum):
    keys = iter(jax.random.split(key, 64))
    params = {}
    # net0: conv(1->32,k5,p2)+ReLU, conv(32->32,k5,p2)+ReLU, Dropout
    params["net0"] = [_init_conv(next(keys), 5, 1, 32),
                      _init_conv(next(keys), 5, 32, 32)]
    for name, ksize in (("net1", 3), ("net2", 5), ("net3", 7)):
        params[name] = [_init_conv(next(keys), ksize, ci, co)
                        for (ci, co) in _BRANCH_CH]
    # net4: conv(96->32, k1) + ReLU + Dropout
    params["net4"] = _init_conv(next(keys), 1, 96, 32)
    # lin: Linear(datanum*32 -> datanum); stored as (in_features, out_features)
    # with torch's in_feature ordering j = c*datanum + l (channel-major flatten).
    kl1, kl2 = jax.random.split(next(keys))
    fan_in = datanum * 32
    s = 1.0 / math.sqrt(fan_in)
    params["lin_w"] = jax.random.uniform(kl1, (fan_in, datanum), minval=-s,
                                         maxval=s, dtype=jnp.float32)
    params["lin_b"] = jax.random.uniform(kl2, (datanum,), minval=-s, maxval=s,
                                         dtype=jnp.float32)
    return params


def _pack_convs(layers, K):
    """Zero-pad channels to CH and taps to KMAX; flatten taps for im2col.

    Tap t of a conv with 'same' padding p=(K-1)//2 lands at row block
    (PMAX - p) + t of the (KMAX*CH, CH) flat weight, so every layer consumes
    the SAME uniform 7-tap im2col operand; missing taps / channels hit zero
    rows / cols, keeping the result numerically exact.
    """
    p = (K - 1) // 2
    off = PMAX - p
    ws, bs = [], []
    for (w, b) in layers:
        _, cin, cout = w.shape
        wp = jnp.zeros((KMAX, CH, CH), jnp.float32)
        wp = wp.at[off:off + K, :cin, :cout].set(w)
        bp = jnp.zeros((CH,), jnp.float32).at[:cout].set(b)
        ws.append(wp.reshape(KMAX * CH, CH))          # row index = t*CH + cin
        bs.append(bp.reshape(1, CH))
    # (n_layers, KMAX*CH, CH), (n_layers, 1, CH)
    return jnp.stack(ws), jnp.stack(bs)


def pack_params(params, datanum):
    """One-time host-side packing into the tensors the fused kernel consumes."""
    w0, b0 = _pack_convs(params["net0"], 5)
    w1, b1 = _pack_convs(params["net1"], 3)
    w2, b2 = _pack_convs(params["net2"], 5)
    w3, b3 = _pack_convs(params["net3"], 7)
    w4 = params["net4"][0].reshape(96, 32)           # 1x1 conv -> plain matmul
    b4 = params["net4"][1].reshape(1, 32)
    # Re-order the Linear weight from torch's channel-major flatten
    # (j = c*L + l) to a position-blocked (L, CH, L) layout, so the fused
    # Linear is an accumulation of per-position (CH, L) blocks -- no in-kernel
    # transpose/flatten is needed.
    L = datanum
    wl = params["lin_w"].reshape(CH, L, datanum).transpose(1, 0, 2)  # (L,CH,L)
    bl = params["lin_b"].reshape(1, datanum)
    return (w0, b0, w1, b1, w2, b2, w3, b3, w4, b4, wl, bl)


# ---------------------------------------------------------------- forward ----
def forward(packed, x, datanum):
    (w0, b0, w1, b1, w2, b2, w3, b3, w4, b4, wl, bl) = packed
    N = x.shape[0]
    L = datanum
    NL = N * L
    # Sublane-aligned halo: per-sample center starts at sublane HALO (= 8),
    # right halo >= KMAX - 1 - PMAX, Lpad a multiple of 8.
    Lpad = HALO + _round_up(L + HALO, 8)

    # torch.reshape(x, [-1, 1, datanum]) -> channels-last (N, L, CH) with the
    # single input channel in lane 0, remaining channels zero.
    x_in = jnp.zeros((N, L, CH), jnp.float32).at[:, :, 0].set(
        x.reshape(N, L).astype(jnp.float32))

    def kernel(x_ref, w0_ref, b0_ref, w1_ref, b1_ref, w2_ref, b2_ref,
               w3_ref, b3_ref, w4_ref, b4_ref, wl_ref, bl_ref,
               out_ref, pad_ref):
        # Zero the halo scratch once; only the aligned per-sample centers are
        # ever rewritten, so the halo rows stay 0 == 'same' zero padding.
        pad_ref[...] = jnp.zeros((N, Lpad, CH), jnp.float32)

        def conv_relu(a, w_flat, b_row):
            # a: (N*L, CH), w_flat: (KMAX*CH, CH), b_row: (1, CH).
            # One aligned batched center write (reshape only regroups leading
            # dims -> free), then one read per tap; the im2col operand stays
            # in vregs and goes straight to the MXU.
            pad_ref[:, HALO:HALO + L, :] = a.reshape(N, L, CH)
            cols = jnp.concatenate(
                [pad_ref[:, OFF0 + t: OFF0 + t + L, :].reshape(NL, CH)
                 for t in range(KMAX)], axis=1)        # (N*L, KMAX*CH)
            y = jnp.dot(cols, w_flat, preferred_element_type=jnp.float32)
            return jnp.maximum(y + b_row, 0.0)         # (N*L, CH)

        def run_branch(w_ref, b_ref, a):
            # 12 conv+ReLU layers; fori_loop bounds live ranges / code size.
            # TODO(synk): Dropout(0.3) is identity at inference; not applied.
            def body(i, acc):
                return conv_relu(acc, w_ref[i], b_ref[i])
            return jax.lax.fori_loop(0, 12, body, a)

        # net0: two conv(k5,p2)+ReLU layers.
        a = conv_relu(x_ref[...].reshape(NL, CH), w0_ref[0], b0_ref[0])
        x0 = conv_relu(a, w0_ref[1], b0_ref[1])

        # Three residual branches; each branch applies the SAME weights twice.
        o = run_branch(w1_ref, b1_ref, x0)
        out1 = run_branch(w1_ref, b1_ref, o + x0) + o
        o = run_branch(w2_ref, b2_ref, x0)
        out2 = run_branch(w2_ref, b2_ref, o + x0) + o
        o = run_branch(w3_ref, b3_ref, x0)
        out3 = run_branch(w3_ref, b3_ref, o + x0) + o
        # TODO(synk): on v7x the three branches could be sharded across the two
        # TensorCores with a parallel grid axis; kept single-core here.

        # net4: channel concat (value, stays in vregs) + 1x1 conv + ReLU.
        cat = jnp.concatenate([out1, out2, out3], axis=1)     # (N*L, 3*CH)
        z = jnp.dot(cat, w4_ref[...],
                    preferred_element_type=jnp.float32) + b4_ref[...]
        z = jnp.maximum(z, 0.0)                               # (N*L, CH)

        # Final Linear: z rows (n*L + l) already hold torch's out[n, :, l], so
        # out = sum_l z[:, l, :] @ W_l with the host-pre-permuted (L, CH, L)
        # weight -- no masked per-row flatten stores, no flatten scratch.
        z3 = z.reshape(N, L, CH)                              # leading-dim split
        acc = jnp.dot(z3[:, 0, :], wl_ref[0],
                      preferred_element_type=jnp.float32)
        for l in range(1, L):
            acc = acc + jnp.dot(z3[:, l, :], wl_ref[l],
                                preferred_element_type=jnp.float32)
        out_ref[...] = acc + bl_ref[...]

    operands = (x_in, w0, b0, w1, b1, w2, b2, w3, b3, w4, b4, wl, bl)
    # Derive the VMEM budget from actual sizes (safe on 64 MiB-VMEM v7x too).
    need = sum(int(t.size) * t.dtype.itemsize for t in operands)
    need += N * Lpad * CH * 4 + N * datanum * 4
    vmem_limit = int(min(max(2 * need + (2 << 20), 8 << 20), 32 << 20))

    vmem = pl.BlockSpec(memory_space=pltpu.MemorySpace.VMEM)
    return pl.pallas_call(
        kernel,
        out_shape=jax.ShapeDtypeStruct((N, datanum), jnp.float32),
        in_specs=[vmem] * 13,
        out_specs=vmem,
        scratch_shapes=[
            pltpu.VMEM((N, Lpad, CH), jnp.float32),  # zero-halo padded activation
        ],
        compiler_params=pltpu.CompilerParams(vmem_limit_bytes=vmem_limit),
    )(*operands)


# ------------------------------------------------------------------- main ----
if __name__ == "__main__":
    batch_size = 2
    datanum = 16

    key = jax.random.PRNGKey(0)
    kp, kx = jax.random.split(key)
    params = init_params(kp, datanum)
    packed = pack_params(params, datanum)
    x = jax.random.normal(kx, (batch_size, datanum), dtype=jnp.float32)

    fwd = jax.jit(lambda p, xx: forward(p, xx, datanum))
    y = fwd(packed, x)
    jax.block_until_ready(y)
    assert y.shape == (batch_size, datanum), y.shape
    assert bool(jnp.all(jnp.isfinite(y)))
    print("KERNEL_OK")
</pallas_src>

<mosaic_0001>
module attributes {stable_mosaic.version = 11 : i64} {
  func.func @kernel(%arg0: memref<2x16x32xf32, #tpu.memory_space<vmem>>, %arg1: memref<2x224x32xf32, #tpu.memory_space<vmem>>, %arg2: memref<2x1x32xf32, #tpu.memory_space<vmem>>, %arg3: memref<12x224x32xf32, #tpu.memory_space<vmem>>, %arg4: memref<12x1x32xf32, #tpu.memory_space<vmem>>, %arg5: memref<12x224x32xf32, #tpu.memory_space<vmem>>, %arg6: memref<12x1x32xf32, #tpu.memory_space<vmem>>, %arg7: memref<12x224x32xf32, #tpu.memory_space<vmem>>, %arg8: memref<12x1x32xf32, #tpu.memory_space<vmem>>, %arg9: memref<96x32xf32, #tpu.memory_space<vmem>>, %arg10: memref<1x32xf32, #tpu.memory_space<vmem>>, %arg11: memref<16x32x16xf32, #tpu.memory_space<vmem>>, %arg12: memref<1x16xf32, #tpu.memory_space<vmem>>, %arg13: memref<2x16xf32, #tpu.memory_space<vmem>>, %arg14: memref<2x32x32xf32, #tpu.memory_space<vmem>>) attributes {dimension_semantics = [], scalar_prefetch = 0 : i64, scratch_operands = 1 : i64, tpu.core_type = #tpu.core_type<tc>} {
    %cst = arith.constant 0.000000e+00 : f32
    %0 = vector.broadcast %cst : f32 to vector<2x32x32xf32>
    %c0 = arith.constant 0 : index
    %c0_0 = arith.constant 0 : index
    %c0_1 = arith.constant 0 : index
    %1 = vector.load %arg14[%c0, %c0_0, %c0_1] : memref<2x32x32xf32, #tpu.memory_space<vmem>>, vector<2x32x32xf32>
    tpu.vector_store %arg14[%c0, %c0_0, %c0_1], %0 {strides = array<i32>} : memref<2x32x32xf32, #tpu.memory_space<vmem>>, vector<2x32x32xf32>,
    %c0_2 = arith.constant 0 : index
    %c0_3 = arith.constant 0 : index
    %c0_4 = arith.constant 0 : index
    %2 = vector.load %arg0[%c0_2, %c0_3, %c0_4] : memref<2x16x32xf32, #tpu.memory_space<vmem>>, vector<2x16x32xf32>
    %3 = vector.shape_cast %2 : vector<2x16x32xf32> to vector<32x32xf32>
    %c0_5 = arith.constant 0 : index
    %c0_6 = arith.constant 0 : index
    %c0_7 = arith.constant 0 : index
    %4 = vector.load %arg1[%c0_5, %c0_6, %c0_7] : memref<2x224x32xf32, #tpu.memory_space<vmem>>, vector<1x224x32xf32>
    %5 = vector.shape_cast %4 : vector<1x224x32xf32> to vector<224x32xf32>
    %c0_8 = arith.constant 0 : index
    %c0_9 = arith.constant 0 : index
    %c0_10 = arith.constant 0 : index
    %6 = vector.load %arg2[%c0_8, %c0_9, %c0_10] : memref<2x1x32xf32, #tpu.memory_space<vmem>>, vector<1x1x32xf32>
    %7 = vector.shape_cast %6 : vector<1x1x32xf32> to vector<1x32xf32>
    %8 = vector.shape_cast %3 : vector<32x32xf32> to vector<2x16x32xf32>
    %c0_11 = arith.constant 0 : index
    %c8 = arith.constant 8 : index
    %c0_12 = arith.constant 0 : index
    %9 = vector.load %arg14[%c0_11, %c8, %c0_12] : memref<2x32x32xf32, #tpu.memory_space<vmem>>, vector<2x16x32xf32>
    tpu.vector_store %arg14[%c0_11, %c8, %c0_12], %8 {strides = array<i32>} : memref<2x32x32xf32, #tpu.memory_space<vmem>>, vector<2x16x32xf32>,
    %c0_13 = arith.constant 0 : index
    %c5 = arith.constant 5 : index
    %c0_14 = arith.constant 0 : index
    %10 = vector.load %arg14[%c0_13, %c5, %c0_14] : memref<2x32x32xf32, #tpu.memory_space<vmem>>, vector<2x16x32xf32>
    %11 = vector.shape_cast %10 : vector<2x16x32xf32> to vector<32x32xf32>
    %c0_15 = arith.constant 0 : index
    %c6 = arith.constant 6 : index
    %c0_16 = arith.constant 0 : index
    %12 = vector.load %arg14[%c0_15, %c6, %c0_16] : memref<2x32x32xf32, #tpu.memory_space<vmem>>, vector<2x16x32xf32>
    %13 = vector.shape_cast %12 : vector<2x16x32xf32> to vector<32x32xf32>
    %c0_17 = arith.constant 0 : index
    %c7 = arith.constant 7 : index
    %c0_18 = arith.constant 0 : index
    %14 = vector.load %arg14[%c0_17, %c7, %c0_18] : memref<2x32x32xf32, #tpu.memory_space<vmem>>, vector<2x16x32xf32>
    %15 = vector.shape_cast %14 : vector<2x16x32xf32> to vector<32x32xf32>
    %c0_19 = arith.constant 0 : index
    %c8_20 = arith.constant 8 : index
    %c0_21 = arith.constant 0 : index
    %16 = vector.load %arg14[%c0_19, %c8_20, %c0_21] : memref<2x32x32xf32, #tpu.memory_space<vmem>>, vector<2x16x32xf32>
    %17 = vector.shape_cast %16 : vector<2x16x32xf32> to vector<32x32xf32>
    %c0_22 = arith.constant 0 : index
    %c9 = arith.constant 9 : index
    %c0_23 = arith.constant 0 : index
    %18 = vector.load %arg14[%c0_22, %c9, %c0_23] : memref<2x32x32xf32, #tpu.memory_space<vmem>>, vector<2x16x32xf32>
    %19 = vector.shape_cast %18 : vector<2x16x32xf32> to vector<32x32xf32>
    %c0_24 = arith.constant 0 : index
    %c10 = arith.constant 10 : index
    %c0_25 = arith.constant 0 : index
    %20 = vector.load %arg14[%c0_24, %c10, %c0_25] : memref<2x32x32xf32, #tpu.memory_space<vmem>>, vector<2x16x32xf32>
    %21 = vector.shape_cast %20 : vector<2x16x32xf32> to vector<32x32xf32>
    %c0_26 = arith.constant 0 : index
    %c11 = arith.constant 11 : index
    %c0_27 = arith.constant 0 : index
    %22 = vector.load %arg14[%c0_26, %c11, %c0_27] : memref<2x32x32xf32, #tpu.memory_space<vmem>>, vector<2x16x32xf32>
    %23 = vector.shape_cast %22 : vector<2x16x32xf32> to vector<32x32xf32>
    %24 = tpu.concatenate %11, %13, %15, %17, %19, %21, %23 in 1 : vector<32x32xf32>, vector<32x32xf32>, vector<32x32xf32>, vector<32x32xf32>, vector<32x32xf32>, vector<32x32xf32>, vector<32x32xf32> -> vector<32x224xf32>
    %cst_28 = arith.constant dense<0.000000e+00> : vector<32x32xf32>
    %25 = tpu.matmul %24, %5, %cst_28 {dimension_numbers = #tpu.dot_dimension_numbers<[1], [0], [0], [1], [0, 0, 1, 1], [], []>} : vector<32x224xf32>, vector<224x32xf32>, vector<32x32xf32> -> vector<32x32xf32>
    %26 = vector.broadcast %7 : vector<1x32xf32> to vector<32x32xf32>
    %27 = arith.addf %25, %26 : vector<32x32xf32>
    %cst_29 = arith.constant 0.000000e+00 : f32
    %28 = vector.broadcast %cst_29 : f32 to vector<32x32xf32>
    %29 = arith.maximumf %27, %28 : vector<32x32xf32>
    %c1 = arith.constant 1 : index
    %c0_30 = arith.constant 0 : index
    %c0_31 = arith.constant 0 : index
    %30 = vector.load %arg1[%c1, %c0_30, %c0_31] : memref<2x224x32xf32, #tpu.memory_space<vmem>>, vector<1x224x32xf32>
    %31 = vector.shape_cast %30 : vector<1x224x32xf32> to vector<224x32xf32>
    %c1_32 = arith.constant 1 : index
    %c0_33 = arith.constant 0 : index
    %c0_34 = arith.constant 0 : index
    %32 = vector.load %arg2[%c1_32, %c0_33, %c0_34] : memref<2x1x32xf32, #tpu.memory_space<vmem>>, vector<1x1x32xf32>
    %33 = vector.shape_cast %32 : vector<1x1x32xf32> to vector<1x32xf32>
    %34 = vector.shape_cast %29 : vector<32x32xf32> to vector<2x16x32xf32>
    %c0_35 = arith.constant 0 : index
    %c8_36 = arith.constant 8 : index
    %c0_37 = arith.constant 0 : index
    %35 = vector.load %arg14[%c0_35, %c8_36, %c0_37] : memref<2x32x32xf32, #tpu.memory_space<vmem>>, vector<2x16x32xf32>
    tpu.vector_store %arg14[%c0_35, %c8_36, %c0_37], %34 {strides = array<i32>} : memref<2x32x32xf32, #tpu.memory_space<vmem>>, vector<2x16x32xf32>,
    %c0_38 = arith.constant 0 : index
    %c5_39 = arith.constant 5 : index
    %c0_40 = arith.constant 0 : index
    %36 = vector.load %arg14[%c0_38, %c5_39, %c0_40] : memref<2x32x32xf32, #tpu.memory_space<vmem>>, vector<2x16x32xf32>
    %37 = vector.shape_cast %36 : vector<2x16x32xf32> to vector<32x32xf32>
    %c0_41 = arith.constant 0 : index
    %c6_42 = arith.constant 6 : index
    %c0_43 = arith.constant 0 : index
    %38 = vector.load %arg14[%c0_41, %c6_42, %c0_43] : memref<2x32x32xf32, #tpu.memory_space<vmem>>, vector<2x16x32xf32>
    %39 = vector.shape_cast %38 : vector<2x16x32xf32> to vector<32x32xf32>
    %c0_44 = arith.constant 0 : index
    %c7_45 = arith.constant 7 : index
    %c0_46 = arith.constant 0 : index
    %40 = vector.load %arg14[%c0_44, %c7_45, %c0_46] : memref<2x32x32xf32, #tpu.memory_space<vmem>>, vector<2x16x32xf32>
    %41 = vector.shape_cast %40 : vector<2x16x32xf32> to vector<32x32xf32>
    %c0_47 = arith.constant 0 : index
    %c8_48 = arith.constant 8 : index
    %c0_49 = arith.constant 0 : index
    %42 = vector.load %arg14[%c0_47, %c8_48, %c0_49] : memref<2x32x32xf32, #tpu.memory_space<vmem>>, vector<2x16x32xf32>
    %43 = vector.shape_cast %42 : vector<2x16x32xf32> to vector<32x32xf32>
    %c0_50 = arith.constant 0 : index
    %c9_51 = arith.constant 9 : index
    %c0_52 = arith.constant 0 : index
    %44 = vector.load %arg14[%c0_50, %c9_51, %c0_52] : memref<2x32x32xf32, #tpu.memory_space<vmem>>, vector<2x16x32xf32>
    %45 = vector.shape_cast %44 : vector<2x16x32xf32> to vector<32x32xf32>
    %c0_53 = arith.constant 0 : index
    %c10_54 = arith.constant 10 : index
    %c0_55 = arith.constant 0 : index
    %46 = vector.load %arg14[%c0_53, %c10_54, %c0_55] : memref<2x32x32xf32, #tpu.memory_space<vmem>>, vector<2x16x32xf32>
    %47 = vector.shape_cast %46 : vector<2x16x32xf32> to vector<32x32xf32>
    %c0_56 = arith.constant 0 : index
    %c11_57 = arith.constant 11 : index
    %c0_58 = arith.constant 0 : index
    %48 = vector.load %arg14[%c0_56, %c11_57, %c0_58] : memref<2x32x32xf32, #tpu.memory_space<vmem>>, vector<2x16x32xf32>
    %49 = vector.shape_cast %48 : vector<2x16x32xf32> to vector<32x32xf32>
    %50 = tpu.concatenate %37, %39, %41, %43, %45, %47, %49 in 1 : vector<32x32xf32>, vector<32x32xf32>, vector<32x32xf32>, vector<32x32xf32>, vector<32x32xf32>, vector<32x32xf32>, vector<32x32xf32> -> vector<32x224xf32>
    %cst_59 = arith.constant dense<0.000000e+00> : vector<32x32xf32>
    %51 = tpu.matmul %50, %31, %cst_59 {dimension_numbers = #tpu.dot_dimension_numbers<[1], [0], [0], [1], [0, 0, 1, 1], [], []>} : vector<32x224xf32>, vector<224x32xf32>, vector<32x32xf32> -> vector<32x32xf32>
    %52 = vector.broadcast %33 : vector<1x32xf32> to vector<32x32xf32>
    %53 = arith.addf %51, %52 : vector<32x32xf32>
    %cst_60 = arith.constant 0.000000e+00 : f32
    %54 = vector.broadcast %cst_60 : f32 to vector<32x32xf32>
    %55 = arith.maximumf %53, %54 : vector<32x32xf32>
    %c0_i32 = arith.constant 0 : i32
    %c12_i32 = arith.constant 12 : i32
    %56 = arith.addi %c0_i32, %c12_i32 : i32
    %c1_i32 = arith.constant 1 : i32
    %57 = scf.for %arg15 = %c0_i32 to %56 step %c1_i32 iter_args(%arg16 = %55) -> (vector<32x32xf32>)  : i32 {
      %182 = arith.index_cast %arg15 : i32 to index
      %c0_149 = arith.constant 0 : index
      %c0_150 = arith.constant 0 : index
      %183 = vector.load %arg3[%182, %c0_149, %c0_150] : memref<12x224x32xf32, #tpu.memory_space<vmem>>, vector<1x224x32xf32>
      %184 = vector.shape_cast %183 : vector<1x224x32xf32> to vector<224x32xf32>
      %185 = arith.index_cast %arg15 : i32 to index
      %c0_151 = arith.constant 0 : index
      %c0_152 = arith.constant 0 : index
      %186 = vector.load %arg4[%185, %c0_151, %c0_152] : memref<12x1x32xf32, #tpu.memory_space<vmem>>, vector<1x1x32xf32>
      %187 = vector.shape_cast %186 : vector<1x1x32xf32> to vector<1x32xf32>
      %188 = vector.shape_cast %arg16 : vector<32x32xf32> to vector<2x16x32xf32>
      %c0_153 = arith.constant 0 : index
      %c8_154 = arith.constant 8 : index
      %c0_155 = arith.constant 0 : index
      %189 = vector.load %arg14[%c0_153, %c8_154, %c0_155] : memref<2x32x32xf32, #tpu.memory_space<vmem>>, vector<2x16x32xf32>
      tpu.vector_store %arg14[%c0_153, %c8_154, %c0_155], %188 {strides = array<i32>} : memref<2x32x32xf32, #tpu.memory_space<vmem>>, vector<2x16x32xf32>,
      %c0_156 = arith.constant 0 : index
      %c5_157 = arith.constant 5 : index
      %c0_158 = arith.constant 0 : index
      %190 = vector.load %arg14[%c0_156, %c5_157, %c0_158] : memref<2x32x32xf32, #tpu.memory_space<vmem>>, vector<2x16x32xf32>
      %191 = vector.shape_cast %190 : vector<2x16x32xf32> to vector<32x32xf32>
      %c0_159 = arith.constant 0 : index
      %c6_160 = arith.constant 6 : index
      %c0_161 = arith.constant 0 : index
      %192 = vector.load %arg14[%c0_159, %c6_160, %c0_161] : memref<2x32x32xf32, #tpu.memory_space<vmem>>, vector<2x16x32xf32>
      %193 = vector.shape_cast %192 : vector<2x16x32xf32> to vector<32x32xf32>
      %c0_162 = arith.constant 0 : index
      %c7_163 = arith.constant 7 : index
      %c0_164 = arith.constant 0 : index
      %194 = vector.load %arg14[%c0_162, %c7_163, %c0_164] : memref<2x32x32xf32, #tpu.memory_space<vmem>>, vector<2x16x32xf32>
      %195 = vector.shape_cast %194 : vector<2x16x32xf32> to vector<32x32xf32>
      %c0_165 = arith.constant 0 : index
      %c8_166 = arith.constant 8 : index
      %c0_167 = arith.constant 0 : index
      %196 = vector.load %arg14[%c0_165, %c8_166, %c0_167] : memref<2x32x32xf32, #tpu.memory_space<vmem>>, vector<2x16x32xf32>
      %197 = vector.shape_cast %196 : vector<2x16x32xf32> to vector<32x32xf32>
      %c0_168 = arith.constant 0 : index
      %c9_169 = arith.constant 9 : index
      %c0_170 = arith.constant 0 : index
      %198 = vector.load %arg14[%c0_168, %c9_169, %c0_170] : memref<2x32x32xf32, #tpu.memory_space<vmem>>, vector<2x16x32xf32>
      %199 = vector.shape_cast %198 : vector<2x16x32xf32> to vector<32x32xf32>
      %c0_171 = arith.constant 0 : index
      %c10_172 = arith.constant 10 : index
      %c0_173 = arith.constant 0 : index
      %200 = vector.load %arg14[%c0_171, %c10_172, %c0_173] : memref<2x32x32xf32, #tpu.memory_space<vmem>>, vector<2x16x32xf32>
      %201 = vector.shape_cast %200 : vector<2x16x32xf32> to vector<32x32xf32>
      %c0_174 = arith.constant 0 : index
      %c11_175 = arith.constant 11 : index
      %c0_176 = arith.constant 0 : index
      %202 = vector.load %arg14[%c0_174, %c11_175, %c0_176] : memref<2x32x32xf32, #tpu.memory_space<vmem>>, vector<2x16x32xf32>
      %203 = vector.shape_cast %202 : vector<2x16x32xf32> to vector<32x32xf32>
      %204 = tpu.concatenate %191, %193, %195, %197, %199, %201, %203 in 1 : vector<32x32xf32>, vector<32x32xf32>, vector<32x32xf32>, vector<32x32xf32>, vector<32x32xf32>, vector<32x32xf32>, vector<32x32xf32> -> vector<32x224xf32>
      %cst_177 = arith.constant dense<0.000000e+00> : vector<32x32xf32>
      %205 = tpu.matmul %204, %184, %cst_177 {dimension_numbers = #tpu.dot_dimension_numbers<[1], [0], [0], [1], [0, 0, 1, 1], [], []>} : vector<32x224xf32>, vector<224x32xf32>, vector<32x32xf32> -> vector<32x32xf32>
      %206 = vector.broadcast %187 : vector<1x32xf32> to vector<32x32xf32>
      %207 = arith.addf %205, %206 : vector<32x32xf32>
      %cst_178 = arith.constant 0.000000e+00 : f32
      %208 = vector.broadcast %cst_178 : f32 to vector<32x32xf32>
      %209 = arith.maximumf %207, %208 : vector<32x32xf32>
      scf.yield %209 : vector<32x32xf32>
    }
    %c12_i32_61 = arith.constant 12 : i32
    %58 = arith.addf %57, %55 : vector<32x32xf32>
    %c0_i32_62 = arith.constant 0 : i32
    %c12_i32_63 = arith.constant 12 : i32
    %59 = arith.addi %c0_i32_62, %c12_i32_63 : i32
    %c1_i32_64 = arith.constant 1 : i32
    %60 = scf.for %arg15 = %c0_i32_62 to %59 step %c1_i32_64 iter_args(%arg16 = %58) -> (vector<32x32xf32>)  : i32 {
      %182 = arith.index_cast %arg15 : i32 to index
      %c0_149 = arith.constant 0 : index
      %c0_150 = arith.constant 0 : index
      %183 = vector.load %arg3[%182, %c0_149, %c0_150] : memref<12x224x32xf32, #tpu.memory_space<vmem>>, vector<1x224x32xf32>
      %184 = vector.shape_cast %183 : vector<1x224x32xf32> to vector<224x32xf32>
      %185 = arith.index_cast %arg15 : i32 to index
      %c0_151 = arith.constant 0 : index
      %c0_152 = arith.constant 0 : index
      %186 = vector.load %arg4[%185, %c0_151, %c0_152] : memref<12x1x32xf32, #tpu.memory_space<vmem>>, vector<1x1x32xf32>
      %187 = vector.shape_cast %186 : vector<1x1x32xf32> to vector<1x32xf32>
      %188 = vector.shape_cast %arg16 : vector<32x32xf32> to vector<2x16x32xf32>
      %c0_153 = arith.constant 0 : index
      %c8_154 = arith.constant 8 : index
      %c0_155 = arith.constant 0 : index
      %189 = vector.load %arg14[%c0_153, %c8_154, %c0_155] : memref<2x32x32xf32, #tpu.memory_space<vmem>>, vector<2x16x32xf32>
      tpu.vector_store %arg14[%c0_153, %c8_154, %c0_155], %188 {strides = array<i32>} : memref<2x32x32xf32, #tpu.memory_space<vmem>>, vector<2x16x32xf32>,
      %c0_156 = arith.constant 0 : index
      %c5_157 = arith.constant 5 : index
      %c0_158 = arith.constant 0 : index
      %190 = vector.load %arg14[%c0_156, %c5_157, %c0_158] : memref<2x32x32xf32, #tpu.memory_space<vmem>>, vector<2x16x32xf32>
      %191 = vector.shape_cast %190 : vector<2x16x32xf32> to vector<32x32xf32>
      %c0_159 = arith.constant 0 : index
      %c6_160 = arith.constant 6 : index
      %c0_161 = arith.constant 0 : index
      %192 = vector.load %arg14[%c0_159, %c6_160, %c0_161] : memref<2x32x32xf32, #tpu.memory_space<vmem>>, vector<2x16x32xf32>
      %193 = vector.shape_cast %192 : vector<2x16x32xf32> to vector<32x32xf32>
      %c0_162 = arith.constant 0 : index
      %c7_163 = arith.constant 7 : index
      %c0_164 = arith.constant 0 : index
      %194 = vector.load %arg14[%c0_162, %c7_163, %c0_164] : memref<2x32x32xf32, #tpu.memory_space<vmem>>, vector<2x16x32xf32>
      %195 = vector.shape_cast %194 : vector<2x16x32xf32> to vector<32x32xf32>
      %c0_165 = arith.constant 0 : index
      %c8_166 = arith.constant 8 : index
      %c0_167 = arith.constant 0 : index
      %196 = vector.load %arg14[%c0_165, %c8_166, %c0_167] : memref<2x32x32xf32, #tpu.memory_space<vmem>>, vector<2x16x32xf32>
      %197 = vector.shape_cast %196 : vector<2x16x32xf32> to vector<32x32xf32>
      %c0_168 = arith.constant 0 : index
      %c9_169 = arith.constant 9 : index
      %c0_170 = arith.constant 0 : index
      %198 = vector.load %arg14[%c0_168, %c9_169, %c0_170] : memref<2x32x32xf32, #tpu.memory_space<vmem>>, vector<2x16x32xf32>
      %199 = vector.shape_cast %198 : vector<2x16x32xf32> to vector<32x32xf32>
      %c0_171 = arith.constant 0 : index
      %c10_172 = arith.constant 10 : index
      %c0_173 = arith.constant 0 : index
      %200 = vector.load %arg14[%c0_171, %c10_172, %c0_173] : memref<2x32x32xf32, #tpu.memory_space<vmem>>, vector<2x16x32xf32>
      %201 = vector.shape_cast %200 : vector<2x16x32xf32> to vector<32x32xf32>
      %c0_174 = arith.constant 0 : index
      %c11_175 = arith.constant 11 : index
      %c0_176 = arith.constant 0 : index
      %202 = vector.load %arg14[%c0_174, %c11_175, %c0_176] : memref<2x32x32xf32, #tpu.memory_space<vmem>>, vector<2x16x32xf32>
      %203 = vector.shape_cast %202 : vector<2x16x32xf32> to vector<32x32xf32>
      %204 = tpu.concatenate %191, %193, %195, %197, %199, %201, %203 in 1 : vector<32x32xf32>, vector<32x32xf32>, vector<32x32xf32>, vector<32x32xf32>, vector<32x32xf32>, vector<32x32xf32>, vector<32x32xf32> -> vector<32x224xf32>
      %cst_177 = arith.constant dense<0.000000e+00> : vector<32x32xf32>
      %205 = tpu.matmul %204, %184, %cst_177 {dimension_numbers = #tpu.dot_dimension_numbers<[1], [0], [0], [1], [0, 0, 1, 1], [], []>} : vector<32x224xf32>, vector<224x32xf32>, vector<32x32xf32> -> vector<32x32xf32>
      %206 = vector.broadcast %187 : vector<1x32xf32> to vector<32x32xf32>
      %207 = arith.addf %205, %206 : vector<32x32xf32>
      %cst_178 = arith.constant 0.000000e+00 : f32
      %208 = vector.broadcast %cst_178 : f32 to vector<32x32xf32>
      %209 = arith.maximumf %207, %208 : vector<32x32xf32>
      scf.yield %209 : vector<32x32xf32>
    }
    %c12_i32_65 = arith.constant 12 : i32
    %61 = arith.addf %60, %57 : vector<32x32xf32>
    %c0_i32_66 = arith.constant 0 : i32
    %c12_i32_67 = arith.constant 12 : i32
    %62 = arith.addi %c0_i32_66, %c12_i32_67 : i32
    %c1_i32_68 = arith.constant 1 : i32
    %63 = scf.for %arg15 = %c0_i32_66 to %62 step %c1_i32_68 iter_args(%arg16 = %55) -> (vector<32x32xf32>)  : i32 {
      %182 = arith.index_cast %arg15 : i32 to index
      %c0_149 = arith.constant 0 : index
      %c0_150 = arith.constant 0 : index
      %183 = vector.load %arg5[%182, %c0_149, %c0_150] : memref<12x224x32xf32, #tpu.memory_space<vmem>>, vector<1x224x32xf32>
      %184 = vector.shape_cast %183 : vector<1x224x32xf32> to vector<224x32xf32>
      %185 = arith.index_cast %arg15 : i32 to index
      %c0_151 = arith.constant 0 : index
      %c0_152 = arith.constant 0 : index
      %186 = vector.load %arg6[%185, %c0_151, %c0_152] : memref<12x1x32xf32, #tpu.memory_space<vmem>>, vector<1x1x32xf32>
      %187 = vector.shape_cast %186 : vector<1x1x32xf32> to vector<1x32xf32>
      %188 = vector.shape_cast %arg16 : vector<32x32xf32> to vector<2x16x32xf32>
      %c0_153 = arith.constant 0 : index
      %c8_154 = arith.constant 8 : index
      %c0_155 = arith.constant 0 : index
      %189 = vector.load %arg14[%c0_153, %c8_154, %c0_155] : memref<2x32x32xf32, #tpu.memory_space<vmem>>, vector<2x16x32xf32>
      tpu.vector_store %arg14[%c0_153, %c8_154, %c0_155], %188 {strides = array<i32>} : memref<2x32x32xf32, #tpu.memory_space<vmem>>, vector<2x16x32xf32>,
      %c0_156 = arith.constant 0 : index
      %c5_157 = arith.constant 5 : index
      %c0_158 = arith.constant 0 : index
      %190 = vector.load %arg14[%c0_156, %c5_157, %c0_158] : memref<2x32x32xf32, #tpu.memory_space<vmem>>, vector<2x16x32xf32>
      %191 = vector.shape_cast %190 : vector<2x16x32xf32> to vector<32x32xf32>
      %c0_159 = arith.constant 0 : index
      %c6_160 = arith.constant 6 : index
      %c0_161 = arith.constant 0 : index
      %192 = vector.load %arg14[%c0_159, %c6_160, %c0_161] : memref<2x32x32xf32, #tpu.memory_space<vmem>>, vector<2x16x32xf32>
      %193 = vector.shape_cast %192 : vector<2x16x32xf32> to vector<32x32xf32>
      %c0_162 = arith.constant 0 : index
      %c7_163 = arith.constant 7 : index
      %c0_164 = arith.constant 0 : index
      %194 = vector.load %arg14[%c0_162, %c7_163, %c0_164] : memref<2x32x32xf32, #tpu.memory_space<vmem>>, vector<2x16x32xf32>
      %195 = vector.shape_cast %194 : vector<2x16x32xf32> to vector<32x32xf32>
      %c0_165 = arith.constant 0 : index
      %c8_166 = arith.constant 8 : index
      %c0_167 = arith.constant 0 : index
      %196 = vector.load %arg14[%c0_165, %c8_166, %c0_167] : memref<2x32x32xf32, #tpu.memory_space<vmem>>, vector<2x16x32xf32>
      %197 = vector.shape_cast %196 : vector<2x16x32xf32> to vector<32x32xf32>
      %c0_168 = arith.constant 0 : index
      %c9_169 = arith.constant 9 : index
      %c0_170 = arith.constant 0 : index
      %198 = vector.load %arg14[%c0_168, %c9_169, %c0_170] : memref<2x32x32xf32, #tpu.memory_space<vmem>>, vector<2x16x32xf32>
      %199 = vector.shape_cast %198 : vector<2x16x32xf32> to vector<32x32xf32>
      %c0_171 = arith.constant 0 : index
      %c10_172 = arith.constant 10 : index
      %c0_173 = arith.constant 0 : index
      %200 = vector.load %arg14[%c0_171, %c10_172, %c0_173] : memref<2x32x32xf32, #tpu.memory_space<vmem>>, vector<2x16x32xf32>
      %201 = vector.shape_cast %200 : vector<2x16x32xf32> to vector<32x32xf32>
      %c0_174 = arith.constant 0 : index
      %c11_175 = arith.constant 11 : index
      %c0_176 = arith.constant 0 : index
      %202 = vector.load %arg14[%c0_174, %c11_175, %c0_176] : memref<2x32x32xf32, #tpu.memory_space<vmem>>, vector<2x16x32xf32>
      %203 = vector.shape_cast %202 : vector<2x16x32xf32> to vector<32x32xf32>
      %204 = tpu.concatenate %191, %193, %195, %197, %199, %201, %203 in 1 : vector<32x32xf32>, vector<32x32xf32>, vector<32x32xf32>, vector<32x32xf32>, vector<32x32xf32>, vector<32x32xf32>, vector<32x32xf32> -> vector<32x224xf32>
      %cst_177 = arith.constant dense<0.000000e+00> : vector<32x32xf32>
      %205 = tpu.matmul %204, %184, %cst_177 {dimension_numbers = #tpu.dot_dimension_numbers<[1], [0], [0], [1], [0, 0, 1, 1], [], []>} : vector<32x224xf32>, vector<224x32xf32>, vector<32x32xf32> -> vector<32x32xf32>
      %206 = vector.broadcast %187 : vector<1x32xf32> to vector<32x32xf32>
      %207 = arith.addf %205, %206 : vector<32x32xf32>
      %cst_178 = arith.constant 0.000000e+00 : f32
      %208 = vector.broadcast %cst_178 : f32 to vector<32x32xf32>
      %209 = arith.maximumf %207, %208 : vector<32x32xf32>
      scf.yield %209 : vector<32x32xf32>
    }
    %c12_i32_69 = arith.constant 12 : i32
    %64 = arith.addf %63, %55 : vector<32x32xf32>
    %c0_i32_70 = arith.constant 0 : i32
    %c12_i32_71 = arith.constant 12 : i32
    %65 = arith.addi %c0_i32_70, %c12_i32_71 : i32
    %c1_i32_72 = arith.constant 1 : i32
    %66 = scf.for %arg15 = %c0_i32_70 to %65 step %c1_i32_72 iter_args(%arg16 = %64) -> (vector<32x32xf32>)  : i32 {
      %182 = arith.index_cast %arg15 : i32 to index
      %c0_149 = arith.constant 0 : index
      %c0_150 = arith.constant 0 : index
      %183 = vector.load %arg5[%182, %c0_149, %c0_150] : memref<12x224x32xf32, #tpu.memory_space<vmem>>, vector<1x224x32xf32>
      %184 = vector.shape_cast %183 : vector<1x224x32xf32> to vector<224x32xf32>
      %185 = arith.index_cast %arg15 : i32 to index
      %c0_151 = arith.constant 0 : index
      %c0_152 = arith.constant 0 : index
      %186 = vector.load %arg6[%185, %c0_151, %c0_152] : memref<12x1x32xf32, #tpu.memory_space<vmem>>, vector<1x1x32xf32>
      %187 = vector.shape_cast %186 : vector<1x1x32xf32> to vector<1x32xf32>
      %188 = vector.shape_cast %arg16 : vector<32x32xf32> to vector<2x16x32xf32>
      %c0_153 = arith.constant 0 : index
      %c8_154 = arith.constant 8 : index
      %c0_155 = arith.constant 0 : index
      %189 = vector.load %arg14[%c0_153, %c8_154, %c0_155] : memref<2x32x32xf32, #tpu.memory_space<vmem>>, vector<2x16x32xf32>
      tpu.vector_store %arg14[%c0_153, %c8_154, %c0_155], %188 {strides = array<i32>} : memref<2x32x32xf32, #tpu.memory_space<vmem>>, vector<2x16x32xf32>,
      %c0_156 = arith.constant 0 : index
      %c5_157 = arith.constant 5 : index
      %c0_158 = arith.constant 0 : index
      %190 = vector.load %arg14[%c0_156, %c5_157, %c0_158] : memref<2x32x32xf32, #tpu.memory_space<vmem>>, vector<2x16x32xf32>
      %191 = vector.shape_cast %190 : vector<2x16x32xf32> to vector<32x32xf32>
      %c0_159 = arith.constant 0 : index
      %c6_160 = arith.constant 6 : index
      %c0_161 = arith.constant 0 : index
      %192 = vector.load %arg14[%c0_159, %c6_160, %c0_161] : memref<2x32x32xf32, #tpu.memory_space<vmem>>, vector<2x16x32xf32>
      %193 = vector.shape_cast %192 : vector<2x16x32xf32> to vector<32x32xf32>
      %c0_162 = arith.constant 0 : index
      %c7_163 = arith.constant 7 : index
      %c0_164 = arith.constant 0 : index
      %194 = vector.load %arg14[%c0_162, %c7_163, %c0_164] : memref<2x32x32xf32, #tpu.memory_space<vmem>>, vector<2x16x32xf32>
      %195 = vector.shape_cast %194 : vector<2x16x32xf32> to vector<32x32xf32>
      %c0_165 = arith.constant 0 : index
      %c8_166 = arith.constant 8 : index
      %c0_167 = arith.constant 0 : index
      %196 = vector.load %arg14[%c0_165, %c8_166, %c0_167] : memref<2x32x32xf32, #tpu.memory_space<vmem>>, vector<2x16x32xf32>
      %197 = vector.shape_cast %196 : vector<2x16x32xf32> to vector<32x32xf32>
      %c0_168 = arith.constant 0 : index
      %c9_169 = arith.constant 9 : index
      %c0_170 = arith.constant 0 : index
      %198 = vector.load %arg14[%c0_168, %c9_169, %c0_170] : memref<2x32x32xf32, #tpu.memory_space<vmem>>, vector<2x16x32xf32>
      %199 = vector.shape_cast %198 : vector<2x16x32xf32> to vector<32x32xf32>
      %c0_171 = arith.constant 0 : index
      %c10_172 = arith.constant 10 : index
      %c0_173 = arith.constant 0 : index
      %200 = vector.load %arg14[%c0_171, %c10_172, %c0_173] : memref<2x32x32xf32, #tpu.memory_space<vmem>>, vector<2x16x32xf32>
      %201 = vector.shape_cast %200 : vector<2x16x32xf32> to vector<32x32xf32>
      %c0_174 = arith.constant 0 : index
      %c11_175 = arith.constant 11 : index
      %c0_176 = arith.constant 0 : index
      %202 = vector.load %arg14[%c0_174, %c11_175, %c0_176] : memref<2x32x32xf32, #tpu.memory_space<vmem>>, vector<2x16x32xf32>
      %203 = vector.shape_cast %202 : vector<2x16x32xf32> to vector<32x32xf32>
      %204 = tpu.concatenate %191, %193, %195, %197, %199, %201, %203 in 1 : vector<32x32xf32>, vector<32x32xf32>, vector<32x32xf32>, vector<32x32xf32>, vector<32x32xf32>, vector<32x32xf32>, vector<32x32xf32> -> vector<32x224xf32>
      %cst_177 = arith.constant dense<0.000000e+00> : vector<32x32xf32>
      %205 = tpu.matmul %204, %184, %cst_177 {dimension_numbers = #tpu.dot_dimension_numbers<[1], [0], [0], [1], [0, 0, 1, 1], [], []>} : vector<32x224xf32>, vector<224x32xf32>, vector<32x32xf32> -> vector<32x32xf32>
      %206 = vector.broadcast %187 : vector<1x32xf32> to vector<32x32xf32>
      %207 = arith.addf %205, %206 : vector<32x32xf32>
      %cst_178 = arith.constant 0.000000e+00 : f32
      %208 = vector.broadcast %cst_178 : f32 to vector<32x32xf32>
      %209 = arith.maximumf %207, %208 : vector<32x32xf32>
      scf.yield %209 : vector<32x32xf32>
    }
    %c12_i32_73 = arith.constant 12 : i32
    %67 = arith.addf %66, %63 : vector<32x32xf32>
    %c0_i32_74 = arith.constant 0 : i32
    %c12_i32_75 = arith.constant 12 : i32
    %68 = arith.addi %c0_i32_74, %c12_i32_75 : i32
    %c1_i32_76 = arith.constant 1 : i32
    %69 = scf.for %arg15 = %c0_i32_74 to %68 step %c1_i32_76 iter_args(%arg16 = %55) -> (vector<32x32xf32>)  : i32 {
      %182 = arith.index_cast %arg15 : i32 to index
      %c0_149 = arith.constant 0 : index
      %c0_150 = arith.constant 0 : index
      %183 = vector.load %arg7[%182, %c0_149, %c0_150] : memref<12x224x32xf32, #tpu.memory_space<vmem>>, vector<1x224x32xf32>
      %184 = vector.shape_cast %183 : vector<1x224x32xf32> to vector<224x32xf32>
      %185 = arith.index_cast %arg15 : i32 to index
      %c0_151 = arith.constant 0 : index
      %c0_152 = arith.constant 0 : index
      %186 = vector.load %arg8[%185, %c0_151, %c0_152] : memref<12x1x32xf32, #tpu.memory_space<vmem>>, vector<1x1x32xf32>
      %187 = vector.shape_cast %186 : vector<1x1x32xf32> to vector<1x32xf32>
      %188 = vector.shape_cast %arg16 : vector<32x32xf32> to vector<2x16x32xf32>
      %c0_153 = arith.constant 0 : index
      %c8_154 = arith.constant 8 : index
      %c0_155 = arith.constant 0 : index
      %189 = vector.load %arg14[%c0_153, %c8_154, %c0_155] : memref<2x32x32xf32, #tpu.memory_space<vmem>>, vector<2x16x32xf32>
      tpu.vector_store %arg14[%c0_153, %c8_154, %c0_155], %188 {strides = array<i32>} : memref<2x32x32xf32, #tpu.memory_space<vmem>>, vector<2x16x32xf32>,
      %c0_156 = arith.constant 0 : index
      %c5_157 = arith.constant 5 : index
      %c0_158 = arith.constant 0 : index
      %190 = vector.load %arg14[%c0_156, %c5_157, %c0_158] : memref<2x32x32xf32, #tpu.memory_space<vmem>>, vector<2x16x32xf32>
      %191 = vector.shape_cast %190 : vector<2x16x32xf32> to vector<32x32xf32>
      %c0_159 = arith.constant 0 : index
      %c6_160 = arith.constant 6 : index
      %c0_161 = arith.constant 0 : index
      %192 = vector.load %arg14[%c0_159, %c6_160, %c0_161] : memref<2x32x32xf32, #tpu.memory_space<vmem>>, vector<2x16x32xf32>
      %193 = vector.shape_cast %192 : vector<2x16x32xf32> to vector<32x32xf32>
      %c0_162 = arith.constant 0 : index
      %c7_163 = arith.constant 7 : index
      %c0_164 = arith.constant 0 : index
      %194 = vector.load %arg14[%c0_162, %c7_163, %c0_164] : memref<2x32x32xf32, #tpu.memory_space<vmem>>, vector<2x16x32xf32>
      %195 = vector.shape_cast %194 : vector<2x16x32xf32> to vector<32x32xf32>
      %c0_165 = arith.constant 0 : index
      %c8_166 = arith.constant 8 : index
      %c0_167 = arith.constant 0 : index
      %196 = vector.load %arg14[%c0_165, %c8_166, %c0_167] : memref<2x32x32xf32, #tpu.memory_space<vmem>>, vector<2x16x32xf32>
      %197 = vector.shape_cast %196 : vector<2x16x32xf32> to vector<32x32xf32>
      %c0_168 = arith.constant 0 : index
      %c9_169 = arith.constant 9 : index
      %c0_170 = arith.constant 0 : index
      %198 = vector.load %arg14[%c0_168, %c9_169, %c0_170] : memref<2x32x32xf32, #tpu.memory_space<vmem>>, vector<2x16x32xf32>
      %199 = vector.shape_cast %198 : vector<2x16x32xf32> to vector<32x32xf32>
      %c0_171 = arith.constant 0 : index
      %c10_172 = arith.constant 10 : index
      %c0_173 = arith.constant 0 : index
      %200 = vector.load %arg14[%c0_171, %c10_172, %c0_173] : memref<2x32x32xf32, #tpu.memory_space<vmem>>, vector<2x16x32xf32>
      %201 = vector.shape_cast %200 : vector<2x16x32xf32> to vector<32x32xf32>
      %c0_174 = arith.constant 0 : index
      %c11_175 = arith.constant 11 : index
      %c0_176 = arith.constant 0 : index
      %202 = vector.load %arg14[%c0_174, %c11_175, %c0_176] : memref<2x32x32xf32, #tpu.memory_space<vmem>>, vector<2x16x32xf32>
      %203 = vector.shape_cast %202 : vector<2x16x32xf32> to vector<32x32xf32>
      %204 = tpu.concatenate %191, %193, %195, %197, %199, %201, %203 in 1 : vector<32x32xf32>, vector<32x32xf32>, vector<32x32xf32>, vector<32x32xf32>, vector<32x32xf32>, vector<32x32xf32>, vector<32x32xf32> -> vector<32x224xf32>
      %cst_177 = arith.constant dense<0.000000e+00> : vector<32x32xf32>
      %205 = tpu.matmul %204, %184, %cst_177 {dimension_numbers = #tpu.dot_dimension_numbers<[1], [0], [0], [1], [0, 0, 1, 1], [], []>} : vector<32x224xf32>, vector<224x32xf32>, vector<32x32xf32> -> vector<32x32xf32>
      %206 = vector.broadcast %187 : vector<1x32xf32> to vector<32x32xf32>
      %207 = arith.addf %205, %206 : vector<32x32xf32>
      %cst_178 = arith.constant 0.000000e+00 : f32
      %208 = vector.broadcast %cst_178 : f32 to vector<32x32xf32>
      %209 = arith.maximumf %207, %208 : vector<32x32xf32>
      scf.yield %209 : vector<32x32xf32>
    }
    %c12_i32_77 = arith.constant 12 : i32
    %70 = arith.addf %69, %55 : vector<32x32xf32>
    %c0_i32_78 = arith.constant 0 : i32
    %c12_i32_79 = arith.constant 12 : i32
    %71 = arith.addi %c0_i32_78, %c12_i32_79 : i32
    %c1_i32_80 = arith.constant 1 : i32
    %72 = scf.for %arg15 = %c0_i32_78 to %71 step %c1_i32_80 iter_args(%arg16 = %70) -> (vector<32x32xf32>)  : i32 {
      %182 = arith.index_cast %arg15 : i32 to index
      %c0_149 = arith.constant 0 : index
      %c0_150 = arith.constant 0 : index
      %183 = vector.load %arg7[%182, %c0_149, %c0_150] : memref<12x224x32xf32, #tpu.memory_space<vmem>>, vector<1x224x32xf32>
      %184 = vector.shape_cast %183 : vector<1x224x32xf32> to vector<224x32xf32>
      %185 = arith.index_cast %arg15 : i32 to index
      %c0_151 = arith.constant 0 : index
      %c0_152 = arith.constant 0 : index
      %186 = vector.load %arg8[%185, %c0_151, %c0_152] : memref<12x1x32xf32, #tpu.memory_space<vmem>>, vector<1x1x32xf32>
      %187 = vector.shape_cast %186 : vector<1x1x32xf32> to vector<1x32xf32>
      %188 = vector.shape_cast %arg16 : vector<32x32xf32> to vector<2x16x32xf32>
      %c0_153 = arith.constant 0 : index
      %c8_154 = arith.constant 8 : index
      %c0_155 = arith.constant 0 : index
      %189 = vector.load %arg14[%c0_153, %c8_154, %c0_155] : memref<2x32x32xf32, #tpu.memory_space<vmem>>, vector<2x16x32xf32>
      tpu.vector_store %arg14[%c0_153, %c8_154, %c0_155], %188 {strides = array<i32>} : memref<2x32x32xf32, #tpu.memory_space<vmem>>, vector<2x16x32xf32>,
      %c0_156 = arith.constant 0 : index
      %c5_157 = arith.constant 5 : index
      %c0_158 = arith.constant 0 : index
      %190 = vector.load %arg14[%c0_156, %c5_157, %c0_158] : memref<2x32x32xf32, #tpu.memory_space<vmem>>, vector<2x16x32xf32>
      %191 = vector.shape_cast %190 : vector<2x16x32xf32> to vector<32x32xf32>
      %c0_159 = arith.constant 0 : index
      %c6_160 = arith.constant 6 : index
      %c0_161 = arith.constant 0 : index
      %192 = vector.load %arg14[%c0_159, %c6_160, %c0_161] : memref<2x32x32xf32, #tpu.memory_space<vmem>>, vector<2x16x32xf32>
      %193 = vector.shape_cast %192 : vector<2x16x32xf32> to vector<32x32xf32>
      %c0_162 = arith.constant 0 : index
      %c7_163 = arith.constant 7 : index
      %c0_164 = arith.constant 0 : index
      %194 = vector.load %arg14[%c0_162, %c7_163, %c0_164] : memref<2x32x32xf32, #tpu.memory_space<vmem>>, vector<2x16x32xf32>
      %195 = vector.shape_cast %194 : vector<2x16x32xf32> to vector<32x32xf32>
      %c0_165 = arith.constant 0 : index
      %c8_166 = arith.constant 8 : index
      %c0_167 = arith.constant 0 : index
      %196 = vector.load %arg14[%c0_165, %c8_166, %c0_167] : memref<2x32x32xf32, #tpu.memory_space<vmem>>, vector<2x16x32xf32>
      %197 = vector.shape_cast %196 : vector<2x16x32xf32> to vector<32x32xf32>
      %c0_168 = arith.constant 0 : index
      %c9_169 = arith.constant 9 : index
      %c0_170 = arith.constant 0 : index
      %198 = vector.load %arg14[%c0_168, %c9_169, %c0_170] : memref<2x32x32xf32, #tpu.memory_space<vmem>>, vector<2x16x32xf32>
      %199 = vector.shape_cast %198 : vector<2x16x32xf32> to vector<32x32xf32>
      %c0_171 = arith.constant 0 : index
      %c10_172 = arith.constant 10 : index
      %c0_173 = arith.constant 0 : index
      %200 = vector.load %arg14[%c0_171, %c10_172, %c0_173] : memref<2x32x32xf32, #tpu.memory_space<vmem>>, vector<2x16x32xf32>
      %201 = vector.shape_cast %200 : vector<2x16x32xf32> to vector<32x32xf32>
      %c0_174 = arith.constant 0 : index
      %c11_175 = arith.constant 11 : index
      %c0_176 = arith.constant 0 : index
      %202 = vector.load %arg14[%c0_174, %c11_175, %c0_176] : memref<2x32x32xf32, #tpu.memory_space<vmem>>, vector<2x16x32xf32>
      %203 = vector.shape_cast %202 : vector<2x16x32xf32> to vector<32x32xf32>
      %204 = tpu.concatenate %191, %193, %195, %197, %199, %201, %203 in 1 : vector<32x32xf32>, vector<32x32xf32>, vector<32x32xf32>, vector<32x32xf32>, vector<32x32xf32>, vector<32x32xf32>, vector<32x32xf32> -> vector<32x224xf32>
      %cst_177 = arith.constant dense<0.000000e+00> : vector<32x32xf32>
      %205 = tpu.matmul %204, %184, %cst_177 {dimension_numbers = #tpu.dot_dimension_numbers<[1], [0], [0], [1], [0, 0, 1, 1], [], []>} : vector<32x224xf32>, vector<224x32xf32>, vector<32x32xf32> -> vector<32x32xf32>
      %206 = vector.broadcast %187 : vector<1x32xf32> to vector<32x32xf32>
      %207 = arith.addf %205, %206 : vector<32x32xf32>
      %cst_178 = arith.constant 0.000000e+00 : f32
      %208 = vector.broadcast %cst_178 : f32 to vector<32x32xf32>
      %209 = arith.maximumf %207, %208 : vector<32x32xf32>
      scf.yield %209 : vector<32x32xf32>
    }
    %c12_i32_81 = arith.constant 12 : i32
    %73 = arith.addf %72, %69 : vector<32x32xf32>
    %74 = tpu.concatenate %61, %67, %73 in 1 : vector<32x32xf32>, vector<32x32xf32>, vector<32x32xf32> -> vector<32x96xf32>
    %c0_82 = arith.constant 0 : index
    %c0_83 = arith.constant 0 : index
    %75 = vector.load %arg9[%c0_82, %c0_83] : memref<96x32xf32, #tpu.memory_space<vmem>>, vector<96x32xf32>
    %cst_84 = arith.constant dense<0.000000e+00> : vector<32x32xf32>
    %76 = tpu.matmul %74, %75, %cst_84 {dimension_numbers = #tpu.dot_dimension_numbers<[1], [0], [0], [1], [0, 0, 1, 1], [], []>} : vector<32x96xf32>, vector<96x32xf32>, vector<32x32xf32> -> vector<32x32xf32>
    %c0_85 = arith.constant 0 : index
    %c0_86 = arith.constant 0 : index
    %77 = vector.load %arg10[%c0_85, %c0_86] : memref<1x32xf32, #tpu.memory_space<vmem>>, vector<1x32xf32>
    %78 = vector.broadcast %77 : vector<1x32xf32> to vector<32x32xf32>
    %79 = arith.addf %76, %78 : vector<32x32xf32>
    %cst_87 = arith.constant 0.000000e+00 : f32
    %80 = vector.broadcast %cst_87 : f32 to vector<32x32xf32>
    %81 = arith.maximumf %79, %80 : vector<32x32xf32>
    %82 = vector.shape_cast %81 : vector<32x32xf32> to vector<2x16x32xf32>
    %83 = vector.extract_strided_slice %82 {offsets = [0, 0, 0], sizes = [2, 1, 32], strides = [1, 1, 1]} : vector<2x16x32xf32> to vector<2x1x32xf32>
    %84 = vector.shape_cast %83 : vector<2x1x32xf32> to vector<2x32xf32>
    %c0_88 = arith.constant 0 : index
    %c0_89 = arith.constant 0 : index
    %c0_90 = arith.constant 0 : index
    %85 = vector.load %arg11[%c0_88, %c0_89, %c0_90] : memref<16x32x16xf32, #tpu.memory_space<vmem>>, vector<1x32x16xf32>
    %86 = vector.shape_cast %85 : vector<1x32x16xf32> to vector<32x16xf32>
    %cst_91 = arith.constant dense<0.000000e+00> : vector<2x16xf32>
    %87 = tpu.matmul %84, %86, %cst_91 {dimension_numbers = #tpu.dot_dimension_numbers<[1], [0], [0], [1], [0, 0, 1, 1], [], []>} : vector<2x32xf32>, vector<32x16xf32>, vector<2x16xf32> -> vector<2x16xf32>
    %88 = vector.extract_strided_slice %82 {offsets = [0, 1, 0], sizes = [2, 1, 32], strides = [1, 1, 1]} : vector<2x16x32xf32> to vector<2x1x32xf32>
    %89 = vector.shape_cast %88 : vector<2x1x32xf32> to vector<2x32xf32>
    %c1_92 = arith.constant 1 : index
    %c0_93 = arith.constant 0 : index
    %c0_94 = arith.constant 0 : index
    %90 = vector.load %arg11[%c1_92, %c0_93, %c0_94] : memref<16x32x16xf32, #tpu.memory_space<vmem>>, vector<1x32x16xf32>
    %91 = vector.shape_cast %90 : vector<1x32x16xf32> to vector<32x16xf32>
    %cst_95 = arith.constant dense<0.000000e+00> : vector<2x16xf32>
    %92 = tpu.matmul %89, %91, %cst_95 {dimension_numbers = #tpu.dot_dimension_numbers<[1], [0], [0], [1], [0, 0, 1, 1], [], []>} : vector<2x32xf32>, vector<32x16xf32>, vector<2x16xf32> -> vector<2x16xf32>
    %93 = arith.addf %87, %92 : vector<2x16xf32>
    %94 = vector.extract_strided_slice %82 {offsets = [0, 2, 0], sizes = [2, 1, 32], strides = [1, 1, 1]} : vector<2x16x32xf32> to vector<2x1x32xf32>
    %95 = vector.shape_cast %94 : vector<2x1x32xf32> to vector<2x32xf32>
    %c2 = arith.constant 2 : index
    %c0_96 = arith.constant 0 : index
    %c0_97 = arith.constant 0 : index
    %96 = vector.load %arg11[%c2, %c0_96, %c0_97] : memref<16x32x16xf32, #tpu.memory_space<vmem>>, vector<1x32x16xf32>
    %97 = vector.shape_cast %96 : vector<1x32x16xf32> to vector<32x16xf32>
    %cst_98 = arith.constant dense<0.000000e+00> : vector<2x16xf32>
    %98 = tpu.matmul %95, %97, %cst_98 {dimension_numbers = #tpu.dot_dimension_numbers<[1], [0], [0], [1], [0, 0, 1, 1], [], []>} : vector<2x32xf32>, vector<32x16xf32>, vector<2x16xf32> -> vector<2x16xf32>
    %99 = arith.addf %93, %98 : vector<2x16xf32>
    %100 = vector.extract_strided_slice %82 {offsets = [0, 3, 0], sizes = [2, 1, 32], strides = [1, 1, 1]} : vector<2x16x32xf32> to vector<2x1x32xf32>
    %101 = vector.shape_cast %100 : vector<2x1x32xf32> to vector<2x32xf32>
    %c3 = arith.constant 3 : index
    %c0_99 = arith.constant 0 : index
    %c0_100 = arith.constant 0 : index
    %102 = vector.load %arg11[%c3, %c0_99, %c0_100] : memref<16x32x16xf32, #tpu.memory_space<vmem>>, vector<1x32x16xf32>
    %103 = vector.shape_cast %102 : vector<1x32x16xf32> to vector<32x16xf32>
    %cst_101 = arith.constant dense<0.000000e+00> : vector<2x16xf32>
    %104 = tpu.matmul %101, %103, %cst_101 {dimension_numbers = #tpu.dot_dimension_numbers<[1], [0], [0], [1], [0, 0, 1, 1], [], []>} : vector<2x32xf32>, vector<32x16xf32>, vector<2x16xf32> -> vector<2x16xf32>
    %105 = arith.addf %99, %104 : vector<2x16xf32>
    %106 = vector.extract_strided_slice %82 {offsets = [0, 4, 0], sizes = [2, 1, 32], strides = [1, 1, 1]} : vector<2x16x32xf32> to vector<2x1x32xf32>
    %107 = vector.shape_cast %106 : vector<2x1x32xf32> to vector<2x32xf32>
    %c4 = arith.constant 4 : index
    %c0_102 = arith.constant 0 : index
    %c0_103 = arith.constant 0 : index
    %108 = vector.load %arg11[%c4, %c0_102, %c0_103] : memref<16x32x16xf32, #tpu.memory_space<vmem>>, vector<1x32x16xf32>
    %109 = vector.shape_cast %108 : vector<1x32x16xf32> to vector<32x16xf32>
    %cst_104 = arith.constant dense<0.000000e+00> : vector<2x16xf32>
    %110 = tpu.matmul %107, %109, %cst_104 {dimension_numbers = #tpu.dot_dimension_numbers<[1], [0], [0], [1], [0, 0, 1, 1], [], []>} : vector<2x32xf32>, vector<32x16xf32>, vector<2x16xf32> -> vector<2x16xf32>
    %111 = arith.addf %105, %110 : vector<2x16xf32>
    %112 = vector.extract_strided_slice %82 {offsets = [0, 5, 0], sizes = [2, 1, 32], strides = [1, 1, 1]} : vector<2x16x32xf32> to vector<2x1x32xf32>
    %113 = vector.shape_cast %112 : vector<2x1x32xf32> to vector<2x32xf32>
    %c5_105 = arith.constant 5 : index
    %c0_106 = arith.constant 0 : index
    %c0_107 = arith.constant 0 : index
    %114 = vector.load %arg11[%c5_105, %c0_106, %c0_107] : memref<16x32x16xf32, #tpu.memory_space<vmem>>, vector<1x32x16xf32>
    %115 = vector.shape_cast %114 : vector<1x32x16xf32> to vector<32x16xf32>
    %cst_108 = arith.constant dense<0.000000e+00> : vector<2x16xf32>
    %116 = tpu.matmul %113, %115, %cst_108 {dimension_numbers = #tpu.dot_dimension_numbers<[1], [0], [0], [1], [0, 0, 1, 1], [], []>} : vector<2x32xf32>, vector<32x16xf32>, vector<2x16xf32> -> vector<2x16xf32>
    %117 = arith.addf %111, %116 : vector<2x16xf32>
    %118 = vector.extract_strided_slice %82 {offsets = [0, 6, 0], sizes = [2, 1, 32], strides = [1, 1, 1]} : vector<2x16x32xf32> to vector<2x1x32xf32>
    %119 = vector.shape_cast %118 : vector<2x1x32xf32> to vector<2x32xf32>
    %c6_109 = arith.constant 6 : index
    %c0_110 = arith.constant 0 : index
    %c0_111 = arith.constant 0 : index
    %120 = vector.load %arg11[%c6_109, %c0_110, %c0_111] : memref<16x32x16xf32, #tpu.memory_space<vmem>>, vector<1x32x16xf32>
    %121 = vector.shape_cast %120 : vector<1x32x16xf32> to vector<32x16xf32>
    %cst_112 = arith.constant dense<0.000000e+00> : vector<2x16xf32>
    %122 = tpu.matmul %119, %121, %cst_112 {dimension_numbers = #tpu.dot_dimension_numbers<[1], [0], [0], [1], [0, 0, 1, 1], [], []>} : vector<2x32xf32>, vector<32x16xf32>, vector<2x16xf32> -> vector<2x16xf32>
    %123 = arith.addf %117, %122 : vector<2x16xf32>
    %124 = vector.extract_strided_slice %82 {offsets = [0, 7, 0], sizes = [2, 1, 32], strides = [1, 1, 1]} : vector<2x16x32xf32> to vector<2x1x32xf32>
    %125 = vector.shape_cast %124 : vector<2x1x32xf32> to vector<2x32xf32>
    %c7_113 = arith.constant 7 : index
    %c0_114 = arith.constant 0 : index
    %c0_115 = arith.constant 0 : index
    %126 = vector.load %arg11[%c7_113, %c0_114, %c0_115] : memref<16x32x16xf32, #tpu.memory_space<vmem>>, vector<1x32x16xf32>
    %127 = vector.shape_cast %126 : vector<1x32x16xf32> to vector<32x16xf32>
    %cst_116 = arith.constant dense<0.000000e+00> : vector<2x16xf32>
    %128 = tpu.matmul %125, %127, %cst_116 {dimension_numbers = #tpu.dot_dimension_numbers<[1], [0], [0], [1], [0, 0, 1, 1], [], []>} : vector<2x32xf32>, vector<32x16xf32>, vector<2x16xf32> -> vector<2x16xf32>
    %129 = arith.addf %123, %128 : vector<2x16xf32>
    %130 = vector.extract_strided_slice %82 {offsets = [0, 8, 0], sizes = [2, 1, 32], strides = [1, 1, 1]} : vector<2x16x32xf32> to vector<2x1x32xf32>
    %131 = vector.shape_cast %130 : vector<2x1x32xf32> to vector<2x32xf32>
    %c8_117 = arith.constant 8 : index
    %c0_118 = arith.constant 0 : index
    %c0_119 = arith.constant 0 : index
    %132 = vector.load %arg11[%c8_117, %c0_118, %c0_119] : memref<16x32x16xf32, #tpu.memory_space<vmem>>, vector<1x32x16xf32>
    %133 = vector.shape_cast %132 : vector<1x32x16xf32> to vector<32x16xf32>
    %cst_120 = arith.constant dense<0.000000e+00> : vector<2x16xf32>
    %134 = tpu.matmul %131, %133, %cst_120 {dimension_numbers = #tpu.dot_dimension_numbers<[1], [0], [0], [1], [0, 0, 1, 1], [], []>} : vector<2x32xf32>, vector<32x16xf32>, vector<2x16xf32> -> vector<2x16xf32>
    %135 = arith.addf %129, %134 : vector<2x16xf32>
    %136 = vector.extract_strided_slice %82 {offsets = [0, 9, 0], sizes = [2, 1, 32], strides = [1, 1, 1]} : vector<2x16x32xf32> to vector<2x1x32xf32>
    %137 = vector.shape_cast %136 : vector<2x1x32xf32> to vector<2x32xf32>
    %c9_121 = arith.constant 9 : index
    %c0_122 = arith.constant 0 : index
    %c0_123 = arith.constant 0 : index
    %138 = vector.load %arg11[%c9_121, %c0_122, %c0_123] : memref<16x32x16xf32, #tpu.memory_space<vmem>>, vector<1x32x16xf32>
    %139 = vector.shape_cast %138 : vector<1x32x16xf32> to vector<32x16xf32>
    %cst_124 = arith.constant dense<0.000000e+00> : vector<2x16xf32>
    %140 = tpu.matmul %137, %139, %cst_124 {dimension_numbers = #tpu.dot_dimension_numbers<[1], [0], [0], [1], [0, 0, 1, 1], [], []>} : vector<2x32xf32>, vector<32x16xf32>, vector<2x16xf32> -> vector<2x16xf32>
    %141 = arith.addf %135, %140 : vector<2x16xf32>
    %142 = vector.extract_strided_slice %82 {offsets = [0, 10, 0], sizes = [2, 1, 32], strides = [1, 1, 1]} : vector<2x16x32xf32> to vector<2x1x32xf32>
    %143 = vector.shape_cast %142 : vector<2x1x32xf32> to vector<2x32xf32>
    %c10_125 = arith.constant 10 : index
    %c0_126 = arith.constant 0 : index
    %c0_127 = arith.constant 0 : index
    %144 = vector.load %arg11[%c10_125, %c0_126, %c0_127] : memref<16x32x16xf32, #tpu.memory_space<vmem>>, vector<1x32x16xf32>
    %145 = vector.shape_cast %144 : vector<1x32x16xf32> to vector<32x16xf32>
    %cst_128 = arith.constant dense<0.000000e+00> : vector<2x16xf32>
    %146 = tpu.matmul %143, %145, %cst_128 {dimension_numbers = #tpu.dot_dimension_numbers<[1], [0], [0], [1], [0, 0, 1, 1], [], []>} : vector<2x32xf32>, vector<32x16xf32>, vector<2x16xf32> -> vector<2x16xf32>
    %147 = arith.addf %141, %146 : vector<2x16xf32>
    %148 = vector.extract_strided_slice %82 {offsets = [0, 11, 0], sizes = [2, 1, 32], strides = [1, 1, 1]} : vector<2x16x32xf32> to vector<2x1x32xf32>
    %149 = vector.shape_cast %148 : vector<2x1x32xf32> to vector<2x32xf32>
    %c11_129 = arith.constant 11 : index
    %c0_130 = arith.constant 0 : index
    %c0_131 = arith.constant 0 : index
    %150 = vector.load %arg11[%c11_129, %c0_130, %c0_131] : memref<16x32x16xf32, #tpu.memory_space<vmem>>, vector<1x32x16xf32>
    %151 = vector.shape_cast %150 : vector<1x32x16xf32> to vector<32x16xf32>
    %cst_132 = arith.constant dense<0.000000e+00> : vector<2x16xf32>
    %152 = tpu.matmul %149, %151, %cst_132 {dimension_numbers = #tpu.dot_dimension_numbers<[1], [0], [0], [1], [0, 0, 1, 1], [], []>} : vector<2x32xf32>, vector<32x16xf32>, vector<2x16xf32> -> vector<2x16xf32>
    %153 = arith.addf %147, %152 : vector<2x16xf32>
    %154 = vector.extract_strided_slice %82 {offsets = [0, 12, 0], sizes = [2, 1, 32], strides = [1, 1, 1]} : vector<2x16x32xf32> to vector<2x1x32xf32>
    %155 = vector.shape_cast %154 : vector<2x1x32xf32> to vector<2x32xf32>
    %c12 = arith.constant 12 : index
    %c0_133 = arith.constant 0 : index
    %c0_134 = arith.constant 0 : index
    %156 = vector.load %arg11[%c12, %c0_133, %c0_134] : memref<16x32x16xf32, #tpu.memory_space<vmem>>, vector<1x32x16xf32>
    %157 = vector.shape_cast %156 : vector<1x32x16xf32> to vector<32x16xf32>
    %cst_135 = arith.constant dense<0.000000e+00> : vector<2x16xf32>
    %158 = tpu.matmul %155, %157, %cst_135 {dimension_numbers = #tpu.dot_dimension_numbers<[1], [0], [0], [1], [0, 0, 1, 1], [], []>} : vector<2x32xf32>, vector<32x16xf32>, vector<2x16xf32> -> vector<2x16xf32>
    %159 = arith.addf %153, %158 : vector<2x16xf32>
    %160 = vector.extract_strided_slice %82 {offsets = [0, 13, 0], sizes = [2, 1, 32], strides = [1, 1, 1]} : vector<2x16x32xf32> to vector<2x1x32xf32>
    %161 = vector.shape_cast %160 : vector<2x1x32xf32> to vector<2x32xf32>
    %c13 = arith.constant 13 : index
    %c0_136 = arith.constant 0 : index
    %c0_137 = arith.constant 0 : index
    %162 = vector.load %arg11[%c13, %c0_136, %c0_137] : memref<16x32x16xf32, #tpu.memory_space<vmem>>, vector<1x32x16xf32>
    %163 = vector.shape_cast %162 : vector<1x32x16xf32> to vector<32x16xf32>
    %cst_138 = arith.constant dense<0.000000e+00> : vector<2x16xf32>
    %164 = tpu.matmul %161, %163, %cst_138 {dimension_numbers = #tpu.dot_dimension_numbers<[1], [0], [0], [1], [0, 0, 1, 1], [], []>} : vector<2x32xf32>, vector<32x16xf32>, vector<2x16xf32> -> vector<2x16xf32>
    %165 = arith.addf %159, %164 : vector<2x16xf32>
    %166 = vector.extract_strided_slice %82 {offsets = [0, 14, 0], sizes = [2, 1, 32], strides = [1, 1, 1]} : vector<2x16x32xf32> to vector<2x1x32xf32>
    %167 = vector.shape_cast %166 : vector<2x1x32xf32> to vector<2x32xf32>
    %c14 = arith.constant 14 : index
    %c0_139 = arith.constant 0 : index
    %c0_140 = arith.constant 0 : index
    %168 = vector.load %arg11[%c14, %c0_139, %c0_140] : memref<16x32x16xf32, #tpu.memory_space<vmem>>, vector<1x32x16xf32>
    %169 = vector.shape_cast %168 : vector<1x32x16xf32> to vector<32x16xf32>
    %cst_141 = arith.constant dense<0.000000e+00> : vector<2x16xf32>
    %170 = tpu.matmul %167, %169, %cst_141 {dimension_numbers = #tpu.dot_dimension_numbers<[1], [0], [0], [1], [0, 0, 1, 1], [], []>} : vector<2x32xf32>, vector<32x16xf32>, vector<2x16xf32> -> vector<2x16xf32>
    %171 = arith.addf %165, %170 : vector<2x16xf32>
    %172 = vector.extract_strided_slice %82 {offsets = [0, 15, 0], sizes = [2, 1, 32], strides = [1, 1, 1]} : vector<2x16x32xf32> to vector<2x1x32xf32>
    %173 = vector.shape_cast %172 : vector<2x1x32xf32> to vector<2x32xf32>
    %c15 = arith.constant 15 : index
    %c0_142 = arith.constant 0 : index
    %c0_143 = arith.constant 0 : index
    %174 = vector.load %arg11[%c15, %c0_142, %c0_143] : memref<16x32x16xf32, #tpu.memory_space<vmem>>, vector<1x32x16xf32>
    %175 = vector.shape_cast %174 : vector<1x32x16xf32> to vector<32x16xf32>
    %cst_144 = arith.constant dense<0.000000e+00> : vector<2x16xf32>
    %176 = tpu.matmul %173, %175, %cst_144 {dimension_numbers = #tpu.dot_dimension_numbers<[1], [0], [0], [1], [0, 0, 1, 1], [], []>} : vector<2x32xf32>, vector<32x16xf32>, vector<2x16xf32> -> vector<2x16xf32>
    %177 = arith.addf %171, %176 : vector<2x16xf32>
    %c0_145 = arith.constant 0 : index
    %c0_146 = arith.constant 0 : index
    %178 = vector.load %arg12[%c0_145, %c0_146] : memref<1x16xf32, #tpu.memory_space<vmem>>, vector<1x16xf32>
    %179 = vector.broadcast %178 : vector<1x16xf32> to vector<2x16xf32>
    %180 = arith.addf %177, %179 : vector<2x16xf32>
    %c0_147 = arith.constant 0 : index
    %c0_148 = arith.constant 0 : index
    %181 = vector.load %arg13[%c0_147, %c0_148] : memref<2x16xf32, #tpu.memory_space<vmem>>, vector<2x16xf32>
    tpu.vector_store %arg13[%c0_147, %c0_148], %180 {strides = array<i32>} : memref<2x16xf32, #tpu.memory_space<vmem>>, vector<2x16xf32>,
    return
  }
}

</mosaic_0001>

<bundles_post_ra>
// kernel: _lambda_.1
= control target key start
LH: loop header
LB: loop body
LE: loop exit
PB: predicated region body
PF: predicated region fallthrough
CT: control target
= control target key end

     0   :  { %vm45_vm0 = vcmask 261120   ;;  %v5748_v2 = vmov 0.0   ;;  %s7514_s0 = inlined_call_operand.vmem [shape: f32[2,16,32], index: 0, kind: input, shape index: {}]   ;;  %s7515_s1 = inlined_call_operand.vmem [shape: f32[2,224,32], index: 1, kind: input, shape index: {}]   ;;  %s7516_s2 = inlined_call_operand.vmem [shape: f32[2,1,32], index: 2, kind: input, shape index: {}]   ;;  %s7517_s3 = inlined_call_operand.vmem [shape: f32[12,224,32], index: 3, kind: input, shape index: {}]   ;;  %s7518_s4 = inlined_call_operand.vmem [shape: f32[12,1,32], index: 4, kind: input, shape index: {}]   ;;  %s7519_s5 = inlined_call_operand.vmem [shape: f32[12,224,32], index: 5, kind: input, shape index: {}]   ;;  %s7520_s6 = inlined_call_operand.vmem [shape: f32[12,1,32], index: 6, kind: input, shape index: {}]   ;;  %s7521_s7 = inlined_call_operand.vmem [shape: f32[12,224,32], index: 7, kind: input, shape index: {}]   ;;  %s7522_s8 = inlined_call_operand.vmem [shape: f32[12,1,32], index: 8, kind: input, shape index: {}]   ;;  %s7523_s9 = inlined_call_operand.vmem [shape: f32[96,32], index: 9, kind: input, shape index: {}]   ;;  %s7524_s10 = inlined_call_operand.vmem [shape: f32[1,32], index: 10, kind: input, shape index: {}]   ;;  %s7525_s11 = inlined_call_operand.vmem [shape: f32[16,32,16], index: 11, kind: input, shape index: {}]   ;;  %s7526_s12 = inlined_call_operand.vmem [shape: f32[1,16], index: 12, kind: input, shape index: {}]   ;;  %s7527_s13 = inlined_call_operand.hbm [shape: f32[2,16], index: 13, kind: output, shape index: {}]  }
   0x1   :  { %v54_v0 = vld [vmem:[%s7514_s0] sm:$0xff]  ;;  %v55_v1 = vld [vmem:[%s7514_s0 + $0x8] sm:$0xff]  ;;  %46 = vst.msk [vmem:[#allocation2] sm:$0xff] %vm45_vm0, %v5748_v2  ;;  %47 = vst.msk [vmem:[#allocation2 + $0x8] sm:$0xff] %vm45_vm0, %v5748_v2 }
   0x2   :  { %48 = vst.msk [vmem:[#allocation2 + $0x10] sm:$0xff] %vm45_vm0, %v5748_v2  ;;  %49 = vst.msk [vmem:[#allocation2 + $0x18] sm:$0xff] %vm45_vm0, %v5748_v2  ;;  %v56_v3 = vld [vmem:[%s7514_s0 + $0x10] sm:$0xff]  ;;  %v57_v4 = vld [vmem:[%s7514_s0 + $0x18] sm:$0xff] }
   0x3   :  { %50 = vst.msk [vmem:[#allocation2 + $0x20] sm:$0xff] %vm45_vm0, %v5748_v2  ;;  %51 = vst.msk [vmem:[#allocation2 + $0x28] sm:$0xff] %vm45_vm0, %v5748_v2 }
   0x4   :  { %52 = vst.msk [vmem:[#allocation2 + $0x30] sm:$0xff] %vm45_vm0, %v5748_v2  ;;  %53 = vst.msk [vmem:[#allocation2 + $0x38] sm:$0xff] %vm45_vm0, %v5748_v2 }
   0x5   :  { %18 = vsyncpa [#allocation4], 0  ;;  %87 = vst.msk [vmem:[#allocation2 + $0x8] sm:$0xff] %vm45_vm0, %v54_v0  ;;  %v5749_v5 = vmov 0.0|0.0   ;;  %v58_v6 = vld [vmem:[%s7515_s1] sm:$0xff]  ;;  %v59_v7 = vld [vmem:[%s7515_s1 + $0x8] sm:$0xff] }
   0x6   :  { %88 = vst.msk [vmem:[#allocation2 + $0x10] sm:$0xff] %vm45_vm0, %v55_v1  ;;  %89 = vst.msk [vmem:[#allocation2 + $0x28] sm:$0xff] %vm45_vm0, %v56_v3  ;;  %4359 = vmatprep.subr.bf16.mxu0 %v5749_v5  ;;  %v60_v8 = vld [vmem:[%s7515_s1 + $0x10] sm:$0xff]  ;;  %4401 = vmatprep.subr.bf16.mxu1 %v5749_v5  ;;  %v4360_v9 = vpack.c.bf16 %v59_v7, %v58_v6  ;;  %v61_v10 = vld [vmem:[%s7515_s1 + $0x18] sm:$0xff]  ;;  %s5750_s14 = smov 32   ;;  %s5751_s15 = smov 64  }
   0x7   :  { %90 = vst.msk [vmem:[#allocation2 + $0x30] sm:$0xff] %vm45_vm0, %v57_v4  ;;  %v4363_v11 = vpack.c.bf16 %v61_v10, %v60_v8  ;;  %v62_v12 = vld [vmem:[%s7515_s1 + $0x20] sm:$0xff]  ;;  %v63_v13 = vld [vmem:[%s7515_s1 + $0x28] sm:$0xff]  ;;  %v64_v20 = vld [vmem:[%s7515_s1 + $0x30] sm:$0xff]  ;;  %s5752_s23 = smov 96   ;;  %vm208_vm1 = vcmask 785408  }
   0x8   :  { %4361 = vmatpush1.bf16.msra.mxu0 %v4360_v9  ;;  %v4366_v17 = vpack.c.bf16 %v63_v13, %v62_v12  ;;  %v65_v21 = vld [vmem:[%s7515_s1 + $0x38] sm:$0xff]  ;;  %v66_v28 = vld [vmem:[%s7515_s1 + $0x40] sm:$0xff]  ;;  %v67_v29 = vld [vmem:[%s7515_s1 + $0x48] sm:$0xff]  ;;  %vm203_vm2 = vcmask 523264  }
   0x9   :  { %4362 = vmatprep.subr.bf16.mxu0 %v5749_v5  ;;  %v4369_v26 = vpack.c.bf16 %v65_v21, %v64_v20  ;;  %v4372_v31 = vpack.c.bf16 %v67_v29, %v66_v28  ;;  %v68_v32 = vld [vmem:[%s7515_s1 + $0x50] sm:$0xff]  ;;  %v69_v33 = vld [vmem:[%s7515_s1 + $0x58] sm:$0xff]  ;;  %v70_v40 = vld [vmem:[%s7515_s1 + $0x60] sm:$0xff] }
   0xa   :  { %v4375_v39 = vpack.c.bf16 %v69_v33, %v68_v32  ;;  %v71_v43 = vld [vmem:[%s7515_s1 + $0x68] sm:$0xff]  ;;  %v72_v47 = vld [vmem:[%s7515_s1 + $0x70] sm:$0xff]  ;;  %v73_v48 = vld [vmem:[%s7515_s1 + $0x78] sm:$0xff] }
   0xb   :  { %v4378_v46 = vpack.c.bf16 %v71_v43, %v70_v40  ;;  %v4381_v50 = vpack.c.bf16 %v73_v48, %v72_v47  ;;  %v74_v52 = vld [vmem:[%s7515_s1 + $0x80] sm:$0xff]  ;;  %v75_v53 = vld [vmem:[%s7515_s1 + $0x88] sm:$0xff]  ;;  %v76_v57 = vld [vmem:[%s7515_s1 + $0x90] sm:$0xff] }
   0xc   :  { %v95_v14 = vld [vmem:[#allocation2 + $0x6] sm:$0xff]  ;;  %4364 = vmatpush1.bf16.msra.mxu0 %v4363_v11  ;;  %v4384_v55 = vpack.c.bf16 %v75_v53, %v74_v52  ;;  %v77_v58 = vld [vmem:[%s7515_s1 + $0x98] sm:$0xff]  ;;  %v80_v0 = vld [vmem:[%s7515_s1 + $0xb0] sm:$0xff] }
   0xd   :  { %v96_v15 = vld [vmem:[#allocation2 + $0xe] sm:$0xff]  ;;  %4365 = vmatprep.subr.bf16.mxu0 %v5749_v5  ;;  %v97_v35 = vld [vmem:[#allocation2 + $0x26] sm:$0xff]  ;;  %v4387_v60 = vpack.c.bf16 %v77_v58, %v76_v57  ;;  %v81_v1 = vld [vmem:[%s7515_s1 + $0xb8] sm:$0xff] }
   0xe   :  { %v99_v16 = vld [vmem:[#allocation2 + $0x7] sm:$0xff]  ;;  %v5254_v18 = vpack.i.bf16 %v96_v15, %v95_v14  ;;  %v100_v19 = vld [vmem:[#allocation2 + $0xf] sm:$0xff]  ;;  %v4393_v3 = vpack.c.bf16 %v81_v1, %v80_v0  ;;  %v85_v9 = vld [vmem:[%s7515_s1 + $0xd8] sm:$0xff] }
   0xf   :  { %v5259_v22 = vpack.i.bf16 %v100_v19, %v99_v16  ;;  %v111_v23 = vld [vmem:[#allocation2 + $0xa] sm:$0xff]  ;;  %v112_v34 = vld [vmem:[#allocation2 + $0x12] sm:$0xff]  ;;  %v78_v61 = vld [vmem:[%s7515_s1 + $0xa0] sm:$0xff] }
  0x10   :  { %5255 = vrot.lane.b32.xlu0 %v5254_v18, %s5750_s14  ;;  %v103_v24 = vld [vmem:[#allocation2 + $0x8] sm:$0xff]  ;;  %v104_v25 = vld [vmem:[#allocation2 + $0x10] sm:$0xff]  ;;  %4367 = vmatpush1.bf16.msra.mxu0 %v4366_v17  ;;  %v82_v4 = vld [vmem:[%s7515_s1 + $0xc0] sm:$0xff] }
  0x11   :  { %5260 = vrot.lane.b32.xlu1 %v5259_v22, %s5751_s15  ;;  %v115_v27 = vld [vmem:[#allocation2 + $0xb] sm:$0xff]  ;;  %4368 = vmatprep.subr.bf16.mxu0 %v5749_v5  ;;  %v5264_v30 = vpack.i.bf16 %v104_v25, %v103_v24  ;;  %v116_v37 = vld [vmem:[#allocation2 + $0x13] sm:$0xff]  ;;  %v3911_v0 = vld [vmem:[%s7515_s1 + $0xe0] sm:$0xff] }
  0x12   :  { %v98_v36 = vld [vmem:[#allocation2 + $0x2e] sm:$0xff]  ;;  %v91_v16 = vld [vmem:[#allocation2 + $0x5] sm:$0xff] }
  0x13   :  { %v5269_v38 = vpack.i.bf16 %v98_v36, %v97_v35  ;;  %v101_v41 = vld [vmem:[#allocation2 + $0x27] sm:$0xff]  ;;  %v102_v42 = vld [vmem:[#allocation2 + $0x2f] sm:$0xff] }
  0x14   :  { %171 = vrot.lane.b32.xlu0 %v111_v23, %s5750_s14  ;;  %4370 = vmatpush1.bf16.msra.mxu0 %v4369_v26  ;;  %v113_v44 = vld [vmem:[#allocation2 + $0x2a] sm:$0xff]  ;;  %v5274_v45 = vpack.i.bf16 %v102_v42, %v101_v41  ;;  %v114_v54 = vld [vmem:[#allocation2 + $0x32] sm:$0xff] }
  0x15   :  { %187 = vrot.lane.b32.xlu1 %v115_v27, %s5751_s15  ;;  %4371 = vmatprep.subr.bf16.mxu0 %v5749_v5  ;;  %v117_v49 = vld [vmem:[#allocation2 + $0x2b] sm:$0xff]  ;;  %v118_v56 = vld [vmem:[#allocation2 + $0x33] sm:$0xff] }
  0x16   :  { %v105_v51 = vld [vmem:[#allocation2 + $0x28] sm:$0xff]  ;;  %v106_v59 = vld [vmem:[#allocation2 + $0x30] sm:$0xff] }
  0x17   :  { %v79_v62 = vld [vmem:[%s7515_s1 + $0xa8] sm:$0xff]  ;;  %v84_v8 = vld [vmem:[%s7515_s1 + $0xd0] sm:$0xff] }
  0x18   :  { %5265 = vrot.lane.b32.xlu0 %v5264_v30, %s5752_s23  ;;  %4373 = vmatpush1.bf16.msra.mxu0 %v4372_v31  ;;  %v4390_v63 = vpack.c.bf16 %v79_v62, %v78_v61  ;;  %v83_v6 = vld [vmem:[%s7515_s1 + $0xc8] sm:$0xff]  ;;  %v4399_v10 = vpack.c.bf16 %v85_v9, %v84_v8  ;;  %v108_v22 = vld [vmem:[#allocation2 + $0x11] sm:$0xff]  ;;  %v3915_v8 = vld [vmem:[%s7515_s1 + $0x100] sm:$0xff] }
  0x19   :  { %173 = vrot.lane.b32.xlu1 %v112_v34, %s5750_s14  ;;  %4374 = vmatprep.subr.bf16.mxu0 %v5749_v5  ;;  %v4396_v7 = vpack.c.bf16 %v83_v6, %v82_v4  ;;  %v107_v13 = vld [vmem:[#allocation2 + $0x9] sm:$0xff]  ;;  %v110_v53 = vld [vmem:[#allocation2 + $0x31] sm:$0xff] }
  0x1a   :  { %v92_v25 = vld [vmem:[#allocation2 + $0xd] sm:$0xff]  ;;  %v3914_v6 = vld [vmem:[%s7515_s1 + $0xf8] sm:$0xff] }
  0x1b   :  { %v109_v40 = vld [vmem:[#allocation2 + $0x29] sm:$0xff] }
  0x1c   :  { %189 = vrot.lane.b32.xlu0 %v116_v37, %s5751_s15  ;;  %4376 = vmatpush1.bf16.msra.mxu0 %v4375_v39  ;;  %v93_v39 = vld [vmem:[#allocation2 + $0x25] sm:$0xff] }
  0x1d   :  { %5270 = vrot.lane.b32.xlu1 %v5269_v38, %s5750_s14  ;;  %4377 = vmatprep.subr.bf16.mxu0 %v5749_v5  ;;  %v3912_v1 = vld [vmem:[%s7515_s1 + $0xe8] sm:$0xff] }
  0x1e   :  { %v4402_v4 = vpack.c.bf16 %v3912_v1, %v3911_v0  ;;  %v3916_v9 = vld [vmem:[%s7515_s1 + $0x108] sm:$0xff] }
  0x20   :  { %175 = vrot.lane.b32.xlu0 %v113_v44, %s5750_s14  ;;  %4379 = vmatpush1.bf16.msra.mxu0 %v4378_v46 }
  0x21   :  { %5275 = vrot.lane.b32.xlu1 %v5274_v45, %s5751_s15  ;;  %4380 = vmatprep.subr.bf16.mxu0 %v5749_v5 }
  0x22   :  { %4403 = vmatpush1.bf16.msra.mxu1 %v4402_v4 }
  0x23   :  { %4404 = vmatprep.subr.bf16.mxu1 %v5749_v5 }
  0x24   :  { %191 = vrot.lane.b32.xlu0 %v117_v49, %s5751_s15  ;;  %4382 = vmatpush1.bf16.msra.mxu0 %v4381_v50 }
  0x25   :  { %159 = vrot.lane.b32.xlu1 %v105_v51, %s5752_s23  ;;  %4383 = vmatprep.subr.bf16.mxu0 %v5749_v5 }
  0x28   :  { %177 = vrot.lane.b32.xlu0 %v114_v54, %s5750_s14  ;;  %4385 = vmatpush1.bf16.msra.mxu0 %v4384_v55  ;;  %v94_v54 = vld [vmem:[#allocation2 + $0x2d] sm:$0xff] }
  0x29   :  { %193 = vrot.lane.b32.xlu1 %v118_v56, %s5751_s15  ;;  %4386 = vmatprep.subr.bf16.mxu0 %v5749_v5 }
  0x2c   :  { %161 = vrot.lane.b32.xlu0 %v106_v59, %s5752_s23  ;;  %4388 = vmatpush1.bf16.msra.mxu0 %v4387_v60 }
  0x2d   :  { %4389 = vmatprep.subr.bf16.mxu0 %v5749_v5 }
  0x30   :  { %4391 = vmatpush1.bf16.msra.mxu0 %v4390_v63 }
  0x31   :  { %4392 = vmatprep.subr.bf16.mxu0 %v5749_v5 }
  0x34   :  { %4394 = vmatpush1.bf16.msra.mxu0 %v4393_v3  ;;  %v3913_v3 = vld [vmem:[%s7515_s1 + $0xf0] sm:$0xff] }
  0x35   :  { %4395 = vmatprep.subr.bf16.mxu0 %v5749_v5 }
  0x38   :  { %4397 = vmatpush1.bf16.msra.mxu0 %v4396_v7  ;;  %v4405_v7 = vpack.c.bf16 %v3914_v6, %v3913_v3 }
  0x39   :  { %4398 = vmatprep.subr.bf16.mxu0 %v5749_v5 }
  0x3a   :  { %4406 = vmatpush1.bf16.msra.mxu1 %v4405_v7 }
  0x3b   :  { %4407 = vmatprep.subr.bf16.mxu1 %v5749_v5 }
  0x3c   :  { %4400 = vmatpush1.bf16.msra.mxu0 %v4399_v10  ;;  %v4408_v10 = vpack.c.bf16 %v3916_v9, %v3915_v8 }
  0x3e   :  { %4409 = vmatpush1.bf16.msra.mxu1 %v4408_v10 }
  0x3f   :  { %4410 = vmatprep.subr.bf16.mxu1 %v5749_v5 }
  0x82   :  { %v5256_v11 = vpop.permute.xlu0 %5255 }
  0x83   :  { %v5261_v12 = vpop.permute.xlu1 %5260  ;;  %v5257_v14 = vunpack.i.l.bf16 %v5256_v11  ;;  %v5258_v21 = vunpack.i.h.bf16 %v5256_v11  ;;  %v3917_v11 = vld [vmem:[%s7515_s1 + $0x110] sm:$0xff] }
  0x84   :  { %v5262_v19 = vunpack.i.l.bf16 %v5261_v12  ;;  %v5263_v28 = vunpack.i.h.bf16 %v5261_v12  ;;  %v3918_v12 = vld [vmem:[%s7515_s1 + $0x118] sm:$0xff] }
  0x85   :  { %v199_v23 = vsel %vm45_vm0, %v91_v16, %v5257_v14  ;;  %v200_v33 = vsel %vm45_vm0, %v92_v25, %v5258_v21  ;;  %v3919_v14 = vld [vmem:[%s7515_s1 + $0x120] sm:$0xff]  ;;  %v3924_v21 = vld [vmem:[%s7515_s1 + $0x148] sm:$0xff] }
  0x86   :  { %v172_v15 = vpop.permute.xlu0 %171  ;;  %v204_v30 = vsel %vm203_vm2, %v199_v23, %v5262_v19  ;;  %v205_v38 = vsel %vm203_vm2, %v200_v33, %v5263_v28  ;;  %v3925_v23 = vld [vmem:[%s7515_s1 + $0x150] sm:$0xff]  ;;  %v3932_v33 = vld [vmem:[%s7515_s1 + $0x188] sm:$0xff] }
  0x87   :  { %v213_v17 = vsel %vm45_vm0, %v107_v13, %v172_v15  ;;  %v188_v18 = vpop.permute.xlu1 %187  ;;  %v4411_v13 = vpack.c.bf16 %v3918_v12, %v3917_v11  ;;  %v3920_v15 = vld [vmem:[%s7515_s1 + $0x128] sm:$0xff] }
  0x88   :  { %v217_v20 = vsel %vm203_vm2, %v213_v17, %v188_v18  ;;  %v4414_v16 = vpack.c.bf16 %v3920_v15, %v3919_v14  ;;  %v3921_v17 = vld [vmem:[%s7515_s1 + $0x130] sm:$0xff]  ;;  %v3922_v18 = vld [vmem:[%s7515_s1 + $0x138] sm:$0xff] }
  0x89   :  { %3907 = vmatprep.mubr.msk.f32.mxu0 %vm208_vm1, %v217_v20  ;;  %4412 = vmatpush1.bf16.msra.mxu1 %v4411_v13  ;;  %v4417_v19 = vpack.c.bf16 %v3922_v18, %v3921_v17  ;;  %v3923_v20 = vld [vmem:[%s7515_s1 + $0x140] sm:$0xff] }
  0x8a   :  { %v5266_v24 = vpop.permute.xlu0 %5265  ;;  %4413 = vmatprep.subr.bf16.mxu1 %v5749_v5 }
  0x8b   :  { %v5267_v26 = vunpack.i.l.bf16 %v5266_v24  ;;  %v174_v27 = vpop.permute.xlu1 %173  ;;  %v5268_v31 = vunpack.i.h.bf16 %v5266_v24  ;;  %v3926_v24 = vld [vmem:[%s7515_s1 + $0x158] sm:$0xff] }
  0x8c   :  { %v214_v29 = vsel %vm45_vm0, %v108_v22, %v174_v27  ;;  %v4420_v22 = vpack.c.bf16 %v3924_v21, %v3923_v20  ;;  %v4423_v25 = vpack.c.bf16 %v3926_v24, %v3925_v23  ;;  %v3928_v27 = vld [vmem:[%s7515_s1 + $0x168] sm:$0xff] }
  0x8d   :  { %v209_v32 = vsel %vm208_vm1, %v204_v30, %v5267_v26  ;;  %v210_v41 = vsel %vm208_vm1, %v205_v38, %v5268_v31  ;;  %4415 = vmatpush1.bf16.msra.mxu1 %v4414_v16  ;;  %v3927_v26 = vld [vmem:[%s7515_s1 + $0x160] sm:$0xff]  ;;  %v3930_v30 = vld [vmem:[%s7515_s1 + $0x178] sm:$0xff] }
  0x8e   :  { %v190_v34 = vpop.permute.xlu0 %189  ;;  %304 = vmatmul.mubr.f32.vlgmr.msra.gmra.mrb[0].mxu0 %v209_v32  ;;  %4416 = vmatprep.subr.bf16.mxu1 %v5749_v5  ;;  %v4426_v28 = vpack.c.bf16 %v3928_v27, %v3927_v26  ;;  %v3931_v32 = vld [vmem:[%s7515_s1 + $0x180] sm:$0xff] }
  0x8f   :  { %v218_v35 = vsel %vm203_vm2, %v214_v29, %v190_v34  ;;  %v5271_v36 = vpop.permute.xlu1 %5270  ;;  %v3929_v29 = vld [vmem:[%s7515_s1 + $0x170] sm:$0xff]  ;;  %v4432_v34 = vpack.c.bf16 %v3932_v33, %v3931_v32 }
  0x90   :  { %v5272_v37 = vunpack.i.l.bf16 %v5271_v36  ;;  %3908 = vmatprep.mubr.msk.f32.mxu0 %vm208_vm1, %v218_v35  ;;  %v5273_v49 = vunpack.i.h.bf16 %v5271_v36  ;;  %v4429_v31 = vpack.c.bf16 %v3930_v30, %v3929_v29  ;;  %v3906_v35 = vld [vmem:[%s7516_s2] ss:$0 sm:$0xff] }
  0x91   :  { %4418 = vmatpush1.bf16.msra.mxu1 %v4417_v19 }
  0x92   :  { %v176_v42 = vpop.permute.xlu0 %175  ;;  %309 = vmatmul.mubr.f32.gmra.mrb[2].mxu0 %v210_v41  ;;  %v201_v44 = vsel %vm45_vm0, %v93_v39, %v5272_v37  ;;  %v202_v59 = vsel %vm45_vm0, %v94_v54, %v5273_v49  ;;  %4419 = vmatprep.subr.bf16.mxu1 %v5749_v5  ;;  %v3938_v54 = vld [vmem:[%s7515_s1 + $0x1b8] sm:$0xff] }
  0x93   :  { %v5276_v43 = vpop.permute.xlu1 %5275  ;;  %v215_v45 = vsel %vm45_vm0, %v109_v40, %v176_v42 }
  0x94   :  { %v5277_v46 = vunpack.i.l.bf16 %v5276_v43  ;;  %v5278_v55 = vunpack.i.h.bf16 %v5276_v43  ;;  %v3933_v43 = vld [vmem:[%s7515_s1 + $0x190] sm:$0xff] }
  0x95   :  { %4421 = vmatpush1.bf16.msra.mxu1 %v4420_v22 }
  0x96   :  { %v192_v47 = vpop.permute.xlu0 %191  ;;  %v206_v48 = vsel %vm203_vm2, %v201_v44, %v5277_v46  ;;  %v207_v62 = vsel %vm203_vm2, %v202_v59, %v5278_v55  ;;  %4422 = vmatprep.subr.bf16.mxu1 %v5749_v5  ;;  %v3934_v44 = vld [vmem:[%s7515_s1 + $0x198] sm:$0xff] }
  0x97   :  { %v219_v50 = vsel %vm203_vm2, %v215_v45, %v192_v47  ;;  %v160_v51 = vpop.permute.xlu1 %159  ;;  %v4435_v45 = vpack.c.bf16 %v3934_v44, %v3933_v43  ;;  %v3935_v47 = vld [vmem:[%s7515_s1 + $0x1a0] sm:$0xff] }
  0x98   :  { %3909 = vmatprep.mubr.msk.f32.mxu0 %vm208_vm1, %v219_v50  ;;  %v211_v52 = vsel %vm208_vm1, %v206_v48, %v160_v51  ;;  %v3936_v48 = vld [vmem:[%s7515_s1 + $0x1a8] sm:$0xff] }
  0x99   :  { %314 = vmatmul.mubr.f32.gmra.mrb[4].mxu0 %v211_v52  ;;  %4424 = vmatpush1.bf16.msra.mxu1 %v4423_v25  ;;  %v4438_v49 = vpack.c.bf16 %v3936_v48, %v3935_v47 }
  0x9a   :  { %v178_v56 = vpop.permute.xlu0 %177  ;;  %4425 = vmatprep.subr.bf16.mxu1 %v5749_v5 }
  0x9b   :  { %v216_v57 = vsel %vm45_vm0, %v110_v53, %v178_v56  ;;  %v194_v58 = vpop.permute.xlu1 %193  ;;  %v3937_v53 = vld [vmem:[%s7515_s1 + $0x1b0] sm:$0xff] }
  0x9c   :  { %v220_v60 = vsel %vm203_vm2, %v216_v57, %v194_v58  ;;  %v4441_v56 = vpack.c.bf16 %v3938_v54, %v3937_v53 }
  0x9d   :  { %3910 = vmatprep.mubr.msk.f32.mxu0 %vm208_vm1, %v220_v60  ;;  %4427 = vmatpush1.bf16.msra.mxu1 %v4426_v28 }
  0x9e   :  { %v162_v61 = vpop.permute.xlu0 %161  ;;  %4428 = vmatprep.subr.bf16.mxu1 %v5749_v5 }
  0x9f   :  { %v212_v63 = vsel %vm208_vm1, %v207_v62, %v162_v61 }
  0xa0   :  { %319 = vmatmul.mubr.f32.gmra.mrb[6].mxu0 %v212_v63 }
  0xa1   :  { %4430 = vmatpush1.bf16.msra.mxu1 %v4429_v31 }
  0xa2   :  { %4431 = vmatprep.subr.bf16.mxu1 %v5749_v5 }
  0xa5   :  { %4433 = vmatpush1.bf16.msra.mxu1 %v4432_v34 }
  0xa6   :  { %4434 = vmatprep.subr.bf16.mxu1 %v5749_v5 }
  0xa9   :  { %4436 = vmatpush1.bf16.msra.mxu1 %v4435_v45 }
  0xaa   :  { %4437 = vmatprep.subr.bf16.mxu1 %v5749_v5 }
  0xad   :  { %4439 = vmatpush1.bf16.msra.mxu1 %v4438_v49 }
  0xae   :  { %4440 = vmatprep.subr.bf16.mxu1 %v5749_v5 }
  0xb1   :  { %4442 = vmatpush1.bf16.msra.mxu1 %v4441_v56 }
 0x161   :  { %v305_v36 = vpop.f32.mrb[0].mxu0 }
 0x162   :  { %v306_v37 = vadd.f32 %v3906_v35, %v305_v36  ;;  %v307_v38 = vpop.f32.mrb[1].mxu0 }
 0x164   :  { %v324_v39 = vmax.f32 %v306_v37, 0.0 }
 0x165   :  { %v310_v40 = vpop.f32.mrb[2].mxu0 }
 0x166   :  { %359 = vst.msk [vmem:[#allocation2 + $0x8] sm:$0xff] %vm45_vm0, %v324_v39  ;;  %v311_v41 = vadd.f32 %v3906_v35, %v310_v40  ;;  %v312_v42 = vpop.f32.mrb[3].mxu0 }
 0x168   :  { %v325_v46 = vmax.f32 %v311_v41, 0.0 }
 0x16a   :  { %360 = vst.msk [vmem:[#allocation2 + $0x10] sm:$0xff] %vm45_vm0, %v325_v46 }
 0x16c   :  { %v315_v50 = vpop.f32.mrb[4].mxu0 }
 0x16d   :  { %v316_v51 = vadd.f32 %v3906_v35, %v315_v50  ;;  %v317_v52 = vpop.f32.mrb[5].mxu0  ;;  %v367_v58 = vld [vmem:[#allocation2 + $0x6] sm:$0xff] }
 0x16e   :  { %v371_v3 = vld [vmem:[#allocation2 + $0x7] sm:$0xff] }
 0x16f   :  { %v326_v55 = vmax.f32 %v316_v51, 0.0  ;;  %v375_v9 = vld [vmem:[#allocation2 + $0x8] sm:$0xff] }
 0x171   :  { %361 = vst.msk [vmem:[#allocation2 + $0x28] sm:$0xff] %vm45_vm0, %v326_v55  ;;  %v383_v57 = vld [vmem:[#allocation2 + $0xa] sm:$0xff]  ;;  %v384_v8 = vld [vmem:[#allocation2 + $0x12] sm:$0xff] }
 0x172   :  { %v368_v59 = vld [vmem:[#allocation2 + $0xe] sm:$0xff]  ;;  %443 = vrot.lane.b32.xlu0 %v383_v57, %s5750_s14 }
 0x173   :  { %v5279_v60 = vpack.i.bf16 %v368_v59, %v367_v58  ;;  %v320_v61 = vpop.f32.mrb[6].mxu0  ;;  %v372_v62 = vld [vmem:[#allocation2 + $0xf] sm:$0xff] }
 0x174   :  { %v321_v63 = vadd.f32 %v3906_v35, %v320_v61  ;;  %v322_v0 = vpop.f32.mrb[7].mxu0  ;;  %v387_v1 = vld [vmem:[#allocation2 + $0xb] sm:$0xff]  ;;  %v5284_v6 = vpack.i.bf16 %v372_v62, %v371_v3  ;;  %v388_v12 = vld [vmem:[#allocation2 + $0x13] sm:$0xff] }
 0x175   :  { %5280 = vrot.lane.b32.xlu1 %v5279_v60, %s5750_s14  ;;  %v376_v7 = vld [vmem:[#allocation2 + $0x10] sm:$0xff]  ;;  %v363_v35 = vld [vmem:[#allocation2 + $0x5] sm:$0xff] }
 0x176   :  { %v327_v4 = vmax.f32 %v321_v63, 0.0  ;;  %459 = vrot.lane.b32.xlu0 %v387_v1, %s5751_s15  ;;  %v5289_v10 = vpack.i.bf16 %v376_v7, %v375_v9  ;;  %v379_v26 = vld [vmem:[#allocation2 + $0x9] sm:$0xff]  ;;  %v380_v42 = vld [vmem:[#allocation2 + $0x11] sm:$0xff] }
 0x177   :  { %v364_v47 = vld [vmem:[#allocation2 + $0xd] sm:$0xff] }
 0x178   :  { %362 = vst.msk [vmem:[#allocation2 + $0x30] sm:$0xff] %vm45_vm0, %v327_v4  ;;  %v377_v11 = vld [vmem:[#allocation2 + $0x28] sm:$0xff] }
 0x179   :  { %5285 = vrot.lane.b32.xlu1 %v5284_v6, %s5751_s15  ;;  %v369_v13 = vld [vmem:[#allocation2 + $0x26] sm:$0xff] }
 0x17a   :  { %445 = vrot.lane.b32.xlu0 %v384_v8, %s5750_s14  ;;  %v373_v18 = vld [vmem:[#allocation2 + $0x27] sm:$0xff] }
 0x17b   :  { %v365_v58 = vld [vmem:[#allocation2 + $0x25] sm:$0xff] }
 0x17d   :  { %5290 = vrot.lane.b32.xlu1 %v5289_v10, %s5752_s23 }
 0x17e   :  { %431 = vrot.lane.b32.xlu0 %v377_v11, %s5752_s23 }
 0x17f   :  { %v370_v14 = vld [vmem:[#allocation2 + $0x2e] sm:$0xff] }
 0x180   :  { %v5294_v15 = vpack.i.bf16 %v370_v14, %v369_v13  ;;  %v374_v16 = vld [vmem:[#allocation2 + $0x2f] sm:$0xff] }
 0x181   :  { %461 = vrot.lane.b32.xlu1 %v388_v12, %s5751_s15  ;;  %v385_v17 = vld [vmem:[#allocation2 + $0x2a] sm:$0xff]  ;;  %v5299_v19 = vpack.i.bf16 %v374_v16, %v373_v18  ;;  %v390_v21 = vld [vmem:[#allocation2 + $0x33] sm:$0xff] }
 0x182   :  { %5295 = vrot.lane.b32.xlu0 %v5294_v15, %s5750_s14  ;;  %v389_v20 = vld [vmem:[#allocation2 + $0x2b] sm:$0xff]  ;;  %v3940_v15 = vld [vmem:[%s7516_s2 + $0x1] ss:$0 sm:$0xff]  ;;  %s6185_s2 = smov 0  }
 0x183   :  { %v386_v22 = vld [vmem:[#allocation2 + $0x32] sm:$0xff]  ;;  %v381_v56 = vld [vmem:[#allocation2 + $0x29] sm:$0xff] }
 0x184   :  { %v378_v23 = vld [vmem:[#allocation2 + $0x30] sm:$0xff] }
 0x185   :  { %447 = vrot.lane.b32.xlu1 %v385_v17, %s5750_s14  ;;  %v382_v4 = vld [vmem:[#allocation2 + $0x31] sm:$0xff] }
 0x186   :  { %5300 = vrot.lane.b32.xlu0 %v5299_v19, %s5751_s15  ;;  %v366_v10 = vld [vmem:[#allocation2 + $0x2d] sm:$0xff] }
 0x189   :  { %463 = vrot.lane.b32.xlu1 %v389_v20, %s5751_s15 }
 0x18a   :  { %465 = vrot.lane.b32.xlu0 %v390_v21, %s5751_s15 }
 0x18d   :  { %449 = vrot.lane.b32.xlu1 %v386_v22, %s5750_s14 }
 0x191   :  { %433 = vrot.lane.b32.xlu1 %v378_v23, %s5752_s23 }
 0x1e4   :  { %v444_v24 = vpop.permute.xlu0 %443 }
 0x1e5   :  { %v483_v27 = vsel %vm45_vm0, %v379_v26, %v444_v24 }
 0x1e7   :  { %v5281_v25 = vpop.permute.xlu1 %5280 }
 0x1e8   :  { %v460_v28 = vpop.permute.xlu0 %459  ;;  %v5282_v31 = vunpack.i.l.bf16 %v5281_v25  ;;  %v5283_v36 = vunpack.i.h.bf16 %v5281_v25 }
 0x1e9   :  { %v487_v29 = vsel %vm203_vm2, %v483_v27, %v460_v28 }
 0x1ea   :  { %3941 = vmatprep.mubr.msk.f32.mxu1 %vm208_vm1, %v487_v29  ;;  %v471_v38 = vsel %vm45_vm0, %v363_v35, %v5282_v31  ;;  %v472_v49 = vsel %vm45_vm0, %v364_v47, %v5283_v36 }
 0x1eb   :  { %v5286_v30 = vpop.permute.xlu1 %5285 }
 0x1ec   :  { %v5287_v32 = vunpack.i.l.bf16 %v5286_v30  ;;  %v446_v33 = vpop.permute.xlu0 %445  ;;  %v5288_v39 = vunpack.i.h.bf16 %v5286_v30 }
 0x1ed   :  { %v484_v45 = vsel %vm45_vm0, %v380_v42, %v446_v33 }
 0x1ee   :  { %v475_v41 = vsel %vm203_vm2, %v471_v38, %v5287_v32  ;;  %v476_v51 = vsel %vm203_vm2, %v472_v49, %v5288_v39 }
 0x1ef   :  { %v5291_v34 = vpop.permute.xlu1 %5290 }
 0x1f0   :  { %v5292_v37 = vunpack.i.l.bf16 %v5291_v34  ;;  %v432_v40 = vpop.permute.xlu0 %431  ;;  %v5293_v43 = vunpack.i.h.bf16 %v5291_v34 }
 0x1f2   :  { %v479_v44 = vsel %vm208_vm1, %v475_v41, %v5292_v37  ;;  %v480_v52 = vsel %vm208_vm1, %v476_v51, %v5293_v43 }
 0x1f3   :  { %v462_v46 = vpop.permute.xlu1 %461  ;;  %574 = vmatmul.mubr.f32.vlgmr.msra.gmra.mrb[0].mxu1 %v479_v44 }
 0x1f4   :  { %v488_v48 = vsel %vm203_vm2, %v484_v45, %v462_v46  ;;  %v5296_v50 = vpop.permute.xlu0 %5295 }
 0x1f5   :  { %3942 = vmatprep.mubr.msk.f32.mxu1 %vm208_vm1, %v488_v48  ;;  %v5297_v53 = vunpack.i.l.bf16 %v5296_v50  ;;  %v5298_v1 = vunpack.i.h.bf16 %v5296_v50 }
 0x1f7   :  { %v448_v54 = vpop.permute.xlu1 %447  ;;  %579 = vmatmul.mubr.f32.gmra.mrb[2].mxu1 %v480_v52  ;;  %v473_v61 = vsel %vm45_vm0, %v365_v58, %v5297_v53  ;;  %v474_v11 = vsel %vm45_vm0, %v366_v10, %v5298_v1 }
 0x1f8   :  { %v5301_v55 = vpop.permute.xlu0 %5300  ;;  %v485_v59 = vsel %vm45_vm0, %v381_v56, %v448_v54 }
 0x1f9   :  { %v5302_v57 = vunpack.i.l.bf16 %v5301_v55  ;;  %v5303_v3 = vunpack.i.h.bf16 %v5301_v55 }
 0x1fb   :  { %v464_v60 = vpop.permute.xlu1 %463  ;;  %v477_v63 = vsel %vm203_vm2, %v473_v61, %v5302_v57  ;;  %v478_v13 = vsel %vm203_vm2, %v474_v11, %v5303_v3 }
 0x1fc   :  { %v489_v62 = vsel %vm203_vm2, %v485_v59, %v464_v60  ;;  %v481_v0 = vsel %vm208_vm1, %v477_v63, %v432_v40  ;;  %v466_v7 = vpop.permute.xlu0 %465 }
 0x1fd   :  { %3943 = vmatprep.mubr.msk.f32.mxu1 %vm208_vm1, %v489_v62 }
 0x1fe   :  { %584 = vmatmul.mubr.f32.gmra.mrb[4].mxu1 %v481_v0 }
 0x1ff   :  { %v450_v6 = vpop.permute.xlu1 %449 }
 0x200   :  { %v486_v8 = vsel %vm45_vm0, %v382_v4, %v450_v6 }
 0x201   :  { %v490_v9 = vsel %vm203_vm2, %v486_v8, %v466_v7 }
 0x202   :  { %3944 = vmatprep.mubr.msk.f32.mxu1 %vm208_vm1, %v490_v9 }
 0x203   :  { %v434_v12 = vpop.permute.xlu1 %433 }
 0x204   :  { %v482_v14 = vsel %vm208_vm1, %v478_v13, %v434_v12 }
 0x205   :  { %589 = vmatmul.mubr.f32.gmra.mrb[6].mxu1 %v482_v14 }
 0x2c6   :  { %v575_v16 = vpop.f32.mrb[0].mxu1 }
 0x2c7   :  { %v576_v17 = vadd.f32 %v3940_v15, %v575_v16  ;;  %v577_v18 = vpop.f32.mrb[1].mxu1 }
 0x2c9   :  { %v6165_v19 = vmax.f32 %v576_v17, 0.0  }
 0x2ca   :  { %v580_v20 = vpop.f32.mrb[2].mxu1 }
 0x2cb   :  { %v581_v21 = vadd.f32 %v3940_v15, %v580_v20  ;;  %v582_v22 = vpop.f32.mrb[3].mxu1  ;;  %v7531_v35 = vmov %v6165_v19 }
 0x2cd   :  { %v6167_v23 = vmax.f32 %v581_v21, 0.0  }
 0x2cf   :  { %v7530_v34 = vmov %v6167_v23 }
 0x2d1   :  { %v585_v24 = vpop.f32.mrb[4].mxu1 }
 0x2d2   :  { %v586_v25 = vadd.f32 %v3940_v15, %v585_v24  ;;  %v587_v26 = vpop.f32.mrb[5].mxu1 }
 0x2d4   :  { %v6169_v27 = vmax.f32 %v586_v25, 0.0  }
 0x2d6   :  { %v7529_v33 = vmov %v6169_v27 }
 0x2d8   :  { %v590_v28 = vpop.f32.mrb[6].mxu1 }
 0x2d9   :  { %v591_v29 = vadd.f32 %v3940_v15, %v590_v28  ;;  %v592_v30 = vpop.f32.mrb[7].mxu1 }
 0x2db   :  { %v6171_v31 = vmax.f32 %v591_v29, 0.0  }
 0x2dd   :  { %v7528_v32 = vmov %v6171_v31 }
 0x2de LB: > { %642 = vst.msk [vmem:[#allocation2 + $0x28] sm:$0xff] %vm45_vm0, %v5634_v33  ;;  %643 = vst.msk [vmem:[#allocation2 + $0x30] sm:$0xff] %vm45_vm0, %v5630_v32  ;;  %v5753_v36 = vmov 0.0|0.0   ;;  %s608_s24 = smul.u32 224, %s5646_s2  ;;  %s5754_s28 = smov 32   ;;  %s5646_s2 = sphi %s6185_s2, %s603_s2   ;;  %v5642_v35 = vphi %v7531_v35, %v7539_v35   ;;  %v5638_v34 = vphi %v7530_v34, %v7538_v34   ;;  %v5634_v33 = vphi %v7529_v33, %v7537_v33   ;;  %v5630_v32 = vphi %v7528_v32, %v7536_v32  }
 0x2df   : > { %640 = vst.msk [vmem:[#allocation2 + $0x8] sm:$0xff] %vm45_vm0, %v5642_v35  ;;  %641 = vst.msk [vmem:[#allocation2 + $0x10] sm:$0xff] %vm45_vm0, %v5638_v34  ;;  %4443 = vmatprep.subr.bf16.mxu0 %v5753_v36  ;;  %4815 = vmatprep.subr.bf16.mxu1 %v5753_v36  ;;  %s5755_s29 = smov 64   ;;  %s5756_s30 = smov 96  }
 0x2e0   : > { %s6204_s27 = scalar_lea.vmem %s7517_s3, %s608_s24  ;;  %s638_s18 = scalar_lea.vmem %s7518_s4, %s5646_s2 }
 0x2e1   : > { %v610_v37 = vld [vmem:[%s6204_s27] sm:$0xff]  ;;  %v611_v38 = vld [vmem:[%s6204_s27 + $0x8] sm:$0xff]  ;;  %v612_v39 = vld [vmem:[%s6204_s27 + $0x10] sm:$0xff]  ;;  %s603_s2 = sadd.s32 1, %s5646_s2  }
 0x2e2   : > { %v4444_v40 = vpack.c.bf16 %v611_v38, %v610_v37  ;;  %v613_v41 = vld [vmem:[%s6204_s27 + $0x18] sm:$0xff]  ;;  %v614_v42 = vld [vmem:[%s6204_s27 + $0x20] sm:$0xff]  ;;  %v615_v50 = vld [vmem:[%s6204_s27 + $0x28] sm:$0xff]  ;;  %p600_p0 = scmp.ge.s32.totalorder %s603_s2, 12  }
 0x2e3   : > { %v4447_v46 = vpack.c.bf16 %v613_v41, %v612_v39  ;;  %v4450_v53 = vpack.c.bf16 %v615_v50, %v614_v42  ;;  %v616_v54 = vld [vmem:[%s6204_s27 + $0x30] sm:$0xff]  ;;  %v617_v55 = vld [vmem:[%s6204_s27 + $0x38] sm:$0xff]  ;;  %v618_v0 = vld [vmem:[%s6204_s27 + $0x40] sm:$0xff]  ;;  %s6341_s19 = smov (%p600_p0), 0  }
 0x2e4   : > { %4445 = vmatpush1.bf16.msra.mxu0 %v4444_v40  ;;  %4829 = vmatpush1.bf16.msra.mxu1 %v4444_v40  ;;  %v4453_v62 = vpack.c.bf16 %v617_v55, %v616_v54  ;;  %v619_v1 = vld [vmem:[%s6204_s27 + $0x48] sm:$0xff]  ;;  %v620_v6 = vld [vmem:[%s6204_s27 + $0x50] sm:$0xff]  ;;  %v621_v7 = vld [vmem:[%s6204_s27 + $0x58] sm:$0xff] }
 0x2e5   : > { %v666_v43 = vld [vmem:[#allocation2 + $0x2a] sm:$0xff]  ;;  %4446 = vmatprep.subr.bf16.mxu0 %v5753_v36  ;;  %4816 = vmatprep.subr.bf16.mxu1 %v5753_v36  ;;  %v4456_v4 = vpack.c.bf16 %v619_v1, %v618_v0  ;;  %v667_v8 = vld [vmem:[#allocation2 + $0x32] sm:$0xff]  ;;  %v4459_v12 = vpack.c.bf16 %v621_v7, %v620_v6  ;;  %v622_v13 = vld [vmem:[%s6204_s27 + $0x60] sm:$0xff] }
 0x2e6   : > { %v648_v44 = vld [vmem:[#allocation2 + $0x6] sm:$0xff]  ;;  %728 = vrot.lane.b32.xlu1 %v666_v43, %s5754_s28  ;;  %v649_v57 = vld [vmem:[#allocation2 + $0xe] sm:$0xff]  ;;  %v625_v24 = vld [vmem:[%s6204_s27 + $0x78] sm:$0xff] }
 0x2e7   : > { %v650_v45 = vld [vmem:[#allocation2 + $0x26] sm:$0xff]  ;;  %v651_v58 = vld [vmem:[#allocation2 + $0x2e] sm:$0xff]  ;;  %v629_v33 = vld [vmem:[%s6204_s27 + $0x98] sm:$0xff] }
 0x2e8   : > { %v5304_v47 = vpack.i.bf16 %v650_v45, %v648_v44  ;;  %v652_v48 = vld [vmem:[#allocation2 + $0x7] sm:$0xff]  ;;  %4448 = vmatpush1.bf16.msra.mxu0 %v4447_v46  ;;  %4830 = vmatpush1.bf16.msra.mxu1 %v4447_v46  ;;  %v5319_v63 = vpack.i.bf16 %v651_v58, %v649_v57  ;;  %v665_v9 = vld [vmem:[#allocation2 + $0x12] sm:$0xff] }
 0x2e9   : > { %v654_v49 = vld [vmem:[#allocation2 + $0x27] sm:$0xff]  ;;  %4449 = vmatprep.subr.bf16.mxu0 %v5753_v36  ;;  %4817 = vmatprep.subr.bf16.mxu1 %v5753_v36  ;;  %v653_v10 = vld [vmem:[#allocation2 + $0xf] sm:$0xff]  ;;  %v633_v40 = vld [vmem:[%s6204_s27 + $0xb8] sm:$0xff] }
 0x2ea   : > { %v5309_v51 = vpack.i.bf16 %v654_v49, %v652_v48  ;;  %5305 = vrot.lane.b32.xlu0 %v5304_v47, %s5754_s28  ;;  %v664_v52 = vld [vmem:[#allocation2 + $0xa] sm:$0xff]  ;;  %v669_v15 = vld [vmem:[#allocation2 + $0x13] sm:$0xff]  ;;  %v626_v28 = vld [vmem:[%s6204_s27 + $0x80] sm:$0xff] }
 0x2eb   : > { %v670_v56 = vld [vmem:[#allocation2 + $0x2b] sm:$0xff]  ;;  %v671_v25 = vld [vmem:[#allocation2 + $0x33] sm:$0xff]  ;;  %v630_v35 = vld [vmem:[%s6204_s27 + $0xa0] sm:$0xff] }
 0x2ec   : > { %5310 = vrot.lane.b32.xlu1 %v5309_v51, %s5755_s29  ;;  %v668_v59 = vld [vmem:[#allocation2 + $0xb] sm:$0xff]  ;;  %4451 = vmatpush1.bf16.msra.mxu0 %v4450_v53  ;;  %v634_v42 = vld [vmem:[%s6204_s27 + $0xc0] sm:$0xff]  ;;  %v637_v46 = vld [vmem:[%s6204_s27 + $0xd8] sm:$0xff] }
 0x2ed   : > { %v656_v60 = vld [vmem:[#allocation2 + $0x8] sm:$0xff]  ;;  %4831 = vmatpush1.bf16.msra.mxu1 %v4450_v53  ;;  %4452 = vmatprep.subr.bf16.mxu0 %v5753_v36  ;;  %v657_v16 = vld [vmem:[#allocation2 + $0x10] sm:$0xff] }
 0x2ee   : > { %724 = vrot.lane.b32.xlu0 %v664_v52, %s5754_s28  ;;  %v658_v61 = vld [vmem:[#allocation2 + $0x28] sm:$0xff]  ;;  %4818 = vmatprep.subr.bf16.mxu1 %v5753_v36  ;;  %v659_v17 = vld [vmem:[#allocation2 + $0x30] sm:$0xff] }
 0x2ef   : > { %v5314_v3 = vpack.i.bf16 %v658_v61, %v656_v60  ;;  %v655_v11 = vld [vmem:[#allocation2 + $0x2f] sm:$0xff]  ;;  %v5329_v21 = vpack.i.bf16 %v659_v17, %v657_v16  ;;  %v646_v61 = vld [vmem:[#allocation2 + $0x25] sm:$0xff] }
 0x2f0   : > { %744 = vrot.lane.b32.xlu1 %v670_v56, %s5755_s29  ;;  %4454 = vmatpush1.bf16.msra.mxu0 %v4453_v62  ;;  %v623_v14 = vld [vmem:[%s6204_s27 + $0x68] sm:$0xff]  ;;  %v5324_v18 = vpack.i.bf16 %v655_v11, %v653_v10  ;;  %v624_v22 = vld [vmem:[%s6204_s27 + $0x70] sm:$0xff] }
 0x2f1   : > { %4832 = vmatpush1.bf16.msra.mxu1 %v4453_v62  ;;  %4455 = vmatprep.subr.bf16.mxu0 %v5753_v36  ;;  %v4462_v20 = vpack.c.bf16 %v623_v14, %v622_v13  ;;  %v4465_v26 = vpack.c.bf16 %v625_v24, %v624_v22  ;;  %v627_v29 = vld [vmem:[%s6204_s27 + $0x88] sm:$0xff]  ;;  %v628_v32 = vld [vmem:[%s6204_s27 + $0x90] sm:$0xff] }
 0x2f2   : > { %740 = vrot.lane.b32.xlu0 %v668_v59, %s5755_s29  ;;  %4819 = vmatprep.subr.bf16.mxu1 %v5753_v36  ;;  %v4468_v30 = vpack.c.bf16 %v627_v29, %v626_v28  ;;  %v4471_v34 = vpack.c.bf16 %v629_v33, %v628_v32  ;;  %v631_v37 = vld [vmem:[%s6204_s27 + $0xa8] sm:$0xff]  ;;  %v632_v39 = vld [vmem:[%s6204_s27 + $0xb0] sm:$0xff] }
 0x2f3   : > { %v4474_v38 = vpack.c.bf16 %v631_v37, %v630_v35  ;;  %v4477_v41 = vpack.c.bf16 %v633_v40, %v632_v39  ;;  %v635_v43 = vld [vmem:[%s6204_s27 + $0xc8] sm:$0xff]  ;;  %v636_v45 = vld [vmem:[%s6204_s27 + $0xd0] sm:$0xff] }
 0x2f4   : > { %5320 = vrot.lane.b32.xlu1 %v5319_v63, %s5754_s28  ;;  %4457 = vmatpush1.bf16.msra.mxu0 %v4456_v4  ;;  %v4480_v44 = vpack.c.bf16 %v635_v43, %v634_v42  ;;  %v4483_v47 = vpack.c.bf16 %v637_v46, %v636_v45  ;;  %v662_v51 = vld [vmem:[#allocation2 + $0x29] sm:$0xff]  ;;  %v661_v10 = vld [vmem:[#allocation2 + $0x11] sm:$0xff] }
 0x2f5   : > { %4833 = vmatpush1.bf16.msra.mxu1 %v4456_v4  ;;  %4458 = vmatprep.subr.bf16.mxu0 %v5753_v36  ;;  %v660_v53 = vld [vmem:[#allocation2 + $0x9] sm:$0xff] }
 0x2f6   : > { %5315 = vrot.lane.b32.xlu0 %v5314_v3, %s5756_s30  ;;  %4820 = vmatprep.subr.bf16.mxu1 %v5753_v36  ;;  %v645_v22 = vld [vmem:[#allocation2 + $0xd] sm:$0xff] }
 0x2f7   : > { %v647_v24 = vld [vmem:[#allocation2 + $0x2d] sm:$0xff] }
 0x2f8   : > { %730 = vrot.lane.b32.xlu1 %v667_v8, %s5754_s28  ;;  %4460 = vmatpush1.bf16.msra.mxu0 %v4459_v12 }
 0x2f9   : > { %4834 = vmatpush1.bf16.msra.mxu1 %v4459_v12  ;;  %4461 = vmatprep.subr.bf16.mxu0 %v5753_v36 }
 0x2fa   : > { %726 = vrot.lane.b32.xlu0 %v665_v9, %s5754_s28  ;;  %4821 = vmatprep.subr.bf16.mxu1 %v5753_v36 }
 0x2fc   : > { %742 = vrot.lane.b32.xlu1 %v669_v15, %s5755_s29  ;;  %4463 = vmatpush1.bf16.msra.mxu0 %v4462_v20 }
 0x2fd   : > { %4835 = vmatpush1.bf16.msra.mxu1 %v4462_v20  ;;  %4464 = vmatprep.subr.bf16.mxu0 %v5753_v36 }
 0x2fe   : > { %5325 = vrot.lane.b32.xlu0 %v5324_v18, %s5755_s29  ;;  %4822 = vmatprep.subr.bf16.mxu1 %v5753_v36 }
 0x300   : > { %5330 = vrot.lane.b32.xlu1 %v5329_v21, %s5756_s30  ;;  %4466 = vmatpush1.bf16.msra.mxu0 %v4465_v26 }
 0x301   : > { %4836 = vmatpush1.bf16.msra.mxu1 %v4465_v26  ;;  %4467 = vmatprep.subr.bf16.mxu0 %v5753_v36  ;;  %v663_v26 = vld [vmem:[#allocation2 + $0x31] sm:$0xff] }
 0x302   : > { %746 = vrot.lane.b32.xlu0 %v671_v25, %s5755_s29  ;;  %4823 = vmatprep.subr.bf16.mxu1 %v5753_v36 }
 0x304   : > { %4469 = vmatpush1.bf16.msra.mxu0 %v4468_v30 }
 0x305   : > { %4837 = vmatpush1.bf16.msra.mxu1 %v4468_v30  ;;  %4470 = vmatprep.subr.bf16.mxu0 %v5753_v36 }
 0x306   : > { %4824 = vmatprep.subr.bf16.mxu1 %v5753_v36 }
 0x308   : > { %4472 = vmatpush1.bf16.msra.mxu0 %v4471_v34 }
 0x309   : > { %4838 = vmatpush1.bf16.msra.mxu1 %v4471_v34  ;;  %4473 = vmatprep.subr.bf16.mxu0 %v5753_v36 }
 0x30a   : > { %4825 = vmatprep.subr.bf16.mxu1 %v5753_v36 }
 0x30c   : > { %4475 = vmatpush1.bf16.msra.mxu0 %v4474_v38 }
 0x30d   : > { %4839 = vmatpush1.bf16.msra.mxu1 %v4474_v38  ;;  %4476 = vmatprep.subr.bf16.mxu0 %v5753_v36 }
 0x30e   : > { %4826 = vmatprep.subr.bf16.mxu1 %v5753_v36 }
 0x310   : > { %4478 = vmatpush1.bf16.msra.mxu0 %v4477_v41 }
 0x311   : > { %4840 = vmatpush1.bf16.msra.mxu1 %v4477_v41  ;;  %4479 = vmatprep.subr.bf16.mxu0 %v5753_v36 }
 0x312   : > { %4827 = vmatprep.subr.bf16.mxu1 %v5753_v36 }
 0x314   : > { %4481 = vmatpush1.bf16.msra.mxu0 %v4480_v44 }
 0x315   : > { %4841 = vmatpush1.bf16.msra.mxu1 %v4480_v44  ;;  %4482 = vmatprep.subr.bf16.mxu0 %v5753_v36  ;;  %v3945_v44 = vld [vmem:[%s638_s18] ss:$0 sm:$0xff] }
 0x316   : > { %4828 = vmatprep.subr.bf16.mxu1 %v5753_v36  ;;  %v644_v36 = vld [vmem:[#allocation2 + $0x5] sm:$0xff] }
 0x318   : > { %4484 = vmatpush1.bf16.msra.mxu0 %v4483_v47 }
 0x319   : > { %4842 = vmatpush1.bf16.msra.mxu1 %v4483_v47 }
 0x358   : > { %v729_v48 = vpop.permute.xlu1 %728 }
 0x359   : > { %v766_v54 = vsel %vm45_vm0, %v662_v51, %v729_v48 }
 0x35c   : > { %v5306_v49 = vpop.permute.xlu0 %5305 }
 0x35d   : > { %v5308_v56 = vunpack.i.h.bf16 %v5306_v49  ;;  %v5307_v57 = vunpack.i.l.bf16 %v5306_v49 }
 0x35e   : > { %v5311_v50 = vpop.permute.xlu1 %5310 }
 0x35f   : > { %v5313_v63 = vunpack.i.h.bf16 %v5311_v50  ;;  %v5312_v0 = vunpack.i.l.bf16 %v5311_v50  ;;  %v752_v3 = vsel %vm45_vm0, %v644_v36, %v5307_v57  ;;  %v754_v4 = vsel %vm45_vm0, %v646_v61, %v5308_v56 }
 0x360   : > { %v725_v52 = vpop.permute.xlu0 %724 }
 0x361   : > { %v764_v59 = vsel %vm45_vm0, %v660_v53, %v725_v52  ;;  %v756_v11 = vsel %vm203_vm2, %v752_v3, %v5312_v0  ;;  %v758_v12 = vsel %vm203_vm2, %v754_v4, %v5313_v63 }
 0x362   : > { %v745_v55 = vpop.permute.xlu1 %744 }
 0x363   : > { %v770_v58 = vsel %vm203_vm2, %v766_v54, %v745_v55 }
 0x364   : > { %v741_v60 = vpop.permute.xlu0 %740  ;;  %3948 = vmatprep.mubr.msk.f32.mxu1 %vm208_vm1, %v770_v58 }
 0x365   : > { %v768_v62 = vsel %vm203_vm2, %v764_v59, %v741_v60 }
 0x366   : > { %3946 = vmatprep.mubr.msk.f32.mxu0 %vm208_vm1, %v768_v62  ;;  %v5321_v1 = vpop.permute.xlu1 %5320 }
 0x367   : > { %v5323_v17 = vunpack.i.h.bf16 %v5321_v1  ;;  %v5322_v18 = vunpack.i.l.bf16 %v5321_v1 }
 0x368   : > { %v5316_v6 = vpop.permute.xlu0 %5315 }
 0x369   : > { %v5318_v7 = vunpack.i.h.bf16 %v5316_v6  ;;  %v5317_v8 = vunpack.i.l.bf16 %v5316_v6  ;;  %v753_v32 = vsel %vm45_vm0, %v645_v22, %v5322_v18  ;;  %v755_v33 = vsel %vm45_vm0, %v647_v24, %v5323_v17 }
 0x36a   : > { %v731_v9 = vpop.permute.xlu1 %730 }
 0x36b   : > { %v760_v13 = vsel %vm208_vm1, %v756_v11, %v5317_v8  ;;  %v762_v14 = vsel %vm208_vm1, %v758_v12, %v5318_v7  ;;  %v767_v39 = vsel %vm45_vm0, %v663_v26, %v731_v9 }
 0x36c   : > { %v727_v15 = vpop.permute.xlu0 %726  ;;  %855 = vmatmul.mubr.f32.vlgmr.msra.gmra.mrb[0].mxu0 %v760_v13  ;;  %865 = vmatmul.mubr.f32.vlgmr.msra.gmra.mrb[0].mxu1 %v762_v14 }
 0x36d   : > { %v765_v16 = vsel %vm45_vm0, %v661_v10, %v727_v15 }
 0x36e   : > { %v743_v20 = vpop.permute.xlu1 %742 }
 0x36f   : > { %v769_v21 = vsel %vm203_vm2, %v765_v16, %v743_v20 }
 0x370   : > { %v5326_v25 = vpop.permute.xlu0 %5325  ;;  %3947 = vmatprep.mubr.msk.f32.mxu0 %vm208_vm1, %v769_v21 }
 0x371   : > { %v5328_v28 = vunpack.i.h.bf16 %v5326_v25  ;;  %v5327_v29 = vunpack.i.l.bf16 %v5326_v25 }
 0x372   : > { %v5331_v30 = vpop.permute.xlu1 %5330 }
 0x373   : > { %v5333_v34 = vunpack.i.h.bf16 %v5331_v30  ;;  %v5332_v35 = vunpack.i.l.bf16 %v5331_v30  ;;  %v757_v37 = vsel %vm203_vm2, %v753_v32, %v5327_v29  ;;  %v759_v38 = vsel %vm203_vm2, %v755_v33, %v5328_v28 }
 0x374   : > { %v747_v40 = vpop.permute.xlu0 %746 }
 0x375   : > { %v771_v41 = vsel %vm203_vm2, %v767_v39, %v747_v40  ;;  %v761_v42 = vsel %vm208_vm1, %v757_v37, %v5332_v35  ;;  %v763_v43 = vsel %vm208_vm1, %v759_v38, %v5333_v34 }
 0x376   : > { %860 = vmatmul.mubr.f32.gmra.mrb[2].mxu0 %v761_v42  ;;  %3949 = vmatprep.mubr.msk.f32.mxu1 %vm208_vm1, %v771_v41 }
 0x377   : > { %870 = vmatmul.mubr.f32.gmra.mrb[2].mxu1 %v763_v43 }
 0x43f   : > { %v856_v45 = vpop.f32.mrb[0].mxu0  ;;  %v866_v46 = vpop.f32.mrb[0].mxu1 }
 0x440   : > { %v857_v47 = vadd.f32 %v3945_v44, %v856_v45  ;;  %v867_v48 = vadd.f32 %v3945_v44, %v866_v46  ;;  %v858_v49 = vpop.f32.mrb[1].mxu0  ;;  %v868_v50 = vpop.f32.mrb[1].mxu1 }
 0x442   : > { %v6302_v35 = vmax.f32 %v857_v47, 0.0   ;;  %v6304_v33 = vmax.f32 %v867_v48, 0.0  }
 0x444   : > { %v7532_v51 = vmov %v6302_v35  ;;  %v7533_v52 = vmov %v6304_v33 }
 0x445   : > { %v7537_v33 = vmov %v7533_v52  ;;  %v7539_v35 = vmov %v7532_v51  ;;  %v879_v36 = vadd.f32 (%p600_p0), %v7532_v51, %v6165_v19   ;;  %v881_v62 = vadd.f32 (%p600_p0), %v7533_v52, %v6169_v27  }
 0x449   : > { %v861_v53 = vpop.f32.mrb[2].mxu0 }
 0x44a   : > { %v862_v54 = vadd.f32 %v3945_v44, %v861_v53  ;;  %v863_v55 = vpop.f32.mrb[3].mxu0  ;;  %v871_v56 = vpop.f32.mrb[2].mxu1  ;;  %602 = sbr.rel (!%p600_p0) target bundleno = 734 (0x2de), region = 143 }
 0x44b   : > { %v872_v57 = vadd.f32 %v3945_v44, %v871_v56  ;;  %v873_v58 = vpop.f32.mrb[3].mxu1 }
 0x44c   : > { %v6306_v34 = vmax.f32 %v862_v54, 0.0  }
 0x44d   : > { %v6308_v32 = vmax.f32 %v872_v57, 0.0  }
 0x44e   : > { %v7534_v59 = vmov %v6306_v34 }
 0x44f   : > { %v7535_v60 = vmov %v6308_v32  ;;  %v7538_v34 = vmov %v7534_v59  ;;  %v880_v61 = vadd.f32 (%p600_p0), %v7534_v59, %v6167_v23  }
 0x450   : > { %v7536_v32 = vmov %v7535_v60  ;;  %v882_v63 = vadd.f32 (%p600_p0), %v7535_v60, %v6171_v31  }
 0x451 LB: > { %927 = vst.msk [vmem:[#allocation2 + $0x28] sm:$0xff] %vm45_vm0, %v5654_v62  ;;  %928 = vst.msk [vmem:[#allocation2 + $0x30] sm:$0xff] %vm45_vm0, %v5650_v63  ;;  %v5757_v0 = vmov 0.0|0.0   ;;  %s893_s0 = smul.u32 224, %s5666_s19  ;;  %s5758_s1 = smov 32   ;;  %s5666_s19 = sphi %s6341_s19, %s888_s19   ;;  %v5662_v36 = vphi %v879_v36, %v7543_v36   ;;  %v5658_v61 = vphi %v880_v61, %v7542_v61   ;;  %v5654_v62 = vphi %v881_v62, %v7541_v62   ;;  %v5650_v63 = vphi %v882_v63, %v7540_v63  }
 0x452   : > { %925 = vst.msk [vmem:[#allocation2 + $0x8] sm:$0xff] %vm45_vm0, %v5662_v36  ;;  %926 = vst.msk [vmem:[#allocation2 + $0x10] sm:$0xff] %vm45_vm0, %v5658_v61  ;;  %4485 = vmatprep.subr.bf16.mxu0 %v5757_v0  ;;  %4843 = vmatprep.subr.bf16.mxu1 %v5757_v0  ;;  %s5759_s23 = smov 64   ;;  %s5760_s2 = smov 96  }
 0x453   : > { %s6360_s22 = scalar_lea.vmem %s7517_s3, %s893_s0  ;;  %s923_s26 = scalar_lea.vmem %s7518_s4, %s5666_s19 }
 0x454   : > { %v895_v1 = vld [vmem:[%s6360_s22] sm:$0xff]  ;;  %v896_v3 = vld [vmem:[%s6360_s22 + $0x8] sm:$0xff]  ;;  %v897_v4 = vld [vmem:[%s6360_s22 + $0x10] sm:$0xff]  ;;  %s888_s19 = sadd.s32 1, %s5666_s19  }
 0x455   : > { %v4486_v6 = vpack.c.bf16 %v896_v3, %v895_v1  ;;  %v898_v7 = vld [vmem:[%s6360_s22 + $0x18] sm:$0xff]  ;;  %v899_v8 = vld [vmem:[%s6360_s22 + $0x20] sm:$0xff]  ;;  %v900_v16 = vld [vmem:[%s6360_s22 + $0x28] sm:$0xff]  ;;  %p885_p1 = scmp.ge.s32.totalorder %s888_s19, 12  }
 0x456   : > { %v4489_v12 = vpack.c.bf16 %v898_v7, %v897_v4  ;;  %v4492_v20 = vpack.c.bf16 %v900_v16, %v899_v8  ;;  %v901_v21 = vld [vmem:[%s6360_s22 + $0x30] sm:$0xff]  ;;  %v902_v22 = vld [vmem:[%s6360_s22 + $0x38] sm:$0xff]  ;;  %v903_v34 = vld [vmem:[%s6360_s22 + $0x40] sm:$0xff]  ;;  %s6493_s3 = smov (%p885_p1), 0  }
 0x457   : > { %4487 = vmatpush1.bf16.msra.mxu0 %v4486_v6  ;;  %4857 = vmatpush1.bf16.msra.mxu1 %v4486_v6  ;;  %v4495_v32 = vpack.c.bf16 %v902_v22, %v901_v21  ;;  %v904_v35 = vld [vmem:[%s6360_s22 + $0x48] sm:$0xff]  ;;  %v905_v39 = vld [vmem:[%s6360_s22 + $0x50] sm:$0xff]  ;;  %v906_v40 = vld [vmem:[%s6360_s22 + $0x58] sm:$0xff] }
 0x458   : > { %v951_v9 = vld [vmem:[#allocation2 + $0x2a] sm:$0xff]  ;;  %4488 = vmatprep.subr.bf16.mxu0 %v5757_v0  ;;  %4844 = vmatprep.subr.bf16.mxu1 %v5757_v0  ;;  %v4498_v38 = vpack.c.bf16 %v904_v35, %v903_v34  ;;  %v952_v41 = vld [vmem:[#allocation2 + $0x32] sm:$0xff]  ;;  %v4501_v45 = vpack.c.bf16 %v906_v40, %v905_v39  ;;  %v907_v46 = vld [vmem:[%s6360_s22 + $0x60] sm:$0xff] }
 0x459   : > { %v933_v10 = vld [vmem:[#allocation2 + $0x6] sm:$0xff]  ;;  %1013 = vrot.lane.b32.xlu1 %v951_v9, %s5758_s1  ;;  %v934_v25 = vld [vmem:[#allocation2 + $0xe] sm:$0xff]  ;;  %v910_v57 = vld [vmem:[%s6360_s22 + $0x78] sm:$0xff] }
 0x45a   : > { %v935_v11 = vld [vmem:[#allocation2 + $0x26] sm:$0xff]  ;;  %v936_v26 = vld [vmem:[#allocation2 + $0x2e] sm:$0xff]  ;;  %v914_v3 = vld [vmem:[%s6360_s22 + $0x98] sm:$0xff] }
 0x45b   : > { %v5334_v13 = vpack.i.bf16 %v935_v11, %v933_v10  ;;  %v937_v14 = vld [vmem:[#allocation2 + $0x7] sm:$0xff]  ;;  %4490 = vmatpush1.bf16.msra.mxu0 %v4489_v12  ;;  %4858 = vmatpush1.bf16.msra.mxu1 %v4489_v12  ;;  %v5349_v33 = vpack.i.bf16 %v936_v26, %v934_v25  ;;  %v950_v42 = vld [vmem:[#allocation2 + $0x12] sm:$0xff] }
 0x45c   : > { %v939_v15 = vld [vmem:[#allocation2 + $0x27] sm:$0xff]  ;;  %4491 = vmatprep.subr.bf16.mxu0 %v5757_v0  ;;  %4845 = vmatprep.subr.bf16.mxu1 %v5757_v0  ;;  %v938_v43 = vld [vmem:[#allocation2 + $0xf] sm:$0xff]  ;;  %v918_v10 = vld [vmem:[%s6360_s22 + $0xb8] sm:$0xff] }
 0x45d   : > { %v5339_v17 = vpack.i.bf16 %v939_v15, %v937_v14  ;;  %5335 = vrot.lane.b32.xlu0 %v5334_v13, %s5758_s1  ;;  %v949_v18 = vld [vmem:[#allocation2 + $0xa] sm:$0xff]  ;;  %v954_v48 = vld [vmem:[#allocation2 + $0x13] sm:$0xff]  ;;  %v911_v61 = vld [vmem:[%s6360_s22 + $0x80] sm:$0xff] }
 0x45e   : > { %v955_v24 = vld [vmem:[#allocation2 + $0x2b] sm:$0xff]  ;;  %v956_v58 = vld [vmem:[#allocation2 + $0x33] sm:$0xff]  ;;  %v915_v6 = vld [vmem:[%s6360_s22 + $0xa0] sm:$0xff] }
 0x45f   : > { %5340 = vrot.lane.b32.xlu1 %v5339_v17, %s5759_s23  ;;  %v953_v28 = vld [vmem:[#allocation2 + $0xb] sm:$0xff]  ;;  %4493 = vmatpush1.bf16.msra.mxu0 %v4492_v20  ;;  %v919_v12 = vld [vmem:[%s6360_s22 + $0xc0] sm:$0xff]  ;;  %v922_v16 = vld [vmem:[%s6360_s22 + $0xd8] sm:$0xff] }
 0x460   : > { %v941_v29 = vld [vmem:[#allocation2 + $0x8] sm:$0xff]  ;;  %4859 = vmatpush1.bf16.msra.mxu1 %v4492_v20  ;;  %4494 = vmatprep.subr.bf16.mxu0 %v5757_v0  ;;  %v942_v49 = vld [vmem:[#allocation2 + $0x10] sm:$0xff] }
 0x461   : > { %1009 = vrot.lane.b32.xlu0 %v949_v18, %s5758_s1  ;;  %v943_v30 = vld [vmem:[#allocation2 + $0x28] sm:$0xff]  ;;  %4846 = vmatprep.subr.bf16.mxu1 %v5757_v0  ;;  %v944_v50 = vld [vmem:[#allocation2 + $0x30] sm:$0xff] }
 0x462   : > { %v5344_v37 = vpack.i.bf16 %v943_v30, %v941_v29  ;;  %v940_v44 = vld [vmem:[#allocation2 + $0x2f] sm:$0xff]  ;;  %v5359_v55 = vpack.i.bf16 %v944_v50, %v942_v49  ;;  %v931_v35 = vld [vmem:[#allocation2 + $0x25] sm:$0xff] }
 0x463   : > { %1029 = vrot.lane.b32.xlu1 %v955_v24, %s5759_s23  ;;  %4496 = vmatpush1.bf16.msra.mxu0 %v4495_v32  ;;  %v908_v47 = vld [vmem:[%s6360_s22 + $0x68] sm:$0xff]  ;;  %v5354_v53 = vpack.i.bf16 %v940_v44, %v938_v43  ;;  %v909_v56 = vld [vmem:[%s6360_s22 + $0x70] sm:$0xff] }
 0x464   : > { %4860 = vmatpush1.bf16.msra.mxu1 %v4495_v32  ;;  %4497 = vmatprep.subr.bf16.mxu0 %v5757_v0  ;;  %v4504_v54 = vpack.c.bf16 %v908_v47, %v907_v46  ;;  %v4507_v36 = vpack.c.bf16 %v910_v57, %v909_v56  ;;  %v912_v62 = vld [vmem:[%s6360_s22 + $0x88] sm:$0xff]  ;;  %v913_v1 = vld [vmem:[%s6360_s22 + $0x90] sm:$0xff] }
 0x465   : > { %1025 = vrot.lane.b32.xlu0 %v953_v28, %s5759_s23  ;;  %4847 = vmatprep.subr.bf16.mxu1 %v5757_v0  ;;  %v4510_v63 = vpack.c.bf16 %v912_v62, %v911_v61  ;;  %v4513_v4 = vpack.c.bf16 %v914_v3, %v913_v1  ;;  %v916_v7 = vld [vmem:[%s6360_s22 + $0xa8] sm:$0xff]  ;;  %v917_v9 = vld [vmem:[%s6360_s22 + $0xb0] sm:$0xff] }
 0x466   : > { %v4516_v8 = vpack.c.bf16 %v916_v7, %v915_v6  ;;  %v4519_v11 = vpack.c.bf16 %v918_v10, %v917_v9  ;;  %v920_v13 = vld [vmem:[%s6360_s22 + $0xc8] sm:$0xff]  ;;  %v921_v15 = vld [vmem:[%s6360_s22 + $0xd0] sm:$0xff] }
 0x467   : > { %5350 = vrot.lane.b32.xlu1 %v5349_v33, %s5758_s1  ;;  %4499 = vmatpush1.bf16.msra.mxu0 %v4498_v38  ;;  %v4522_v14 = vpack.c.bf16 %v920_v13, %v919_v12  ;;  %v4525_v17 = vpack.c.bf16 %v922_v16, %v921_v15  ;;  %v947_v22 = vld [vmem:[#allocation2 + $0x29] sm:$0xff]  ;;  %v946_v47 = vld [vmem:[#allocation2 + $0x11] sm:$0xff] }
 0x468   : > { %4861 = vmatpush1.bf16.msra.mxu1 %v4498_v38  ;;  %4500 = vmatprep.subr.bf16.mxu0 %v5757_v0  ;;  %v945_v25 = vld [vmem:[#allocation2 + $0x9] sm:$0xff]  ;;  %v948_v1 = vld [vmem:[#allocation2 + $0x31] sm:$0xff] }
 0x469   : > { %5345 = vrot.lane.b32.xlu0 %v5344_v37, %s5760_s2  ;;  %4848 = vmatprep.subr.bf16.mxu1 %v5757_v0  ;;  %v930_v61 = vld [vmem:[#allocation2 + $0xd] sm:$0xff] }
 0x46a   : > { %v932_v62 = vld [vmem:[#allocation2 + $0x2d] sm:$0xff] }
 0x46b   : > { %1015 = vrot.lane.b32.xlu1 %v952_v41, %s5758_s1  ;;  %4502 = vmatpush1.bf16.msra.mxu0 %v4501_v45 }
 0x46c   : > { %4862 = vmatpush1.bf16.msra.mxu1 %v4501_v45  ;;  %4503 = vmatprep.subr.bf16.mxu0 %v5757_v0 }
 0x46d   : > { %1011 = vrot.lane.b32.xlu0 %v950_v42, %s5758_s1  ;;  %4849 = vmatprep.subr.bf16.mxu1 %v5757_v0 }
 0x46f   : > { %1027 = vrot.lane.b32.xlu1 %v954_v48, %s5759_s23  ;;  %4505 = vmatpush1.bf16.msra.mxu0 %v4504_v54 }
 0x470   : > { %4863 = vmatpush1.bf16.msra.mxu1 %v4504_v54  ;;  %4506 = vmatprep.subr.bf16.mxu0 %v5757_v0 }
 0x471   : > { %5355 = vrot.lane.b32.xlu0 %v5354_v53, %s5759_s23  ;;  %4850 = vmatprep.subr.bf16.mxu1 %v5757_v0 }
 0x473   : > { %5360 = vrot.lane.b32.xlu1 %v5359_v55, %s5760_s2  ;;  %4508 = vmatpush1.bf16.msra.mxu0 %v4507_v36 }
 0x474   : > { %4864 = vmatpush1.bf16.msra.mxu1 %v4507_v36  ;;  %4509 = vmatprep.subr.bf16.mxu0 %v5757_v0 }
 0x475   : > { %1031 = vrot.lane.b32.xlu0 %v956_v58, %s5759_s23  ;;  %4851 = vmatprep.subr.bf16.mxu1 %v5757_v0 }
 0x477   : > { %4511 = vmatpush1.bf16.msra.mxu0 %v4510_v63 }
 0x478   : > { %4865 = vmatpush1.bf16.msra.mxu1 %v4510_v63  ;;  %4512 = vmatprep.subr.bf16.mxu0 %v5757_v0 }
 0x479   : > { %4852 = vmatprep.subr.bf16.mxu1 %v5757_v0 }
 0x47b   : > { %4514 = vmatpush1.bf16.msra.mxu0 %v4513_v4 }
 0x47c   : > { %4866 = vmatpush1.bf16.msra.mxu1 %v4513_v4  ;;  %4515 = vmatprep.subr.bf16.mxu0 %v5757_v0 }
 0x47d   : > { %4853 = vmatprep.subr.bf16.mxu1 %v5757_v0 }
 0x47f   : > { %4517 = vmatpush1.bf16.msra.mxu0 %v4516_v8 }
 0x480   : > { %4867 = vmatpush1.bf16.msra.mxu1 %v4516_v8  ;;  %4518 = vmatprep.subr.bf16.mxu0 %v5757_v0 }
 0x481   : > { %4854 = vmatprep.subr.bf16.mxu1 %v5757_v0 }
 0x483   : > { %4520 = vmatpush1.bf16.msra.mxu0 %v4519_v11 }
 0x484   : > { %4868 = vmatpush1.bf16.msra.mxu1 %v4519_v11  ;;  %4521 = vmatprep.subr.bf16.mxu0 %v5757_v0 }
 0x485   : > { %4855 = vmatprep.subr.bf16.mxu1 %v5757_v0 }
 0x487   : > { %4523 = vmatpush1.bf16.msra.mxu0 %v4522_v14 }
 0x488   : > { %4869 = vmatpush1.bf16.msra.mxu1 %v4522_v14  ;;  %4524 = vmatprep.subr.bf16.mxu0 %v5757_v0 }
 0x489   : > { %4856 = vmatprep.subr.bf16.mxu1 %v5757_v0  ;;  %v929_v0 = vld [vmem:[#allocation2 + $0x5] sm:$0xff] }
 0x48b   : > { %4526 = vmatpush1.bf16.msra.mxu0 %v4525_v17 }
 0x48c   : > { %4870 = vmatpush1.bf16.msra.mxu1 %v4525_v17 }
 0x4cb   : > { %v1014_v18 = vpop.permute.xlu1 %1013 }
 0x4cc   : > { %v1051_v26 = vsel %vm45_vm0, %v947_v22, %v1014_v18  ;;  %v3950_v18 = vld [vmem:[%s923_s26] ss:$0 sm:$0xff] }
 0x4cf   : > { %v5336_v20 = vpop.permute.xlu0 %5335 }
 0x4d0   : > { %v5338_v29 = vunpack.i.h.bf16 %v5336_v20  ;;  %v5337_v30 = vunpack.i.l.bf16 %v5336_v20 }
 0x4d1   : > { %v5341_v21 = vpop.permute.xlu1 %5340 }
 0x4d2   : > { %v5343_v38 = vunpack.i.h.bf16 %v5341_v21  ;;  %v5342_v39 = vunpack.i.l.bf16 %v5341_v21  ;;  %v1037_v41 = vsel %vm45_vm0, %v929_v0, %v5337_v30  ;;  %v1039_v42 = vsel %vm45_vm0, %v931_v35, %v5338_v29 }
 0x4d3   : > { %v1010_v24 = vpop.permute.xlu0 %1009 }
 0x4d4   : > { %v1049_v33 = vsel %vm45_vm0, %v945_v25, %v1010_v24  ;;  %v1041_v48 = vsel %vm203_vm2, %v1037_v41, %v5342_v39  ;;  %v1043_v49 = vsel %vm203_vm2, %v1039_v42, %v5343_v38 }
 0x4d5   : > { %v1030_v28 = vpop.permute.xlu1 %1029 }
 0x4d6   : > { %v1055_v32 = vsel %vm203_vm2, %v1051_v26, %v1030_v28 }
 0x4d7   : > { %v1026_v34 = vpop.permute.xlu0 %1025  ;;  %3953 = vmatprep.mubr.msk.f32.mxu1 %vm208_vm1, %v1055_v32 }
 0x4d8   : > { %v1053_v37 = vsel %vm203_vm2, %v1049_v33, %v1026_v34 }
 0x4d9   : > { %3951 = vmatprep.mubr.msk.f32.mxu0 %vm208_vm1, %v1053_v37  ;;  %v5351_v40 = vpop.permute.xlu1 %5350 }
 0x4da   : > { %v5353_v56 = vunpack.i.h.bf16 %v5351_v40  ;;  %v5352_v57 = vunpack.i.l.bf16 %v5351_v40 }
 0x4db   : > { %v5346_v43 = vpop.permute.xlu0 %5345 }
 0x4dc   : > { %v5348_v44 = vunpack.i.h.bf16 %v5346_v43  ;;  %v5347_v45 = vunpack.i.l.bf16 %v5346_v43  ;;  %v1038_v7 = vsel %vm45_vm0, %v930_v61, %v5352_v57  ;;  %v1040_v8 = vsel %vm45_vm0, %v932_v62, %v5353_v56 }
 0x4dd   : > { %v1016_v46 = vpop.permute.xlu1 %1015  ;;  %v7544_v43 = vmov (%p885_p1), %v6171_v31 }
 0x4de   : > { %v1045_v50 = vsel %vm208_vm1, %v1041_v48, %v5347_v45  ;;  %v1047_v53 = vsel %vm208_vm1, %v1043_v49, %v5348_v44  ;;  %v1052_v13 = vsel %vm45_vm0, %v948_v1, %v1016_v46  ;;  %v7545_v44 = vmov (%p885_p1), %v6169_v27 }
 0x4df   : > { %v1012_v54 = vpop.permute.xlu0 %1011  ;;  %1140 = vmatmul.mubr.f32.vlgmr.msra.gmra.mrb[0].mxu0 %v1045_v50  ;;  %1150 = vmatmul.mubr.f32.vlgmr.msra.gmra.mrb[0].mxu1 %v1047_v53  ;;  %v7546_v45 = vmov (%p885_p1), %v6167_v23 }
 0x4e0   : > { %v1050_v55 = vsel %vm45_vm0, %v946_v47, %v1012_v54 }
 0x4e1   : > { %v1028_v58 = vpop.permute.xlu1 %1027 }
 0x4e2   : > { %v1054_v36 = vsel %vm203_vm2, %v1050_v55, %v1028_v58 }
 0x4e3   : > { %v5356_v63 = vpop.permute.xlu0 %5355  ;;  %3952 = vmatprep.mubr.msk.f32.mxu0 %vm208_vm1, %v1054_v36 }
 0x4e4   : > { %v5358_v3 = vunpack.i.h.bf16 %v5356_v63  ;;  %v5357_v4 = vunpack.i.l.bf16 %v5356_v63 }
 0x4e5   : > { %v5361_v6 = vpop.permute.xlu1 %5360 }
 0x4e6   : > { %v5363_v9 = vunpack.i.h.bf16 %v5361_v6  ;;  %v5362_v10 = vunpack.i.l.bf16 %v5361_v6  ;;  %v1042_v11 = vsel %vm203_vm2, %v1038_v7, %v5357_v4  ;;  %v1044_v12 = vsel %vm203_vm2, %v1040_v8, %v5358_v3 }
 0x4e7   : > { %v1032_v14 = vpop.permute.xlu0 %1031 }
 0x4e8   : > { %v1056_v15 = vsel %vm203_vm2, %v1052_v13, %v1032_v14  ;;  %v1046_v16 = vsel %vm208_vm1, %v1042_v11, %v5362_v10  ;;  %v1048_v17 = vsel %vm208_vm1, %v1044_v12, %v5363_v9 }
 0x4e9   : > { %1145 = vmatmul.mubr.f32.gmra.mrb[2].mxu0 %v1046_v16  ;;  %3954 = vmatprep.mubr.msk.f32.mxu1 %vm208_vm1, %v1056_v15 }
 0x4ea   : > { %1155 = vmatmul.mubr.f32.gmra.mrb[2].mxu1 %v1048_v17 }
 0x5b2   : > { %v1141_v20 = vpop.f32.mrb[0].mxu0  ;;  %v1151_v21 = vpop.f32.mrb[0].mxu1 }
 0x5b3   : > { %v1142_v22 = vadd.f32 %v3950_v18, %v1141_v20  ;;  %v1152_v24 = vadd.f32 %v3950_v18, %v1151_v21  ;;  %v1143_v25 = vpop.f32.mrb[1].mxu0  ;;  %v1153_v26 = vpop.f32.mrb[1].mxu1 }
 0x5b5   : > { %v1160_v28 = vmax.f32 %v1142_v22, 0.0   ;;  %v1162_v29 = vmax.f32 %v1152_v24, 0.0  }
 0x5b7   : > { %v7541_v62 = vmov %v1162_v29  ;;  %v7543_v36 = vmov %v1160_v28  ;;  %v6470_v39 = vadd.f32 (%p885_p1), %v1160_v28, %v7532_v51  ;;  %v6476_v41 = vadd.f32 (%p885_p1), %v1162_v29, %v7533_v52 }
 0x5b8   :  { %v7547_v51 = vmov (%p885_p1), %v6165_v19 }
 0x5bc   : > { %v1146_v30 = vpop.f32.mrb[2].mxu0  ;;  %887 = sbr.rel (!%p885_p1) target bundleno = 1105 (0x451), region = 154 }
 0x5bd   : > { %v1147_v32 = vadd.f32 %v3950_v18, %v1146_v30  ;;  %v1148_v33 = vpop.f32.mrb[3].mxu0  ;;  %v1156_v34 = vpop.f32.mrb[2].mxu1 }
 0x5be   : > { %v1157_v0 = vadd.f32 %v3950_v18, %v1156_v34  ;;  %v1158_v35 = vpop.f32.mrb[3].mxu1 }
 0x5bf   : > { %v1161_v37 = vmax.f32 %v1147_v32, 0.0  }
 0x5c0   : > { %v1163_v38 = vmax.f32 %v1157_v0, 0.0  }
 0x5c1   : > { %v7542_v61 = vmov %v1161_v37  ;;  %v6473_v40 = vadd.f32 (%p885_p1), %v1161_v37, %v7534_v59 }
 0x5c2   : > { %v7540_v63 = vmov %v1163_v38  ;;  %v6479_v42 = vadd.f32 (%p885_p1), %v1163_v38, %v7535_v60 }
 0x5c3 LB: > { %1212 = vst.msk [vmem:[#allocation2 + $0x28] sm:$0xff] %vm45_vm0, %v5674_v44  ;;  %1213 = vst.msk [vmem:[#allocation2 + $0x30] sm:$0xff] %vm45_vm0, %v5670_v43  ;;  %v5761_v52 = vmov 0.0|0.0   ;;  %s1178_s4 = smul.u32 224, %s5686_s3  ;;  %s5762_s30 = smov 32   ;;  %s5686_s3 = sphi %s6493_s3, %s1173_s3   ;;  %v5682_v51 = vphi %v7547_v51, %v7555_v51   ;;  %v5678_v45 = vphi %v7546_v45, %v7554_v45   ;;  %v5674_v44 = vphi %v7545_v44, %v7553_v44   ;;  %v5670_v43 = vphi %v7544_v43, %v7552_v43  }
 0x5c4   : > { %1210 = vst.msk [vmem:[#allocation2 + $0x8] sm:$0xff] %vm45_vm0, %v5682_v51  ;;  %1211 = vst.msk [vmem:[#allocation2 + $0x10] sm:$0xff] %vm45_vm0, %v5678_v45  ;;  %4527 = vmatprep.subr.bf16.mxu0 %v5761_v52  ;;  %4871 = vmatprep.subr.bf16.mxu1 %v5761_v52  ;;  %s5763_s16 = smov 64   ;;  %s5764_s17 = smov 96  }
 0x5c5   : > { %s6512_s29 = scalar_lea.vmem %s7519_s5, %s1178_s4  ;;  %s1208_s0 = scalar_lea.vmem %s7520_s6, %s5686_s3 }
 0x5c6   : > { %v1180_v59 = vld [vmem:[%s6512_s29] sm:$0xff]  ;;  %v1181_v60 = vld [vmem:[%s6512_s29 + $0x8] sm:$0xff]  ;;  %v1182_v46 = vld [vmem:[%s6512_s29 + $0x10] sm:$0xff]  ;;  %s1173_s3 = sadd.s32 1, %s5686_s3  }
 0x5c7   : > { %v4528_v47 = vpack.c.bf16 %v1181_v60, %v1180_v59  ;;  %v1183_v48 = vld [vmem:[%s6512_s29 + $0x18] sm:$0xff]  ;;  %v1184_v49 = vld [vmem:[%s6512_s29 + $0x20] sm:$0xff]  ;;  %v1185_v36 = vld [vmem:[%s6512_s29 + $0x28] sm:$0xff]  ;;  %p1170_p2 = scmp.ge.s32.totalorder %s1173_s3, 12  }
 0x5c8   : > { %v4531_v55 = vpack.c.bf16 %v1183_v48, %v1182_v46  ;;  %v4534_v63 = vpack.c.bf16 %v1185_v36, %v1184_v49  ;;  %v1186_v1 = vld [vmem:[%s6512_s29 + $0x30] sm:$0xff]  ;;  %v1187_v3 = vld [vmem:[%s6512_s29 + $0x38] sm:$0xff]  ;;  %v1188_v13 = vld [vmem:[%s6512_s29 + $0x40] sm:$0xff]  ;;  %s6649_s20 = smov (%p1170_p2), 0  }
 0x5c9   : > { %4529 = vmatpush1.bf16.msra.mxu0 %v4528_v47  ;;  %4885 = vmatpush1.bf16.msra.mxu1 %v4528_v47  ;;  %v4537_v11 = vpack.c.bf16 %v1187_v3, %v1186_v1  ;;  %v1189_v14 = vld [vmem:[%s6512_s29 + $0x48] sm:$0xff]  ;;  %v1190_v17 = vld [vmem:[%s6512_s29 + $0x50] sm:$0xff]  ;;  %v1191_v18 = vld [vmem:[%s6512_s29 + $0x58] sm:$0xff] }
 0x5ca   : > { %v1236_v50 = vld [vmem:[#allocation2 + $0x2a] sm:$0xff]  ;;  %4530 = vmatprep.subr.bf16.mxu0 %v5761_v52  ;;  %4872 = vmatprep.subr.bf16.mxu1 %v5761_v52  ;;  %v4540_v16 = vpack.c.bf16 %v1189_v14, %v1188_v13  ;;  %v1237_v20 = vld [vmem:[#allocation2 + $0x32] sm:$0xff]  ;;  %v4543_v25 = vpack.c.bf16 %v1191_v18, %v1190_v17  ;;  %v1192_v26 = vld [vmem:[%s6512_s29 + $0x60] sm:$0xff] }
 0x5cb   : > { %v1218_v53 = vld [vmem:[#allocation2 + $0x6] sm:$0xff]  ;;  %1298 = vrot.lane.b32.xlu1 %v1236_v50, %s5762_s30  ;;  %v1219_v6 = vld [vmem:[#allocation2 + $0xe] sm:$0xff]  ;;  %v1195_v37 = vld [vmem:[%s6512_s29 + $0x78] sm:$0xff] }
 0x5cc   : > { %v1220_v54 = vld [vmem:[#allocation2 + $0x26] sm:$0xff]  ;;  %v1221_v7 = vld [vmem:[#allocation2 + $0x2e] sm:$0xff]  ;;  %v1199_v60 = vld [vmem:[%s6512_s29 + $0x98] sm:$0xff] }
 0x5cd   : > { %v5364_v56 = vpack.i.bf16 %v1220_v54, %v1218_v53  ;;  %v1222_v57 = vld [vmem:[#allocation2 + $0x7] sm:$0xff]  ;;  %4532 = vmatpush1.bf16.msra.mxu0 %v4531_v55  ;;  %4886 = vmatpush1.bf16.msra.mxu1 %v4531_v55  ;;  %v5379_v12 = vpack.i.bf16 %v1221_v7, %v1219_v6  ;;  %v1235_v21 = vld [vmem:[#allocation2 + $0x12] sm:$0xff] }
 0x5ce   : > { %v1224_v58 = vld [vmem:[#allocation2 + $0x27] sm:$0xff]  ;;  %4533 = vmatprep.subr.bf16.mxu0 %v5761_v52  ;;  %4873 = vmatprep.subr.bf16.mxu1 %v5761_v52  ;;  %v1223_v22 = vld [vmem:[#allocation2 + $0xf] sm:$0xff]  ;;  %v1203_v53 = vld [vmem:[%s6512_s29 + $0xb8] sm:$0xff] }
 0x5cf   : > { %v5369_v61 = vpack.i.bf16 %v1224_v58, %v1222_v57  ;;  %5365 = vrot.lane.b32.xlu0 %v5364_v56, %s5762_s30  ;;  %v1234_v62 = vld [vmem:[#allocation2 + $0xa] sm:$0xff]  ;;  %v1239_v29 = vld [vmem:[#allocation2 + $0x13] sm:$0xff]  ;;  %v1196_v44 = vld [vmem:[%s6512_s29 + $0x80] sm:$0xff] }
 0x5d0   : > { %v1240_v4 = vld [vmem:[#allocation2 + $0x2b] sm:$0xff]  ;;  %v1241_v38 = vld [vmem:[#allocation2 + $0x33] sm:$0xff]  ;;  %v1200_v47 = vld [vmem:[%s6512_s29 + $0xa0] sm:$0xff] }
 0x5d1   : > { %5370 = vrot.lane.b32.xlu1 %v5369_v61, %s5763_s16  ;;  %v1238_v8 = vld [vmem:[#allocation2 + $0xb] sm:$0xff]  ;;  %4535 = vmatpush1.bf16.msra.mxu0 %v4534_v63  ;;  %v1204_v55 = vld [vmem:[%s6512_s29 + $0xc0] sm:$0xff]  ;;  %v1207_v36 = vld [vmem:[%s6512_s29 + $0xd8] sm:$0xff] }
 0x5d2   : > { %v1226_v9 = vld [vmem:[#allocation2 + $0x8] sm:$0xff]  ;;  %4887 = vmatpush1.bf16.msra.mxu1 %v4534_v63  ;;  %4536 = vmatprep.subr.bf16.mxu0 %v5761_v52  ;;  %v1227_v30 = vld [vmem:[#allocation2 + $0x10] sm:$0xff] }
 0x5d3   : > { %1294 = vrot.lane.b32.xlu0 %v1234_v62, %s5762_s30  ;;  %v1228_v10 = vld [vmem:[#allocation2 + $0x28] sm:$0xff]  ;;  %4874 = vmatprep.subr.bf16.mxu1 %v5761_v52  ;;  %v1229_v32 = vld [vmem:[#allocation2 + $0x30] sm:$0xff] }
 0x5d4   : > { %v5374_v15 = vpack.i.bf16 %v1228_v10, %v1226_v9  ;;  %v1225_v24 = vld [vmem:[#allocation2 + $0x2f] sm:$0xff]  ;;  %v5389_v0 = vpack.i.bf16 %v1229_v32, %v1227_v30  ;;  %v1216_v14 = vld [vmem:[#allocation2 + $0x25] sm:$0xff] }
 0x5d5   : > { %1314 = vrot.lane.b32.xlu1 %v1240_v4, %s5763_s16  ;;  %4538 = vmatpush1.bf16.msra.mxu0 %v4537_v11  ;;  %v1193_v28 = vld [vmem:[%s6512_s29 + $0x68] sm:$0xff]  ;;  %v5384_v33 = vpack.i.bf16 %v1225_v24, %v1223_v22  ;;  %v1194_v35 = vld [vmem:[%s6512_s29 + $0x70] sm:$0xff] }
 0x5d6   : > { %4888 = vmatpush1.bf16.msra.mxu1 %v4537_v11  ;;  %4539 = vmatprep.subr.bf16.mxu0 %v5761_v52  ;;  %v4546_v34 = vpack.c.bf16 %v1193_v28, %v1192_v26  ;;  %v4549_v43 = vpack.c.bf16 %v1195_v37, %v1194_v35  ;;  %v1197_v45 = vld [vmem:[%s6512_s29 + $0x88] sm:$0xff]  ;;  %v1198_v59 = vld [vmem:[%s6512_s29 + $0x90] sm:$0xff] }
 0x5d7   : > { %1310 = vrot.lane.b32.xlu0 %v1238_v8, %s5763_s16  ;;  %4875 = vmatprep.subr.bf16.mxu1 %v5761_v52  ;;  %v4552_v51 = vpack.c.bf16 %v1197_v45, %v1196_v44  ;;  %v4555_v46 = vpack.c.bf16 %v1199_v60, %v1198_v59  ;;  %v1201_v48 = vld [vmem:[%s6512_s29 + $0xa8] sm:$0xff]  ;;  %v1202_v50 = vld [vmem:[%s6512_s29 + $0xb0] sm:$0xff] }
 0x5d8   : > { %v4558_v49 = vpack.c.bf16 %v1201_v48, %v1200_v47  ;;  %v4561_v54 = vpack.c.bf16 %v1203_v53, %v1202_v50  ;;  %v1205_v56 = vld [vmem:[%s6512_s29 + $0xc8] sm:$0xff]  ;;  %v1206_v58 = vld [vmem:[%s6512_s29 + $0xd0] sm:$0xff] }
 0x5d9   : > { %5380 = vrot.lane.b32.xlu1 %v5379_v12, %s5762_s30  ;;  %4541 = vmatpush1.bf16.msra.mxu0 %v4540_v16  ;;  %v4564_v57 = vpack.c.bf16 %v1205_v56, %v1204_v55  ;;  %v4567_v61 = vpack.c.bf16 %v1207_v36, %v1206_v58  ;;  %v1232_v3 = vld [vmem:[#allocation2 + $0x29] sm:$0xff]  ;;  %v1231_v28 = vld [vmem:[#allocation2 + $0x11] sm:$0xff] }
 0x5da   : > { %4889 = vmatpush1.bf16.msra.mxu1 %v4540_v16  ;;  %4542 = vmatprep.subr.bf16.mxu0 %v5761_v52  ;;  %v1230_v6 = vld [vmem:[#allocation2 + $0x9] sm:$0xff]  ;;  %v1233_v59 = vld [vmem:[#allocation2 + $0x31] sm:$0xff] }
 0x5db   : > { %5375 = vrot.lane.b32.xlu0 %v5374_v15, %s5764_s17  ;;  %4876 = vmatprep.subr.bf16.mxu1 %v5761_v52  ;;  %v1215_v44 = vld [vmem:[#allocation2 + $0xd] sm:$0xff] }
 0x5dc   : > { %v1217_v45 = vld [vmem:[#allocation2 + $0x2d] sm:$0xff] }
 0x5dd   : > { %1300 = vrot.lane.b32.xlu1 %v1237_v20, %s5762_s30  ;;  %4544 = vmatpush1.bf16.msra.mxu0 %v4543_v25 }
 0x5de   : > { %4890 = vmatpush1.bf16.msra.mxu1 %v4543_v25  ;;  %4545 = vmatprep.subr.bf16.mxu0 %v5761_v52 }
 0x5df   : > { %1296 = vrot.lane.b32.xlu0 %v1235_v21, %s5762_s30  ;;  %4877 = vmatprep.subr.bf16.mxu1 %v5761_v52 }
 0x5e1   : > { %1312 = vrot.lane.b32.xlu1 %v1239_v29, %s5763_s16  ;;  %4547 = vmatpush1.bf16.msra.mxu0 %v4546_v34 }
 0x5e2   : > { %4891 = vmatpush1.bf16.msra.mxu1 %v4546_v34  ;;  %4548 = vmatprep.subr.bf16.mxu0 %v5761_v52 }
 0x5e3   : > { %5385 = vrot.lane.b32.xlu0 %v5384_v33, %s5763_s16  ;;  %4878 = vmatprep.subr.bf16.mxu1 %v5761_v52 }
 0x5e5   : > { %5390 = vrot.lane.b32.xlu1 %v5389_v0, %s5764_s17  ;;  %4550 = vmatpush1.bf16.msra.mxu0 %v4549_v43 }
 0x5e6   : > { %4892 = vmatpush1.bf16.msra.mxu1 %v4549_v43  ;;  %4551 = vmatprep.subr.bf16.mxu0 %v5761_v52 }
 0x5e7   : > { %1316 = vrot.lane.b32.xlu0 %v1241_v38, %s5763_s16  ;;  %4879 = vmatprep.subr.bf16.mxu1 %v5761_v52 }
 0x5e9   : > { %4553 = vmatpush1.bf16.msra.mxu0 %v4552_v51 }
 0x5ea   : > { %4893 = vmatpush1.bf16.msra.mxu1 %v4552_v51  ;;  %4554 = vmatprep.subr.bf16.mxu0 %v5761_v52 }
 0x5eb   : > { %4880 = vmatprep.subr.bf16.mxu1 %v5761_v52 }
 0x5ed   : > { %4556 = vmatpush1.bf16.msra.mxu0 %v4555_v46 }
 0x5ee   : > { %4894 = vmatpush1.bf16.msra.mxu1 %v4555_v46  ;;  %4557 = vmatprep.subr.bf16.mxu0 %v5761_v52 }
 0x5ef   : > { %4881 = vmatprep.subr.bf16.mxu1 %v5761_v52 }
 0x5f1   : > { %4559 = vmatpush1.bf16.msra.mxu0 %v4558_v49 }
 0x5f2   : > { %4895 = vmatpush1.bf16.msra.mxu1 %v4558_v49  ;;  %4560 = vmatprep.subr.bf16.mxu0 %v5761_v52 }
 0x5f3   : > { %4882 = vmatprep.subr.bf16.mxu1 %v5761_v52 }
 0x5f5   : > { %4562 = vmatpush1.bf16.msra.mxu0 %v4561_v54 }
 0x5f6   : > { %4896 = vmatpush1.bf16.msra.mxu1 %v4561_v54  ;;  %4563 = vmatprep.subr.bf16.mxu0 %v5761_v52 }
 0x5f7   : > { %4883 = vmatprep.subr.bf16.mxu1 %v5761_v52 }
 0x5f9   : > { %4565 = vmatpush1.bf16.msra.mxu0 %v4564_v57 }
 0x5fa   : > { %4897 = vmatpush1.bf16.msra.mxu1 %v4564_v57  ;;  %4566 = vmatprep.subr.bf16.mxu0 %v5761_v52 }
 0x5fb   : > { %4884 = vmatprep.subr.bf16.mxu1 %v5761_v52  ;;  %v1214_v52 = vld [vmem:[#allocation2 + $0x5] sm:$0xff] }
 0x5fd   : > { %4568 = vmatpush1.bf16.msra.mxu0 %v4567_v61 }
 0x5fe   : > { %4898 = vmatpush1.bf16.msra.mxu1 %v4567_v61 }
 0x63d   : > { %v1299_v62 = vpop.permute.xlu1 %1298 }
 0x63e   : > { %v1336_v7 = vsel %vm45_vm0, %v1232_v3, %v1299_v62  ;;  %v3955_v62 = vld [vmem:[%s1208_s0] ss:$0 sm:$0xff] }
 0x641   : > { %v5366_v63 = vpop.permute.xlu0 %5365 }
 0x642   : > { %v5368_v9 = vunpack.i.h.bf16 %v5366_v63  ;;  %v5367_v10 = vunpack.i.l.bf16 %v5366_v63 }
 0x643   : > { %v5371_v1 = vpop.permute.xlu1 %5370 }
 0x644   : > { %v5373_v16 = vunpack.i.h.bf16 %v5371_v1  ;;  %v5372_v17 = vunpack.i.l.bf16 %v5371_v1  ;;  %v1322_v20 = vsel %vm45_vm0, %v1214_v52, %v5367_v10  ;;  %v1324_v21 = vsel %vm45_vm0, %v1216_v14, %v5368_v9 }
 0x645   : > { %v1295_v4 = vpop.permute.xlu0 %1294 }
 0x646   : > { %v1334_v12 = vsel %vm45_vm0, %v1230_v6, %v1295_v4  ;;  %v1326_v29 = vsel %vm203_vm2, %v1322_v20, %v5372_v17  ;;  %v1328_v30 = vsel %vm203_vm2, %v1324_v21, %v5373_v16 }
 0x647   : > { %v1315_v8 = vpop.permute.xlu1 %1314 }
 0x648   : > { %v1340_v11 = vsel %vm203_vm2, %v1336_v7, %v1315_v8 }
 0x649   : > { %v1311_v13 = vpop.permute.xlu0 %1310  ;;  %3958 = vmatprep.mubr.msk.f32.mxu1 %vm208_vm1, %v1340_v11 }
 0x64a   : > { %v1338_v15 = vsel %vm203_vm2, %v1334_v12, %v1311_v13 }
 0x64b   : > { %3956 = vmatprep.mubr.msk.f32.mxu0 %vm208_vm1, %v1338_v15  ;;  %v5381_v18 = vpop.permute.xlu1 %5380 }
 0x64c   : > { %v5383_v35 = vunpack.i.h.bf16 %v5381_v18  ;;  %v5382_v37 = vunpack.i.l.bf16 %v5381_v18 }
 0x64d   : > { %v5376_v22 = vpop.permute.xlu0 %5375 }
 0x64e   : > { %v5378_v24 = vunpack.i.h.bf16 %v5376_v22  ;;  %v5377_v25 = vunpack.i.l.bf16 %v5376_v22  ;;  %v1323_v48 = vsel %vm45_vm0, %v1215_v44, %v5382_v37  ;;  %v1325_v49 = vsel %vm45_vm0, %v1217_v45, %v5383_v35 }
 0x64f   : > { %v1301_v26 = vpop.permute.xlu1 %1300 }
 0x650   : > { %v1330_v32 = vsel %vm208_vm1, %v1326_v29, %v5377_v25  ;;  %v1332_v33 = vsel %vm208_vm1, %v1328_v30, %v5378_v24  ;;  %v1337_v56 = vsel %vm45_vm0, %v1233_v59, %v1301_v26 }
 0x651   : > { %v1297_v34 = vpop.permute.xlu0 %1296  ;;  %1425 = vmatmul.mubr.f32.vlgmr.msra.gmra.mrb[0].mxu0 %v1330_v32  ;;  %1435 = vmatmul.mubr.f32.vlgmr.msra.gmra.mrb[0].mxu1 %v1332_v33 }
 0x652   : > { %v1335_v0 = vsel %vm45_vm0, %v1231_v28, %v1297_v34 }
 0x653   : > { %v1313_v38 = vpop.permute.xlu1 %1312 }
 0x654   : > { %v1339_v43 = vsel %vm203_vm2, %v1335_v0, %v1313_v38 }
 0x655   : > { %v5386_v51 = vpop.permute.xlu0 %5385  ;;  %3957 = vmatprep.mubr.msk.f32.mxu0 %vm208_vm1, %v1339_v43 }
 0x656   : > { %v5388_v60 = vunpack.i.h.bf16 %v5386_v51  ;;  %v5387_v46 = vunpack.i.l.bf16 %v5386_v51 }
 0x657   : > { %v5391_v47 = vpop.permute.xlu1 %5390 }
 0x658   : > { %v5393_v50 = vunpack.i.h.bf16 %v5391_v47  ;;  %v5392_v53 = vunpack.i.l.bf16 %v5391_v47  ;;  %v1327_v54 = vsel %vm203_vm2, %v1323_v48, %v5387_v46  ;;  %v1329_v55 = vsel %vm203_vm2, %v1325_v49, %v5388_v60 }
 0x659   : > { %v1317_v57 = vpop.permute.xlu0 %1316 }
 0x65a   : > { %v1341_v58 = vsel %vm203_vm2, %v1337_v56, %v1317_v57  ;;  %v1331_v36 = vsel %vm208_vm1, %v1327_v54, %v5392_v53  ;;  %v1333_v61 = vsel %vm208_vm1, %v1329_v55, %v5393_v50 }
 0x65b   : > { %1430 = vmatmul.mubr.f32.gmra.mrb[2].mxu0 %v1331_v36  ;;  %3959 = vmatprep.mubr.msk.f32.mxu1 %vm208_vm1, %v1341_v58 }
 0x65c   : > { %1440 = vmatmul.mubr.f32.gmra.mrb[2].mxu1 %v1333_v61 }
 0x724   : > { %v1426_v63 = vpop.f32.mrb[0].mxu0  ;;  %v1436_v1 = vpop.f32.mrb[0].mxu1 }
 0x725   : > { %v1427_v3 = vadd.f32 %v3955_v62, %v1426_v63  ;;  %v1437_v4 = vadd.f32 %v3955_v62, %v1436_v1  ;;  %v1428_v6 = vpop.f32.mrb[1].mxu0  ;;  %v1438_v7 = vpop.f32.mrb[1].mxu1 }
 0x727   : > { %v6610_v51 = vmax.f32 %v1427_v3, 0.0   ;;  %v6612_v44 = vmax.f32 %v1437_v4, 0.0  }
 0x729   : > { %v7548_v8 = vmov %v6610_v51  ;;  %v7549_v9 = vmov %v6612_v44 }
 0x72a   : > { %v7553_v44 = vmov %v7549_v9  ;;  %v7555_v51 = vmov %v7548_v8  ;;  %v1449_v17 = vadd.f32 (%p1170_p2), %v7548_v8, %v6165_v19   ;;  %v1451_v20 = vadd.f32 (%p1170_p2), %v7549_v9, %v6169_v27  }
 0x72e   : > { %v1431_v10 = vpop.f32.mrb[2].mxu0 }
 0x72f   : > { %v1432_v11 = vadd.f32 %v3955_v62, %v1431_v10  ;;  %v1433_v12 = vpop.f32.mrb[3].mxu0  ;;  %v1441_v13 = vpop.f32.mrb[2].mxu1  ;;  %1172 = sbr.rel (!%p1170_p2) target bundleno = 1475 (0x5c3), region = 165 }
 0x730   : > { %v1442_v52 = vadd.f32 %v3955_v62, %v1441_v13  ;;  %v1443_v14 = vpop.f32.mrb[3].mxu1 }
 0x731   : > { %v6614_v45 = vmax.f32 %v1432_v11, 0.0  }
 0x732   : > { %v6616_v43 = vmax.f32 %v1442_v52, 0.0  }
 0x733   : > { %v7550_v15 = vmov %v6614_v45 }
 0x734   : > { %v7551_v16 = vmov %v6616_v43  ;;  %v7554_v45 = vmov %v7550_v15  ;;  %v1450_v18 = vadd.f32 (%p1170_p2), %v7550_v15, %v6167_v23  }
 0x735   : > { %v7552_v43 = vmov %v7551_v16  ;;  %v1452_v21 = vadd.f32 (%p1170_p2), %v7551_v16, %v6171_v31  }
 0x736 LB: > { %1497 = vst.msk [vmem:[#allocation2 + $0x28] sm:$0xff] %vm45_vm0, %v5694_v20  ;;  %1498 = vst.msk [vmem:[#allocation2 + $0x30] sm:$0xff] %vm45_vm0, %v5690_v21  ;;  %v5765_v22 = vmov 0.0|0.0   ;;  %s1463_s21 = smul.u32 224, %s5706_s20  ;;  %s5766_s2 = smov 32   ;;  %s5706_s20 = sphi %s6649_s20, %s1458_s20   ;;  %v5702_v17 = vphi %v1449_v17, %v7559_v17   ;;  %v5698_v18 = vphi %v1450_v18, %v7558_v18   ;;  %v5694_v20 = vphi %v1451_v20, %v7557_v20   ;;  %v5690_v21 = vphi %v1452_v21, %v7556_v21  }
 0x737   : > { %1495 = vst.msk [vmem:[#allocation2 + $0x8] sm:$0xff] %vm45_vm0, %v5702_v17  ;;  %1496 = vst.msk [vmem:[#allocation2 + $0x10] sm:$0xff] %vm45_vm0, %v5698_v18  ;;  %4569 = vmatprep.subr.bf16.mxu0 %v5765_v22  ;;  %4899 = vmatprep.subr.bf16.mxu1 %v5765_v22  ;;  %s5767_s24 = smov 64   ;;  %s5768_s25 = smov 96  }
 0x738   : > { %s6668_s23 = scalar_lea.vmem %s7519_s5, %s1463_s21  ;;  %s1493_s4 = scalar_lea.vmem %s7520_s6, %s5706_s20 }
 0x739   : > { %v1465_v24 = vld [vmem:[%s6668_s23] sm:$0xff]  ;;  %v1466_v25 = vld [vmem:[%s6668_s23 + $0x8] sm:$0xff]  ;;  %v1467_v26 = vld [vmem:[%s6668_s23 + $0x10] sm:$0xff]  ;;  %s1458_s20 = sadd.s32 1, %s5706_s20  }
 0x73a   : > { %v4570_v28 = vpack.c.bf16 %v1466_v25, %v1465_v24  ;;  %v1468_v29 = vld [vmem:[%s6668_s23 + $0x18] sm:$0xff]  ;;  %v1469_v30 = vld [vmem:[%s6668_s23 + $0x20] sm:$0xff]  ;;  %v1470_v43 = vld [vmem:[%s6668_s23 + $0x28] sm:$0xff]  ;;  %p1455_p3 = scmp.ge.s32.totalorder %s1458_s20, 12  }
 0x73b   : > { %v4573_v0 = vpack.c.bf16 %v1468_v29, %v1467_v26  ;;  %v4576_v51 = vpack.c.bf16 %v1470_v43, %v1469_v30  ;;  %v1471_v59 = vld [vmem:[%s6668_s23 + $0x30] sm:$0xff]  ;;  %v1472_v60 = vld [vmem:[%s6668_s23 + $0x38] sm:$0xff]  ;;  %v1473_v56 = vld [vmem:[%s6668_s23 + $0x40] sm:$0xff]  ;;  %s6801_s5 = smov (%p1455_p3), 0  }
 0x73c   : > { %4571 = vmatpush1.bf16.msra.mxu0 %v4570_v28  ;;  %4913 = vmatpush1.bf16.msra.mxu1 %v4570_v28  ;;  %v4579_v54 = vpack.c.bf16 %v1472_v60, %v1471_v59  ;;  %v1474_v57 = vld [vmem:[%s6668_s23 + $0x48] sm:$0xff]  ;;  %v1475_v61 = vld [vmem:[%s6668_s23 + $0x50] sm:$0xff]  ;;  %v1476_v62 = vld [vmem:[%s6668_s23 + $0x58] sm:$0xff] }
 0x73d   : > { %v1521_v32 = vld [vmem:[#allocation2 + $0x2a] sm:$0xff]  ;;  %4572 = vmatprep.subr.bf16.mxu0 %v5765_v22  ;;  %4900 = vmatprep.subr.bf16.mxu1 %v5765_v22  ;;  %v4582_v36 = vpack.c.bf16 %v1474_v57, %v1473_v56  ;;  %v1522_v63 = vld [vmem:[#allocation2 + $0x32] sm:$0xff]  ;;  %v4585_v6 = vpack.c.bf16 %v1476_v62, %v1475_v61  ;;  %v1477_v7 = vld [vmem:[%s6668_s23 + $0x60] sm:$0xff] }
 0x73e   : > { %v1503_v33 = vld [vmem:[#allocation2 + $0x6] sm:$0xff]  ;;  %1583 = vrot.lane.b32.xlu1 %v1521_v32, %s5766_s2  ;;  %v1504_v47 = vld [vmem:[#allocation2 + $0xe] sm:$0xff]  ;;  %v1480_v20 = vld [vmem:[%s6668_s23 + $0x78] sm:$0xff] }
 0x73f   : > { %v1505_v34 = vld [vmem:[#allocation2 + $0x26] sm:$0xff]  ;;  %v1506_v48 = vld [vmem:[#allocation2 + $0x2e] sm:$0xff]  ;;  %v1484_v30 = vld [vmem:[%s6668_s23 + $0x98] sm:$0xff] }
 0x740   : > { %v5394_v35 = vpack.i.bf16 %v1505_v34, %v1503_v33  ;;  %v1507_v37 = vld [vmem:[#allocation2 + $0x7] sm:$0xff]  ;;  %4574 = vmatpush1.bf16.msra.mxu0 %v4573_v0  ;;  %4914 = vmatpush1.bf16.msra.mxu1 %v4573_v0  ;;  %v5409_v55 = vpack.i.bf16 %v1506_v48, %v1504_v47  ;;  %v1520_v1 = vld [vmem:[#allocation2 + $0x12] sm:$0xff] }
 0x741   : > { %v1509_v38 = vld [vmem:[#allocation2 + $0x27] sm:$0xff]  ;;  %4575 = vmatprep.subr.bf16.mxu0 %v5765_v22  ;;  %4901 = vmatprep.subr.bf16.mxu1 %v5765_v22  ;;  %v1508_v3 = vld [vmem:[#allocation2 + $0xf] sm:$0xff]  ;;  %v1492_v59 = vld [vmem:[%s6668_s23 + $0xd8] sm:$0xff] }
 0x742   : > { %v5399_v44 = vpack.i.bf16 %v1509_v38, %v1507_v37  ;;  %5395 = vrot.lane.b32.xlu0 %v5394_v35, %s5766_s2  ;;  %v1519_v45 = vld [vmem:[#allocation2 + $0xa] sm:$0xff]  ;;  %v1524_v11 = vld [vmem:[#allocation2 + $0x13] sm:$0xff]  ;;  %v1481_v25 = vld [vmem:[%s6668_s23 + $0x80] sm:$0xff] }
 0x743   : > { %v1525_v46 = vld [vmem:[#allocation2 + $0x2b] sm:$0xff]  ;;  %v1526_v21 = vld [vmem:[#allocation2 + $0x33] sm:$0xff]  ;;  %v1485_v33 = vld [vmem:[%s6668_s23 + $0xa0] sm:$0xff] }
 0x744   : > { %5400 = vrot.lane.b32.xlu1 %v5399_v44, %s5767_s24  ;;  %v1523_v49 = vld [vmem:[#allocation2 + $0xb] sm:$0xff]  ;;  %4577 = vmatpush1.bf16.msra.mxu0 %v4576_v51  ;;  %v1488_v37 = vld [vmem:[%s6668_s23 + $0xb8] sm:$0xff]  ;;  %v1489_v43 = vld [vmem:[%s6668_s23 + $0xc0] sm:$0xff] }
 0x745   : > { %v1511_v50 = vld [vmem:[#allocation2 + $0x8] sm:$0xff]  ;;  %4915 = vmatpush1.bf16.msra.mxu1 %v4576_v51  ;;  %4578 = vmatprep.subr.bf16.mxu0 %v5765_v22  ;;  %v1512_v12 = vld [vmem:[#allocation2 + $0x10] sm:$0xff] }
 0x746   : > { %1579 = vrot.lane.b32.xlu0 %v1519_v45, %s5766_s2  ;;  %v1513_v53 = vld [vmem:[#allocation2 + $0x28] sm:$0xff]  ;;  %4902 = vmatprep.subr.bf16.mxu1 %v5765_v22  ;;  %v1514_v13 = vld [vmem:[#allocation2 + $0x30] sm:$0xff] }
 0x747   : > { %v5404_v58 = vpack.i.bf16 %v1513_v53, %v1511_v50  ;;  %v1510_v4 = vld [vmem:[#allocation2 + $0x2f] sm:$0xff]  ;;  %v5419_v17 = vpack.i.bf16 %v1514_v13, %v1512_v12  ;;  %v1501_v62 = vld [vmem:[#allocation2 + $0x25] sm:$0xff] }
 0x748   : > { %1599 = vrot.lane.b32.xlu1 %v1525_v46, %s5767_s24  ;;  %4580 = vmatpush1.bf16.msra.mxu0 %v4579_v54  ;;  %v1478_v10 = vld [vmem:[%s6668_s23 + $0x68] sm:$0xff]  ;;  %v5414_v52 = vpack.i.bf16 %v1510_v4, %v1508_v3  ;;  %v1479_v18 = vld [vmem:[%s6668_s23 + $0x70] sm:$0xff] }
 0x749   : > { %4916 = vmatpush1.bf16.msra.mxu1 %v4579_v54  ;;  %4581 = vmatprep.subr.bf16.mxu0 %v5765_v22  ;;  %v4588_v14 = vpack.c.bf16 %v1478_v10, %v1477_v7  ;;  %v4591_v24 = vpack.c.bf16 %v1480_v20, %v1479_v18  ;;  %v1482_v26 = vld [vmem:[%s6668_s23 + $0x88] sm:$0xff]  ;;  %v1483_v29 = vld [vmem:[%s6668_s23 + $0x90] sm:$0xff] }
 0x74a   : > { %1595 = vrot.lane.b32.xlu0 %v1523_v49, %s5767_s24  ;;  %4903 = vmatprep.subr.bf16.mxu1 %v5765_v22  ;;  %v4594_v28 = vpack.c.bf16 %v1482_v26, %v1481_v25  ;;  %v4597_v32 = vpack.c.bf16 %v1484_v30, %v1483_v29  ;;  %v1486_v34 = vld [vmem:[%s6668_s23 + $0xa8] sm:$0xff]  ;;  %v1487_v35 = vld [vmem:[%s6668_s23 + $0xb0] sm:$0xff] }
 0x74b   : > { %v4600_v0 = vpack.c.bf16 %v1486_v34, %v1485_v33  ;;  %v4603_v38 = vpack.c.bf16 %v1488_v37, %v1487_v35  ;;  %v1490_v44 = vld [vmem:[%s6668_s23 + $0xc8] sm:$0xff]  ;;  %v1491_v51 = vld [vmem:[%s6668_s23 + $0xd0] sm:$0xff] }
 0x74c   : > { %5410 = vrot.lane.b32.xlu1 %v5409_v55, %s5766_s2  ;;  %4583 = vmatpush1.bf16.msra.mxu0 %v4582_v36  ;;  %v4606_v45 = vpack.c.bf16 %v1490_v44, %v1489_v43  ;;  %v4609_v60 = vpack.c.bf16 %v1492_v59, %v1491_v51  ;;  %v1517_v49 = vld [vmem:[#allocation2 + $0x29] sm:$0xff]  ;;  %v1518_v34 = vld [vmem:[#allocation2 + $0x31] sm:$0xff] }
 0x74d   : > { %4917 = vmatpush1.bf16.msra.mxu1 %v4582_v36  ;;  %4584 = vmatprep.subr.bf16.mxu0 %v5765_v22  ;;  %v1515_v53 = vld [vmem:[#allocation2 + $0x9] sm:$0xff] }
 0x74e   : > { %5405 = vrot.lane.b32.xlu0 %v5404_v58, %s5768_s25  ;;  %4904 = vmatprep.subr.bf16.mxu1 %v5765_v22  ;;  %v1500_v30 = vld [vmem:[#allocation2 + $0xd] sm:$0xff] }
 0x750   : > { %1585 = vrot.lane.b32.xlu1 %v1522_v63, %s5766_s2  ;;  %4586 = vmatpush1.bf16.msra.mxu0 %v4585_v6 }
 0x751   : > { %4918 = vmatpush1.bf16.msra.mxu1 %v4585_v6  ;;  %4587 = vmatprep.subr.bf16.mxu0 %v5765_v22 }
 0x752   : > { %1581 = vrot.lane.b32.xlu0 %v1520_v1, %s5766_s2  ;;  %4905 = vmatprep.subr.bf16.mxu1 %v5765_v22 }
 0x754   : > { %1597 = vrot.lane.b32.xlu1 %v1524_v11, %s5767_s24  ;;  %4589 = vmatpush1.bf16.msra.mxu0 %v4588_v14 }
 0x755   : > { %4919 = vmatpush1.bf16.msra.mxu1 %v4588_v14  ;;  %4590 = vmatprep.subr.bf16.mxu0 %v5765_v22 }
 0x756   : > { %5415 = vrot.lane.b32.xlu0 %v5414_v52, %s5767_s24  ;;  %4906 = vmatprep.subr.bf16.mxu1 %v5765_v22  ;;  %v1516_v52 = vld [vmem:[#allocation2 + $0x11] sm:$0xff] }
 0x758   : > { %5420 = vrot.lane.b32.xlu1 %v5419_v17, %s5768_s25  ;;  %4592 = vmatpush1.bf16.msra.mxu0 %v4591_v24 }
 0x759   : > { %4920 = vmatpush1.bf16.msra.mxu1 %v4591_v24  ;;  %4593 = vmatprep.subr.bf16.mxu0 %v5765_v22 }
 0x75a   : > { %1601 = vrot.lane.b32.xlu0 %v1526_v21, %s5767_s24  ;;  %4907 = vmatprep.subr.bf16.mxu1 %v5765_v22 }
 0x75c   : > { %4595 = vmatpush1.bf16.msra.mxu0 %v4594_v28 }
 0x75d   : > { %4921 = vmatpush1.bf16.msra.mxu1 %v4594_v28  ;;  %4596 = vmatprep.subr.bf16.mxu0 %v5765_v22 }
 0x75e   : > { %4908 = vmatprep.subr.bf16.mxu1 %v5765_v22 }
 0x760   : > { %4598 = vmatpush1.bf16.msra.mxu0 %v4597_v32 }
 0x761   : > { %4922 = vmatpush1.bf16.msra.mxu1 %v4597_v32  ;;  %4599 = vmatprep.subr.bf16.mxu0 %v5765_v22  ;;  %v1502_v32 = vld [vmem:[#allocation2 + $0x2d] sm:$0xff] }
 0x762   : > { %4909 = vmatprep.subr.bf16.mxu1 %v5765_v22 }
 0x764   : > { %4601 = vmatpush1.bf16.msra.mxu0 %v4600_v0 }
 0x765   : > { %4923 = vmatpush1.bf16.msra.mxu1 %v4600_v0  ;;  %4602 = vmatprep.subr.bf16.mxu0 %v5765_v22 }
 0x766   : > { %4910 = vmatprep.subr.bf16.mxu1 %v5765_v22 }
 0x768   : > { %4604 = vmatpush1.bf16.msra.mxu0 %v4603_v38 }
 0x769   : > { %4924 = vmatpush1.bf16.msra.mxu1 %v4603_v38  ;;  %4605 = vmatprep.subr.bf16.mxu0 %v5765_v22 }
 0x76a   : > { %4911 = vmatprep.subr.bf16.mxu1 %v5765_v22 }
 0x76c   : > { %4607 = vmatpush1.bf16.msra.mxu0 %v4606_v45 }
 0x76d   : > { %4925 = vmatpush1.bf16.msra.mxu1 %v4606_v45  ;;  %4608 = vmatprep.subr.bf16.mxu0 %v5765_v22 }
 0x76e   : > { %4912 = vmatprep.subr.bf16.mxu1 %v5765_v22  ;;  %v1499_v22 = vld [vmem:[#allocation2 + $0x5] sm:$0xff] }
 0x770   : > { %4610 = vmatpush1.bf16.msra.mxu0 %v4609_v60 }
 0x771   : > { %4926 = vmatpush1.bf16.msra.mxu1 %v4609_v60 }
 0x7b0   : > { %v1584_v46 = vpop.permute.xlu1 %1583 }
 0x7b1   : > { %v1621_v54 = vsel %vm45_vm0, %v1517_v49, %v1584_v46 }
 0x7b4   : > { %v5396_v47 = vpop.permute.xlu0 %5395 }
 0x7b5   : > { %v5398_v56 = vunpack.i.h.bf16 %v5396_v47  ;;  %v5397_v57 = vunpack.i.l.bf16 %v5396_v47 }
 0x7b6   : > { %v5401_v48 = vpop.permute.xlu1 %5400 }
 0x7b7   : > { %v5403_v1 = vunpack.i.h.bf16 %v5401_v48  ;;  %v5402_v3 = vunpack.i.l.bf16 %v5401_v48  ;;  %v1607_v6 = vsel %vm45_vm0, %v1499_v22, %v5397_v57  ;;  %v1609_v7 = vsel %vm45_vm0, %v1501_v62, %v5398_v56 }
 0x7b8   : > { %v1580_v50 = vpop.permute.xlu0 %1579 }
 0x7b9   : > { %v1619_v36 = vsel %vm45_vm0, %v1515_v53, %v1580_v50  ;;  %v1611_v14 = vsel %vm203_vm2, %v1607_v6, %v5402_v3  ;;  %v1613_v17 = vsel %vm203_vm2, %v1609_v7, %v5403_v1  ;;  %v3960_v50 = vld [vmem:[%s1493_s4] ss:$0 sm:$0xff] }
 0x7ba   : > { %v1600_v55 = vpop.permute.xlu1 %1599 }
 0x7bb   : > { %v1625_v58 = vsel %vm203_vm2, %v1621_v54, %v1600_v55 }
 0x7bc   : > { %v1596_v61 = vpop.permute.xlu0 %1595  ;;  %3963 = vmatprep.mubr.msk.f32.mxu1 %vm208_vm1, %v1625_v58 }
 0x7bd   : > { %v1623_v63 = vsel %vm203_vm2, %v1619_v36, %v1596_v61 }
 0x7be   : > { %3961 = vmatprep.mubr.msk.f32.mxu0 %vm208_vm1, %v1623_v63  ;;  %v5411_v4 = vpop.permute.xlu1 %5410 }
 0x7bf   : > { %v5413_v25 = vunpack.i.h.bf16 %v5411_v4  ;;  %v5412_v26 = vunpack.i.l.bf16 %v5411_v4 }
 0x7c0   : > { %v5406_v10 = vpop.permute.xlu0 %5405 }
 0x7c1   : > { %v5408_v11 = vunpack.i.h.bf16 %v5406_v10  ;;  %v5407_v12 = vunpack.i.l.bf16 %v5406_v10  ;;  %v1608_v38 = vsel %vm45_vm0, %v1500_v30, %v5412_v26  ;;  %v1610_v43 = vsel %vm45_vm0, %v1502_v32, %v5413_v25 }
 0x7c2   : > { %v1586_v13 = vpop.permute.xlu1 %1585 }
 0x7c3   : > { %v1615_v18 = vsel %vm208_vm1, %v1611_v14, %v5407_v12  ;;  %v1617_v20 = vsel %vm208_vm1, %v1613_v17, %v5408_v11  ;;  %v1622_v60 = vsel %vm45_vm0, %v1518_v34, %v1586_v13  ;;  %v7561_v14 = vmov (%p1455_p3), %v6169_v27 }
 0x7c4   : > { %v1582_v21 = vpop.permute.xlu0 %1581  ;;  %1710 = vmatmul.mubr.f32.vlgmr.msra.gmra.mrb[0].mxu0 %v1615_v18  ;;  %1720 = vmatmul.mubr.f32.vlgmr.msra.gmra.mrb[0].mxu1 %v1617_v20 }
 0x7c5   : > { %v1620_v24 = vsel %vm45_vm0, %v1516_v52, %v1582_v21  ;;  %v7560_v52 = vmov (%p1455_p3), %v6171_v31 }
 0x7c6   : > { %v1598_v28 = vpop.permute.xlu1 %1597 }
 0x7c7   : > { %v1624_v29 = vsel %vm203_vm2, %v1620_v24, %v1598_v28 }
 0x7c8   : > { %v5416_v33 = vpop.permute.xlu0 %5415  ;;  %3962 = vmatprep.mubr.msk.f32.mxu0 %vm208_vm1, %v1624_v29 }
 0x7c9   : > { %v5418_v0 = vunpack.i.h.bf16 %v5416_v33  ;;  %v5417_v35 = vunpack.i.l.bf16 %v5416_v33 }
 0x7ca   : > { %v5421_v37 = vpop.permute.xlu1 %5420 }
 0x7cb   : > { %v5423_v44 = vunpack.i.h.bf16 %v5421_v37  ;;  %v5422_v45 = vunpack.i.l.bf16 %v5421_v37  ;;  %v1612_v51 = vsel %vm203_vm2, %v1608_v38, %v5417_v35  ;;  %v1614_v59 = vsel %vm203_vm2, %v1610_v43, %v5418_v0 }
 0x7cc   : > { %v1602_v46 = vpop.permute.xlu0 %1601 }
 0x7cd   : > { %v1626_v47 = vsel %vm203_vm2, %v1622_v60, %v1602_v46  ;;  %v1616_v48 = vsel %vm208_vm1, %v1612_v51, %v5422_v45  ;;  %v1618_v49 = vsel %vm208_vm1, %v1614_v59, %v5423_v44 }
 0x7ce   : > { %1715 = vmatmul.mubr.f32.gmra.mrb[2].mxu0 %v1616_v48  ;;  %3964 = vmatprep.mubr.msk.f32.mxu1 %vm208_vm1, %v1626_v47 }
 0x7cf   : > { %1725 = vmatmul.mubr.f32.gmra.mrb[2].mxu1 %v1618_v49 }
 0x897   : > { %v1711_v53 = vpop.f32.mrb[0].mxu0  ;;  %v1721_v54 = vpop.f32.mrb[0].mxu1 }
 0x898   : > { %v1712_v55 = vadd.f32 %v3960_v50, %v1711_v53  ;;  %v1722_v56 = vadd.f32 %v3960_v50, %v1721_v54  ;;  %v1713_v57 = vpop.f32.mrb[1].mxu0  ;;  %v1723_v58 = vpop.f32.mrb[1].mxu1 }
 0x89a   : > { %v1730_v36 = vmax.f32 %v1712_v55, 0.0   ;;  %v1732_v61 = vmax.f32 %v1722_v56, 0.0  }
 0x89c   : > { %v7557_v20 = vmov %v1732_v61  ;;  %v7559_v17 = vmov %v1730_v36  ;;  %v6778_v10 = vadd.f32 (%p1455_p3), %v1730_v36, %v7548_v8  ;;  %v6784_v12 = vadd.f32 (%p1455_p3), %v1732_v61, %v7549_v9 }
 0x89d   :  { %v7562_v17 = vmov (%p1455_p3), %v6167_v23  ;;  %v7563_v8 = vmov (%p1455_p3), %v6165_v19 }
 0x8a1   : > { %v1716_v22 = vpop.f32.mrb[2].mxu0  ;;  %1457 = sbr.rel (!%p1455_p3) target bundleno = 1846 (0x736), region = 176 }
 0x8a2   : > { %v1717_v62 = vadd.f32 %v3960_v50, %v1716_v22  ;;  %v1718_v63 = vpop.f32.mrb[3].mxu0  ;;  %v1726_v1 = vpop.f32.mrb[2].mxu1 }
 0x8a3   : > { %v1727_v3 = vadd.f32 %v3960_v50, %v1726_v1  ;;  %v1728_v4 = vpop.f32.mrb[3].mxu1 }
 0x8a4   : > { %v1731_v6 = vmax.f32 %v1717_v62, 0.0  }
 0x8a5   : > { %v1733_v7 = vmax.f32 %v1727_v3, 0.0  }
 0x8a6   : > { %v7558_v18 = vmov %v1731_v6  ;;  %v6781_v11 = vadd.f32 (%p1455_p3), %v1731_v6, %v7550_v15 }
 0x8a7   : > { %v7556_v21 = vmov %v1733_v7  ;;  %v6787_v13 = vadd.f32 (%p1455_p3), %v1733_v7, %v7551_v16 }
 0x8a8 LB: > { %1782 = vst.msk [vmem:[#allocation2 + $0x28] sm:$0xff] %vm45_vm0, %v5714_v14  ;;  %1783 = vst.msk [vmem:[#allocation2 + $0x30] sm:$0xff] %vm45_vm0, %v5710_v52  ;;  %v5769_v9 = vmov 0.0|0.0   ;;  %s1748_s6 = smul.u32 224, %s5726_s5  ;;  %s5770_s30 = smov 32   ;;  %s5726_s5 = sphi %s6801_s5, %s1743_s5   ;;  %v5722_v8 = vphi %v7563_v8, %v7571_v8   ;;  %v5718_v17 = vphi %v7562_v17, %v7570_v17   ;;  %v5714_v14 = vphi %v7561_v14, %v7569_v14   ;;  %v5710_v52 = vphi %v7560_v52, %v7568_v52  }
 0x8a9   : > { %1780 = vst.msk [vmem:[#allocation2 + $0x8] sm:$0xff] %vm45_vm0, %v5722_v8  ;;  %1781 = vst.msk [vmem:[#allocation2 + $0x10] sm:$0xff] %vm45_vm0, %v5718_v17  ;;  %4611 = vmatprep.subr.bf16.mxu0 %v5769_v9  ;;  %4927 = vmatprep.subr.bf16.mxu1 %v5769_v9  ;;  %s5771_s16 = smov 64   ;;  %s5772_s17 = smov 96  }
 0x8aa   : > { %s6820_s29 = scalar_lea.vmem %s7521_s7, %s1748_s6  ;;  %s1778_s0 = scalar_lea.vmem %s7522_s8, %s5726_s5 }
 0x8ab   : > { %v1750_v15 = vld [vmem:[%s6820_s29] sm:$0xff]  ;;  %v1751_v16 = vld [vmem:[%s6820_s29 + $0x8] sm:$0xff]  ;;  %v1752_v18 = vld [vmem:[%s6820_s29 + $0x10] sm:$0xff]  ;;  %s1743_s5 = sadd.s32 1, %s5726_s5  }
 0x8ac   : > { %v4612_v20 = vpack.c.bf16 %v1751_v16, %v1750_v15  ;;  %v1753_v21 = vld [vmem:[%s6820_s29 + $0x18] sm:$0xff]  ;;  %v1754_v24 = vld [vmem:[%s6820_s29 + $0x20] sm:$0xff]  ;;  %v1755_v34 = vld [vmem:[%s6820_s29 + $0x28] sm:$0xff]  ;;  %p1740_p4 = scmp.ge.s32.totalorder %s1743_s5, 12  }
 0x8ad   : > { %v4615_v29 = vpack.c.bf16 %v1753_v21, %v1752_v18  ;;  %v4618_v37 = vpack.c.bf16 %v1755_v34, %v1754_v24  ;;  %v1756_v38 = vld [vmem:[%s6820_s29 + $0x30] sm:$0xff]  ;;  %v1757_v43 = vld [vmem:[%s6820_s29 + $0x38] sm:$0xff]  ;;  %v1758_v49 = vld [vmem:[%s6820_s29 + $0x40] sm:$0xff]  ;;  %s6957_s20 = smov (%p1740_p4), 0  }
 0x8ae   : > { %4613 = vmatpush1.bf16.msra.mxu0 %v4612_v20  ;;  %4941 = vmatpush1.bf16.msra.mxu1 %v4612_v20  ;;  %v4621_v47 = vpack.c.bf16 %v1757_v43, %v1756_v38  ;;  %v1759_v50 = vld [vmem:[%s6820_s29 + $0x48] sm:$0xff]  ;;  %v1760_v55 = vld [vmem:[%s6820_s29 + $0x50] sm:$0xff]  ;;  %v1761_v56 = vld [vmem:[%s6820_s29 + $0x58] sm:$0xff] }
 0x8af   : > { %v1806_v25 = vld [vmem:[#allocation2 + $0x2a] sm:$0xff]  ;;  %4614 = vmatprep.subr.bf16.mxu0 %v5769_v9  ;;  %4928 = vmatprep.subr.bf16.mxu1 %v5769_v9  ;;  %v4624_v54 = vpack.c.bf16 %v1759_v50, %v1758_v49  ;;  %v1807_v57 = vld [vmem:[#allocation2 + $0x32] sm:$0xff]  ;;  %v4627_v22 = vpack.c.bf16 %v1761_v56, %v1760_v55  ;;  %v1762_v62 = vld [vmem:[%s6820_s29 + $0x60] sm:$0xff] }
 0x8b0   : > { %v1788_v26 = vld [vmem:[#allocation2 + $0x6] sm:$0xff]  ;;  %1868 = vrot.lane.b32.xlu1 %v1806_v25, %s5770_s30  ;;  %v1789_v45 = vld [vmem:[#allocation2 + $0xe] sm:$0xff]  ;;  %v1765_v17 = vld [vmem:[%s6820_s29 + $0x78] sm:$0xff] }
 0x8b1   : > { %v1790_v28 = vld [vmem:[#allocation2 + $0x26] sm:$0xff]  ;;  %v1791_v51 = vld [vmem:[#allocation2 + $0x2e] sm:$0xff]  ;;  %v1769_v24 = vld [vmem:[%s6820_s29 + $0x98] sm:$0xff] }
 0x8b2   : > { %v5424_v30 = vpack.i.bf16 %v1790_v28, %v1788_v26  ;;  %v1792_v32 = vld [vmem:[#allocation2 + $0x7] sm:$0xff]  ;;  %4616 = vmatpush1.bf16.msra.mxu0 %v4615_v29  ;;  %4942 = vmatpush1.bf16.msra.mxu1 %v4615_v29  ;;  %v5439_v48 = vpack.i.bf16 %v1791_v51, %v1789_v45  ;;  %v1805_v58 = vld [vmem:[#allocation2 + $0x12] sm:$0xff] }
 0x8b3   : > { %v1794_v33 = vld [vmem:[#allocation2 + $0x27] sm:$0xff]  ;;  %4617 = vmatprep.subr.bf16.mxu0 %v5769_v9  ;;  %4929 = vmatprep.subr.bf16.mxu1 %v5769_v9  ;;  %v1793_v36 = vld [vmem:[#allocation2 + $0xf] sm:$0xff]  ;;  %v1777_v38 = vld [vmem:[%s6820_s29 + $0xd8] sm:$0xff] }
 0x8b4   : > { %v5429_v0 = vpack.i.bf16 %v1794_v33, %v1792_v32  ;;  %5425 = vrot.lane.b32.xlu0 %v5424_v30, %s5770_s30  ;;  %v1804_v35 = vld [vmem:[#allocation2 + $0xa] sm:$0xff]  ;;  %v1809_v1 = vld [vmem:[#allocation2 + $0x13] sm:$0xff]  ;;  %v1766_v16 = vld [vmem:[%s6820_s29 + $0x80] sm:$0xff] }
 0x8b5   : > { %v1810_v44 = vld [vmem:[#allocation2 + $0x2b] sm:$0xff]  ;;  %v1811_v8 = vld [vmem:[#allocation2 + $0x33] sm:$0xff]  ;;  %v1770_v26 = vld [vmem:[%s6820_s29 + $0xa0] sm:$0xff] }
 0x8b6   : > { %5430 = vrot.lane.b32.xlu1 %v5429_v0, %s5771_s16  ;;  %v1808_v59 = vld [vmem:[#allocation2 + $0xb] sm:$0xff]  ;;  %4619 = vmatpush1.bf16.msra.mxu0 %v4618_v37  ;;  %v1773_v32 = vld [vmem:[%s6820_s29 + $0xb8] sm:$0xff]  ;;  %v1774_v34 = vld [vmem:[%s6820_s29 + $0xc0] sm:$0xff] }
 0x8b7   : > { %v1796_v60 = vld [vmem:[#allocation2 + $0x8] sm:$0xff]  ;;  %4943 = vmatpush1.bf16.msra.mxu1 %v4618_v37  ;;  %4620 = vmatprep.subr.bf16.mxu0 %v5769_v9  ;;  %v1797_v3 = vld [vmem:[#allocation2 + $0x10] sm:$0xff] }
 0x8b8   : > { %1864 = vrot.lane.b32.xlu0 %v1804_v35, %s5770_s30  ;;  %v1798_v46 = vld [vmem:[#allocation2 + $0x28] sm:$0xff]  ;;  %4930 = vmatprep.subr.bf16.mxu1 %v5769_v9  ;;  %v1799_v4 = vld [vmem:[#allocation2 + $0x30] sm:$0xff] }
 0x8b9   : > { %v5434_v53 = vpack.i.bf16 %v1798_v46, %v1796_v60  ;;  %v1795_v61 = vld [vmem:[#allocation2 + $0x2f] sm:$0xff]  ;;  %v5449_v52 = vpack.i.bf16 %v1799_v4, %v1797_v3  ;;  %v1786_v56 = vld [vmem:[#allocation2 + $0x25] sm:$0xff] }
 0x8ba   : > { %1884 = vrot.lane.b32.xlu1 %v1810_v44, %s5771_s16  ;;  %4622 = vmatpush1.bf16.msra.mxu0 %v4621_v47  ;;  %v1763_v63 = vld [vmem:[%s6820_s29 + $0x68] sm:$0xff]  ;;  %v5444_v6 = vpack.i.bf16 %v1795_v61, %v1793_v36  ;;  %v1764_v14 = vld [vmem:[%s6820_s29 + $0x70] sm:$0xff] }
 0x8bb   : > { %4944 = vmatpush1.bf16.msra.mxu1 %v4621_v47  ;;  %4623 = vmatprep.subr.bf16.mxu0 %v5769_v9  ;;  %v4630_v7 = vpack.c.bf16 %v1763_v63, %v1762_v62  ;;  %v4633_v15 = vpack.c.bf16 %v1765_v17, %v1764_v14  ;;  %v1767_v18 = vld [vmem:[%s6820_s29 + $0x88] sm:$0xff]  ;;  %v1768_v21 = vld [vmem:[%s6820_s29 + $0x90] sm:$0xff] }
 0x8bc   : > { %1880 = vrot.lane.b32.xlu0 %v1808_v59, %s5771_s16  ;;  %4931 = vmatprep.subr.bf16.mxu1 %v5769_v9  ;;  %v4636_v20 = vpack.c.bf16 %v1767_v18, %v1766_v16  ;;  %v4639_v25 = vpack.c.bf16 %v1769_v24, %v1768_v21  ;;  %v1771_v28 = vld [vmem:[%s6820_s29 + $0xa8] sm:$0xff]  ;;  %v1772_v30 = vld [vmem:[%s6820_s29 + $0xb0] sm:$0xff] }
 0x8bd   : > { %v4642_v29 = vpack.c.bf16 %v1771_v28, %v1770_v26  ;;  %v4645_v33 = vpack.c.bf16 %v1773_v32, %v1772_v30  ;;  %v1775_v0 = vld [vmem:[%s6820_s29 + $0xc8] sm:$0xff]  ;;  %v1776_v37 = vld [vmem:[%s6820_s29 + $0xd0] sm:$0xff] }
 0x8be   : > { %5440 = vrot.lane.b32.xlu1 %v5439_v48, %s5770_s30  ;;  %4625 = vmatpush1.bf16.msra.mxu0 %v4624_v54  ;;  %v4648_v35 = vpack.c.bf16 %v1775_v0, %v1774_v34  ;;  %v4651_v43 = vpack.c.bf16 %v1777_v38, %v1776_v37  ;;  %v1802_v59 = vld [vmem:[#allocation2 + $0x29] sm:$0xff]  ;;  %v1803_v28 = vld [vmem:[#allocation2 + $0x31] sm:$0xff] }
 0x8bf   : > { %4945 = vmatpush1.bf16.msra.mxu1 %v4624_v54  ;;  %4626 = vmatprep.subr.bf16.mxu0 %v5769_v9  ;;  %v1800_v46 = vld [vmem:[#allocation2 + $0x9] sm:$0xff] }
 0x8c0   : > { %5435 = vrot.lane.b32.xlu0 %v5434_v53, %s5772_s17  ;;  %4932 = vmatprep.subr.bf16.mxu1 %v5769_v9  ;;  %v1785_v24 = vld [vmem:[#allocation2 + $0xd] sm:$0xff] }
 0x8c2   : > { %1870 = vrot.lane.b32.xlu1 %v1807_v57, %s5770_s30  ;;  %4628 = vmatpush1.bf16.msra.mxu0 %v4627_v22 }
 0x8c3   : > { %4946 = vmatpush1.bf16.msra.mxu1 %v4627_v22  ;;  %4629 = vmatprep.subr.bf16.mxu0 %v5769_v9 }
 0x8c4   : > { %1866 = vrot.lane.b32.xlu0 %v1805_v58, %s5770_s30  ;;  %4933 = vmatprep.subr.bf16.mxu1 %v5769_v9 }
 0x8c6   : > { %1882 = vrot.lane.b32.xlu1 %v1809_v1, %s5771_s16  ;;  %4631 = vmatpush1.bf16.msra.mxu0 %v4630_v7 }
 0x8c7   : > { %4947 = vmatpush1.bf16.msra.mxu1 %v4630_v7  ;;  %4632 = vmatprep.subr.bf16.mxu0 %v5769_v9 }
 0x8c8   : > { %5445 = vrot.lane.b32.xlu0 %v5444_v6, %s5771_s16  ;;  %4934 = vmatprep.subr.bf16.mxu1 %v5769_v9  ;;  %v1801_v6 = vld [vmem:[#allocation2 + $0x11] sm:$0xff] }
 0x8ca   : > { %5450 = vrot.lane.b32.xlu1 %v5449_v52, %s5772_s17  ;;  %4634 = vmatpush1.bf16.msra.mxu0 %v4633_v15 }
 0x8cb   : > { %4948 = vmatpush1.bf16.msra.mxu1 %v4633_v15  ;;  %4635 = vmatprep.subr.bf16.mxu0 %v5769_v9 }
 0x8cc   : > { %1886 = vrot.lane.b32.xlu0 %v1811_v8, %s5771_s16  ;;  %4935 = vmatprep.subr.bf16.mxu1 %v5769_v9 }
 0x8ce   : > { %4637 = vmatpush1.bf16.msra.mxu0 %v4636_v20 }
 0x8cf   : > { %4949 = vmatpush1.bf16.msra.mxu1 %v4636_v20  ;;  %4638 = vmatprep.subr.bf16.mxu0 %v5769_v9 }
 0x8d0   : > { %4936 = vmatprep.subr.bf16.mxu1 %v5769_v9 }
 0x8d2   : > { %4640 = vmatpush1.bf16.msra.mxu0 %v4639_v25 }
 0x8d3   : > { %4950 = vmatpush1.bf16.msra.mxu1 %v4639_v25  ;;  %4641 = vmatprep.subr.bf16.mxu0 %v5769_v9  ;;  %v1787_v25 = vld [vmem:[#allocation2 + $0x2d] sm:$0xff] }
 0x8d4   : > { %4937 = vmatprep.subr.bf16.mxu1 %v5769_v9 }
 0x8d6   : > { %4643 = vmatpush1.bf16.msra.mxu0 %v4642_v29 }
 0x8d7   : > { %4951 = vmatpush1.bf16.msra.mxu1 %v4642_v29  ;;  %4644 = vmatprep.subr.bf16.mxu0 %v5769_v9 }
 0x8d8   : > { %4938 = vmatprep.subr.bf16.mxu1 %v5769_v9 }
 0x8da   : > { %4646 = vmatpush1.bf16.msra.mxu0 %v4645_v33 }
 0x8db   : > { %4952 = vmatpush1.bf16.msra.mxu1 %v4645_v33  ;;  %4647 = vmatprep.subr.bf16.mxu0 %v5769_v9 }
 0x8dc   : > { %4939 = vmatprep.subr.bf16.mxu1 %v5769_v9 }
 0x8de   : > { %4649 = vmatpush1.bf16.msra.mxu0 %v4648_v35 }
 0x8df   : > { %4953 = vmatpush1.bf16.msra.mxu1 %v4648_v35  ;;  %4650 = vmatprep.subr.bf16.mxu0 %v5769_v9 }
 0x8e0   : > { %4940 = vmatprep.subr.bf16.mxu1 %v5769_v9  ;;  %v1784_v9 = vld [vmem:[#allocation2 + $0x5] sm:$0xff] }
 0x8e2   : > { %4652 = vmatpush1.bf16.msra.mxu0 %v4651_v43 }
 0x8e3   : > { %4954 = vmatpush1.bf16.msra.mxu1 %v4651_v43 }
 0x922   : > { %v1869_v44 = vpop.permute.xlu1 %1868 }
 0x923   : > { %v1906_v47 = vsel %vm45_vm0, %v1802_v59, %v1869_v44 }
 0x926   : > { %v5426_v45 = vpop.permute.xlu0 %5425 }
 0x927   : > { %v5428_v49 = vunpack.i.h.bf16 %v5426_v45  ;;  %v5427_v50 = vunpack.i.l.bf16 %v5426_v45 }
 0x928   : > { %v5431_v51 = vpop.permute.xlu1 %5430 }
 0x929   : > { %v5433_v58 = vunpack.i.h.bf16 %v5431_v51  ;;  %v5432_v36 = vunpack.i.l.bf16 %v5431_v51  ;;  %v1892_v22 = vsel %vm45_vm0, %v1784_v9, %v5427_v50  ;;  %v1894_v62 = vsel %vm45_vm0, %v1786_v56, %v5428_v49 }
 0x92a   : > { %v1865_v60 = vpop.permute.xlu0 %1864 }
 0x92b   : > { %v1904_v54 = vsel %vm45_vm0, %v1800_v46, %v1865_v60  ;;  %v1896_v7 = vsel %vm203_vm2, %v1892_v22, %v5432_v36  ;;  %v1898_v52 = vsel %vm203_vm2, %v1894_v62, %v5433_v58  ;;  %v3965_v60 = vld [vmem:[%s1778_s0] ss:$0 sm:$0xff] }
 0x92c   : > { %v1885_v48 = vpop.permute.xlu1 %1884 }
 0x92d   : > { %v1910_v53 = vsel %vm203_vm2, %v1906_v47, %v1885_v48 }
 0x92e   : > { %v1881_v55 = vpop.permute.xlu0 %1880  ;;  %3968 = vmatprep.mubr.msk.f32.mxu1 %vm208_vm1, %v1910_v53 }
 0x92f   : > { %v1908_v57 = vsel %vm203_vm2, %v1904_v54, %v1881_v55 }
 0x930   : > { %3966 = vmatprep.mubr.msk.f32.mxu0 %vm208_vm1, %v1908_v57  ;;  %v5441_v61 = vpop.permute.xlu1 %5440 }
 0x931   : > { %v5443_v16 = vunpack.i.h.bf16 %v5441_v61  ;;  %v5442_v18 = vunpack.i.l.bf16 %v5441_v61 }
 0x932   : > { %v5436_v63 = vpop.permute.xlu0 %5435 }
 0x933   : > { %v5438_v1 = vunpack.i.h.bf16 %v5436_v63  ;;  %v5437_v3 = vunpack.i.l.bf16 %v5436_v63  ;;  %v1893_v33 = vsel %vm45_vm0, %v1785_v24, %v5442_v18  ;;  %v1895_v34 = vsel %vm45_vm0, %v1787_v25, %v5443_v16 }
 0x934   : > { %v1871_v4 = vpop.permute.xlu1 %1870 }
 0x935   : > { %v1900_v14 = vsel %vm208_vm1, %v1896_v7, %v5437_v3  ;;  %v1902_v17 = vsel %vm208_vm1, %v1898_v52, %v5438_v1  ;;  %v1907_v43 = vsel %vm45_vm0, %v1803_v28, %v1871_v4 }
 0x936   : > { %v1867_v8 = vpop.permute.xlu0 %1866  ;;  %1995 = vmatmul.mubr.f32.vlgmr.msra.gmra.mrb[0].mxu0 %v1900_v14  ;;  %2005 = vmatmul.mubr.f32.vlgmr.msra.gmra.mrb[0].mxu1 %v1902_v17 }
 0x937   : > { %v1905_v15 = vsel %vm45_vm0, %v1801_v6, %v1867_v8 }
 0x938   : > { %v1883_v20 = vpop.permute.xlu1 %1882 }
 0x939   : > { %v1909_v21 = vsel %vm203_vm2, %v1905_v15, %v1883_v20 }
 0x93a   : > { %v5446_v26 = vpop.permute.xlu0 %5445  ;;  %3967 = vmatprep.mubr.msk.f32.mxu0 %vm208_vm1, %v1909_v21 }
 0x93b   : > { %v5448_v29 = vunpack.i.h.bf16 %v5446_v26  ;;  %v5447_v30 = vunpack.i.l.bf16 %v5446_v26 }
 0x93c   : > { %v5451_v32 = vpop.permute.xlu1 %5450 }
 0x93d   : > { %v5453_v0 = vunpack.i.h.bf16 %v5451_v32  ;;  %v5452_v35 = vunpack.i.l.bf16 %v5451_v32  ;;  %v1897_v37 = vsel %vm203_vm2, %v1893_v33, %v5447_v30  ;;  %v1899_v38 = vsel %vm203_vm2, %v1895_v34, %v5448_v29 }
 0x93e   : > { %v1887_v44 = vpop.permute.xlu0 %1886 }
 0x93f   : > { %v1911_v45 = vsel %vm203_vm2, %v1907_v43, %v1887_v44  ;;  %v1901_v51 = vsel %vm208_vm1, %v1897_v37, %v5452_v35  ;;  %v1903_v59 = vsel %vm208_vm1, %v1899_v38, %v5453_v0 }
 0x940   : > { %2000 = vmatmul.mubr.f32.gmra.mrb[2].mxu0 %v1901_v51  ;;  %3969 = vmatprep.mubr.msk.f32.mxu1 %vm208_vm1, %v1911_v45 }
 0x941   : > { %2010 = vmatmul.mubr.f32.gmra.mrb[2].mxu1 %v1903_v59 }
 0xa09   : > { %v1996_v46 = vpop.f32.mrb[0].mxu0  ;;  %v2006_v47 = vpop.f32.mrb[0].mxu1 }
 0xa0a   : > { %v1997_v48 = vadd.f32 %v3965_v60, %v1996_v46  ;;  %v2007_v49 = vadd.f32 %v3965_v60, %v2006_v47  ;;  %v1998_v50 = vpop.f32.mrb[1].mxu0  ;;  %v2008_v53 = vpop.f32.mrb[1].mxu1 }
 0xa0c   : > { %v6918_v8 = vmax.f32 %v1997_v48, 0.0   ;;  %v6920_v14 = vmax.f32 %v2007_v49, 0.0  }
 0xa0e   : > { %v7564_v54 = vmov %v6918_v8  ;;  %v7565_v55 = vmov %v6920_v14 }
 0xa0f   : > { %v7569_v14 = vmov %v7565_v55  ;;  %v7571_v8 = vmov %v7564_v54  ;;  %v2019_v63 = vadd.f32 (%p1740_p4), %v7564_v54, %v6165_v19   ;;  %v2021_v3 = vadd.f32 (%p1740_p4), %v7565_v55, %v6169_v27  }
 0xa13   : > { %v2001_v9 = vpop.f32.mrb[2].mxu0 }
 0xa14   : > { %v2002_v56 = vadd.f32 %v3965_v60, %v2001_v9  ;;  %v2003_v57 = vpop.f32.mrb[3].mxu0  ;;  %v2011_v58 = vpop.f32.mrb[2].mxu1  ;;  %1742 = sbr.rel (!%p1740_p4) target bundleno = 2216 (0x8a8), region = 187 }
 0xa15   : > { %v2012_v36 = vadd.f32 %v3965_v60, %v2011_v58  ;;  %v2013_v61 = vpop.f32.mrb[3].mxu1 }
 0xa16   : > { %v6922_v17 = vmax.f32 %v2002_v56, 0.0  }
 0xa17   : > { %v6924_v52 = vmax.f32 %v2012_v36, 0.0  }
 0xa18   : > { %v7566_v22 = vmov %v6922_v17 }
 0xa19   : > { %v7567_v62 = vmov %v6924_v52  ;;  %v7570_v17 = vmov %v7566_v22  ;;  %v2020_v1 = vadd.f32 (%p1740_p4), %v7566_v22, %v6167_v23  }
 0xa1a   : > { %v7568_v52 = vmov %v7567_v62  ;;  %v2022_v4 = vadd.f32 (%p1740_p4), %v7567_v62, %v6171_v31  }
 0xa1b LB: > { %2067 = vst.msk [vmem:[#allocation2 + $0x28] sm:$0xff] %vm45_vm0, %v5734_v3  ;;  %2068 = vst.msk [vmem:[#allocation2 + $0x30] sm:$0xff] %vm45_vm0, %v5730_v4  ;;  %v5773_v19 = vmov 0.0|0.0   ;;  %s2033_s21 = smul.u32 224, %s5746_s20  ;;  %s5774_s2 = smov 32   ;;  %s5746_s20 = sphi %s6957_s20, %s2028_s20   ;;  %v5742_v63 = vphi %v2019_v63, %v7575_v63   ;;  %v5738_v1 = vphi %v2020_v1, %v7574_v1   ;;  %v5734_v3 = vphi %v2021_v3, %v7573_v3   ;;  %v5730_v4 = vphi %v2022_v4, %v7572_v4  }
 0xa1c   : > { %2065 = vst.msk [vmem:[#allocation2 + $0x8] sm:$0xff] %vm45_vm0, %v5742_v63  ;;  %2066 = vst.msk [vmem:[#allocation2 + $0x10] sm:$0xff] %vm45_vm0, %v5738_v1  ;;  %4653 = vmatprep.subr.bf16.mxu0 %v5773_v19  ;;  %4955 = vmatprep.subr.bf16.mxu1 %v5773_v19  ;;  %s5775_s24 = smov 64   ;;  %s5776_s25 = smov 96  }
 0xa1d   : > { %s6976_s23 = scalar_lea.vmem %s7521_s7, %s2033_s21  ;;  %s2063_s4 = scalar_lea.vmem %s7522_s8, %s5746_s20 }
 0xa1e   : > { %v2035_v23 = vld [vmem:[%s6976_s23] sm:$0xff]  ;;  %v2036_v27 = vld [vmem:[%s6976_s23 + $0x8] sm:$0xff]  ;;  %v2037_v31 = vld [vmem:[%s6976_s23 + $0x10] sm:$0xff]  ;;  %s2028_s20 = sadd.s32 1, %s5746_s20  }
 0xa1f   : > { %v4654_v6 = vpack.c.bf16 %v2036_v27, %v2035_v23  ;;  %v2038_v7 = vld [vmem:[%s6976_s23 + $0x18] sm:$0xff]  ;;  %v2039_v52 = vld [vmem:[%s6976_s23 + $0x20] sm:$0xff]  ;;  %v2040_v21 = vld [vmem:[%s6976_s23 + $0x28] sm:$0xff]  ;;  %p2025_p5 = scmp.ge.s32.totalorder %s2028_s20, 12  }
 0xa20   : > { %v4657_v15 = vpack.c.bf16 %v2038_v7, %v2037_v31  ;;  %v4660_v26 = vpack.c.bf16 %v2040_v21, %v2039_v52  ;;  %v2041_v28 = vld [vmem:[%s6976_s23 + $0x30] sm:$0xff]  ;;  %v2042_v29 = vld [vmem:[%s6976_s23 + $0x38] sm:$0xff]  ;;  %v2043_v43 = vld [vmem:[%s6976_s23 + $0x40] sm:$0xff]  ;;  %vm5777_vm3 = vmmov (%p2025_p5), 0   ;;  %vm2480_vm4 = vcmask (%p2025_p5), 1041409   ;;  %s5778_s1 = smov (%p2025_p5), [#allocation3]  }
 0xa21   : > { %4655 = vmatpush1.bf16.msra.mxu0 %v4654_v6  ;;  %4969 = vmatpush1.bf16.msra.mxu1 %v4654_v6  ;;  %v4663_v37 = vpack.c.bf16 %v2042_v29, %v2041_v28  ;;  %v2044_v44 = vld [vmem:[%s6976_s23 + $0x48] sm:$0xff]  ;;  %v2045_v59 = vld [vmem:[%s6976_s23 + $0x50] sm:$0xff]  ;;  %v2046_v60 = vld [vmem:[%s6976_s23 + $0x58] sm:$0xff]  ;;  %vm3770_vm5 = vcmask (%p2025_p5), 123904  }
 0xa22   : > { %v2091_v14 = vld [vmem:[#allocation2 + $0x2a] sm:$0xff]  ;;  %4656 = vmatprep.subr.bf16.mxu0 %v5773_v19  ;;  %4956 = vmatprep.subr.bf16.mxu1 %v5773_v19  ;;  %v4666_v51 = vpack.c.bf16 %v2044_v44, %v2043_v43  ;;  %v2092_v46 = vld [vmem:[#allocation2 + $0x32] sm:$0xff]  ;;  %v4669_v50 = vpack.c.bf16 %v2046_v60, %v2045_v59  ;;  %v2047_v53 = vld [vmem:[%s6976_s23 + $0x60] sm:$0xff] }
 0xa23   : > { %v2073_v17 = vld [vmem:[#allocation2 + $0x6] sm:$0xff]  ;;  %2153 = vrot.lane.b32.xlu1 %v2091_v14, %s5774_s2  ;;  %v2074_v32 = vld [vmem:[#allocation2 + $0xe] sm:$0xff]  ;;  %v2050_v3 = vld [vmem:[%s6976_s23 + $0x78] sm:$0xff] }
 0xa24   : > { %v2075_v8 = vld [vmem:[#allocation2 + $0x26] sm:$0xff]  ;;  %v2076_v33 = vld [vmem:[#allocation2 + $0x2e] sm:$0xff]  ;;  %v2054_v52 = vld [vmem:[%s6976_s23 + $0x98] sm:$0xff] }
 0xa25   : > { %v5454_v16 = vpack.i.bf16 %v2075_v8, %v2073_v17  ;;  %v2077_v18 = vld [vmem:[#allocation2 + $0x7] sm:$0xff]  ;;  %4658 = vmatpush1.bf16.msra.mxu0 %v4657_v15  ;;  %4970 = vmatpush1.bf16.msra.mxu1 %v4657_v15  ;;  %v5469_v38 = vpack.i.bf16 %v2076_v33, %v2074_v32  ;;  %v2090_v47 = vld [vmem:[#allocation2 + $0x12] sm:$0xff] }
 0xa26   : > { %v2079_v20 = vld [vmem:[#allocation2 + $0x27] sm:$0xff]  ;;  %4659 = vmatprep.subr.bf16.mxu0 %v5773_v19  ;;  %4957 = vmatprep.subr.bf16.mxu1 %v5773_v19  ;;  %v2078_v48 = vld [vmem:[#allocation2 + $0xf] sm:$0xff]  ;;  %v2062_v28 = vld [vmem:[%s6976_s23 + $0xd8] sm:$0xff] }
 0xa27   : > { %v5459_v24 = vpack.i.bf16 %v2079_v20, %v2077_v18  ;;  %5455 = vrot.lane.b32.xlu0 %v5454_v16, %s5774_s2  ;;  %v2089_v25 = vld [vmem:[#allocation2 + $0xa] sm:$0xff]  ;;  %v2094_v56 = vld [vmem:[#allocation2 + $0x13] sm:$0xff]  ;;  %v2051_v27 = vld [vmem:[%s6976_s23 + $0x80] sm:$0xff] }
 0xa28   : > { %v2095_v30 = vld [vmem:[#allocation2 + $0x2b] sm:$0xff]  ;;  %v2096_v4 = vld [vmem:[#allocation2 + $0x33] sm:$0xff]  ;;  %v2055_v17 = vld [vmem:[%s6976_s23 + $0xa0] sm:$0xff] }
 0xa29   : > { %5460 = vrot.lane.b32.xlu1 %v5459_v24, %s5775_s24  ;;  %v2093_v34 = vld [vmem:[#allocation2 + $0xb] sm:$0xff]  ;;  %4661 = vmatpush1.bf16.msra.mxu0 %v4660_v26  ;;  %v2058_v18 = vld [vmem:[%s6976_s23 + $0xb8] sm:$0xff]  ;;  %v2059_v21 = vld [vmem:[%s6976_s23 + $0xc0] sm:$0xff] }
 0xa2a   : > { %v2081_v0 = vld [vmem:[#allocation2 + $0x8] sm:$0xff]  ;;  %4971 = vmatpush1.bf16.msra.mxu1 %v4660_v26  ;;  %4662 = vmatprep.subr.bf16.mxu0 %v5773_v19  ;;  %v2082_v57 = vld [vmem:[#allocation2 + $0x10] sm:$0xff] }
 0xa2b   : > { %2149 = vrot.lane.b32.xlu0 %v2089_v25, %s5774_s2  ;;  %v2083_v35 = vld [vmem:[#allocation2 + $0x28] sm:$0xff]  ;;  %4958 = vmatprep.subr.bf16.mxu1 %v5773_v19  ;;  %v2084_v58 = vld [vmem:[#allocation2 + $0x30] sm:$0xff] }
 0xa2c   : > { %v5464_v45 = vpack.i.bf16 %v2083_v35, %v2081_v0  ;;  %v2080_v49 = vld [vmem:[#allocation2 + $0x2f] sm:$0xff]  ;;  %v5479_v63 = vpack.i.bf16 %v2084_v58, %v2082_v57  ;;  %v2071_v60 = vld [vmem:[#allocation2 + $0x25] sm:$0xff] }
 0xa2d   : > { %2169 = vrot.lane.b32.xlu1 %v2095_v30, %s5775_s24  ;;  %4664 = vmatpush1.bf16.msra.mxu0 %v4663_v37  ;;  %v2048_v9 = vld [vmem:[%s6976_s23 + $0x68] sm:$0xff]  ;;  %v5474_v36 = vpack.i.bf16 %v2080_v49, %v2078_v48  ;;  %v2049_v1 = vld [vmem:[%s6976_s23 + $0x70] sm:$0xff] }
 0xa2e   : > { %4972 = vmatpush1.bf16.msra.mxu1 %v4663_v37  ;;  %4665 = vmatprep.subr.bf16.mxu0 %v5773_v19  ;;  %v4672_v61 = vpack.c.bf16 %v2048_v9, %v2047_v53  ;;  %v4675_v23 = vpack.c.bf16 %v2050_v3, %v2049_v1  ;;  %v2052_v31 = vld [vmem:[%s6976_s23 + $0x88] sm:$0xff]  ;;  %v2053_v7 = vld [vmem:[%s6976_s23 + $0x90] sm:$0xff] }
 0xa2f   : > { %2165 = vrot.lane.b32.xlu0 %v2093_v34, %s5775_s24  ;;  %4959 = vmatprep.subr.bf16.mxu1 %v5773_v19  ;;  %v4678_v6 = vpack.c.bf16 %v2052_v31, %v2051_v27  ;;  %v4681_v14 = vpack.c.bf16 %v2054_v52, %v2053_v7  ;;  %v2056_v8 = vld [vmem:[%s6976_s23 + $0xa8] sm:$0xff]  ;;  %v2057_v16 = vld [vmem:[%s6976_s23 + $0xb0] sm:$0xff] }
 0xa30   : > { %v4684_v15 = vpack.c.bf16 %v2056_v8, %v2055_v17  ;;  %v4687_v20 = vpack.c.bf16 %v2058_v18, %v2057_v16  ;;  %v2060_v24 = vld [vmem:[%s6976_s23 + $0xc8] sm:$0xff]  ;;  %v2061_v26 = vld [vmem:[%s6976_s23 + $0xd0] sm:$0xff]  ;;  %s3778_s23 = sshll.u32 (%p2025_p5), %s5778_s1, 4  ;;  %s3779_s23 = int_to_ptr.vmem [resolvable:$true] %s3778_s23 }
 0xa31   : > { %5470 = vrot.lane.b32.xlu1 %v5469_v38, %s5774_s2  ;;  %4667 = vmatpush1.bf16.msra.mxu0 %v4666_v51  ;;  %v4690_v25 = vpack.c.bf16 %v2060_v24, %v2059_v21  ;;  %v4693_v29 = vpack.c.bf16 %v2062_v28, %v2061_v26  ;;  %v2087_v34 = vld [vmem:[#allocation2 + $0x29] sm:$0xff]  ;;  %v2088_v8 = vld [vmem:[#allocation2 + $0x31] sm:$0xff]  ;;  %p5489_p7 = scmp.lt.s32.totalorder (%p2025_p5), %s3779_s23, %s3779_s23 }
 0xa32   : > { %4973 = vmatpush1.bf16.msra.mxu1 %v4666_v51  ;;  %4668 = vmatprep.subr.bf16.mxu0 %v5773_v19  ;;  %v2085_v35 = vld [vmem:[#allocation2 + $0x9] sm:$0xff] }
 0xa33   : > { %5465 = vrot.lane.b32.xlu0 %v5464_v45, %s5776_s25  ;;  %4960 = vmatprep.subr.bf16.mxu1 %v5773_v19  ;;  %v2070_v52 = vld [vmem:[#allocation2 + $0xd] sm:$0xff] }
 0xa35   : > { %2155 = vrot.lane.b32.xlu1 %v2092_v46, %s5774_s2  ;;  %4670 = vmatpush1.bf16.msra.mxu0 %v4669_v50 }
 0xa36   : > { %4974 = vmatpush1.bf16.msra.mxu1 %v4669_v50  ;;  %4671 = vmatprep.subr.bf16.mxu0 %v5773_v19 }
 0xa37   : > { %2151 = vrot.lane.b32.xlu0 %v2090_v47, %s5774_s2  ;;  %4961 = vmatprep.subr.bf16.mxu1 %v5773_v19  ;;  %s5484_s2 = scalar_lea.vmem (%p2025_p5), %s3779_s23, 32 }
 0xa38   :  { %p5485_p6 = scmp.ne.s32.totalorder (%p2025_p5), %s3779_s23, %s5484_s2  ;;  %p5490_p8 = scmp.lt.s32.totalorder (%p2025_p5), %s5484_s2, %s5484_s2 }
 0xa39   : > { %2167 = vrot.lane.b32.xlu1 %v2094_v56, %s5775_s24  ;;  %4673 = vmatpush1.bf16.msra.mxu0 %v4672_v61 }
 0xa3a   : > { %4975 = vmatpush1.bf16.msra.mxu1 %v4672_v61  ;;  %4674 = vmatprep.subr.bf16.mxu0 %v5773_v19  ;;  %p5491_p9 = por (%p2025_p5), %p5490_p8, %p5489_p7 }
 0xa3b   : > { %5475 = vrot.lane.b32.xlu0 %v5474_v36, %s5775_s24  ;;  %4962 = vmatprep.subr.bf16.mxu1 %v5773_v19  ;;  %v2086_v36 = vld [vmem:[#allocation2 + $0x11] sm:$0xff] }
 0xa3c   :  { %p5492_p10 = pnand (%p2025_p5), %p5491_p9, %p5485_p6 }
 0xa3d   : > { %5480 = vrot.lane.b32.xlu1 %v5479_v63, %s5776_s25  ;;  %4676 = vmatpush1.bf16.msra.mxu0 %v4675_v23 }
 0xa3e   : > { %4976 = vmatpush1.bf16.msra.mxu1 %v4675_v23  ;;  %4677 = vmatprep.subr.bf16.mxu0 %v5773_v19 }
 0xa3f   : > { %2171 = vrot.lane.b32.xlu0 %v2096_v4, %s5775_s24  ;;  %4963 = vmatprep.subr.bf16.mxu1 %v5773_v19 }
 0xa41   : > { %4679 = vmatpush1.bf16.msra.mxu0 %v4678_v6 }
 0xa42   : > { %4977 = vmatpush1.bf16.msra.mxu1 %v4678_v6  ;;  %4680 = vmatprep.subr.bf16.mxu0 %v5773_v19 }
 0xa43   : > { %4964 = vmatprep.subr.bf16.mxu1 %v5773_v19  ;;  %2312 = vrot.lane.b32.xlu0 (%p2025_p5), %v6778_v10, %s5750_s14 }
 0xa45   : > { %4682 = vmatpush1.bf16.msra.mxu0 %v4681_v14 }
 0xa46   : > { %4978 = vmatpush1.bf16.msra.mxu1 %v4681_v14  ;;  %4683 = vmatprep.subr.bf16.mxu0 %v5773_v19  ;;  %v2072_v14 = vld [vmem:[#allocation2 + $0x2d] sm:$0xff] }
 0xa47   : > { %4965 = vmatprep.subr.bf16.mxu1 %v5773_v19  ;;  %2314 = vrot.lane.b32.xlu0 (%p2025_p5), %v6781_v11, %s5750_s14 }
 0xa49   : > { %4685 = vmatpush1.bf16.msra.mxu0 %v4684_v15 }
 0xa4a   : > { %4979 = vmatpush1.bf16.msra.mxu1 %v4684_v15  ;;  %4686 = vmatprep.subr.bf16.mxu0 %v5773_v19 }
 0xa4b   : > { %4966 = vmatprep.subr.bf16.mxu1 %v5773_v19  ;;  %2316 = vrot.lane.b32.xlu0 (%p2025_p5), %v6784_v12, %s5750_s14 }
 0xa4d   : > { %4688 = vmatpush1.bf16.msra.mxu0 %v4687_v20 }
 0xa4e   : > { %4980 = vmatpush1.bf16.msra.mxu1 %v4687_v20  ;;  %4689 = vmatprep.subr.bf16.mxu0 %v5773_v19 }
 0xa4f   : > { %4967 = vmatprep.subr.bf16.mxu1 %v5773_v19 }
 0xa51   : > { %4691 = vmatpush1.bf16.msra.mxu0 %v4690_v25 }
 0xa52   : > { %4981 = vmatpush1.bf16.msra.mxu1 %v4690_v25  ;;  %4692 = vmatprep.subr.bf16.mxu0 %v5773_v19 }
 0xa53   : > { %4968 = vmatprep.subr.bf16.mxu1 %v5773_v19  ;;  %v2069_v19 = vld [vmem:[#allocation2 + $0x5] sm:$0xff] }
 0xa55   : > { %4694 = vmatpush1.bf16.msra.mxu0 %v4693_v29 }
 0xa56   : > { %4982 = vmatpush1.bf16.msra.mxu1 %v4693_v29 }
 0xa57   :  { %4719 = vmatprep.subr.bf16.mxu1 (%p2025_p5), %v5749_v5 }
 0xa95   : > { %v2154_v30 = vpop.permute.xlu1 %2153 }
 0xa96   : > { %v2191_v37 = vsel %vm45_vm0, %v2087_v34, %v2154_v30 }
 0xa99   : > { %v5456_v32 = vpop.permute.xlu0 %5455 }
 0xa9a   : > { %v5458_v43 = vunpack.i.h.bf16 %v5456_v32  ;;  %v5457_v44 = vunpack.i.l.bf16 %v5456_v32 }
 0xa9b   : > { %v5461_v33 = vpop.permute.xlu1 %5460 }
 0xa9c   : > { %v5463_v47 = vunpack.i.h.bf16 %v5461_v33  ;;  %v5462_v48 = vunpack.i.l.bf16 %v5461_v33  ;;  %v2177_v50 = vsel %vm45_vm0, %v2069_v19, %v5457_v44  ;;  %v2179_v53 = vsel %vm45_vm0, %v2071_v60, %v5458_v43 }
 0xa9d   : > { %v2150_v0 = vpop.permute.xlu0 %2149 }
 0xa9e   : > { %v2189_v51 = vsel %vm45_vm0, %v2085_v35, %v2150_v0  ;;  %v2181_v61 = vsel %vm203_vm2, %v2177_v50, %v5462_v48  ;;  %v2183_v63 = vsel %vm203_vm2, %v2179_v53, %v5463_v47  ;;  %v3970_v0 = vld [vmem:[%s2063_s4] ss:$0 sm:$0xff] }
 0xa9f   : > { %v2170_v38 = vpop.permute.xlu1 %2169 }
 0xaa0   : > { %v2195_v45 = vsel %vm203_vm2, %v2191_v37, %v2170_v38 }
 0xaa1   : > { %v2166_v59 = vpop.permute.xlu0 %2165  ;;  %3973 = vmatprep.mubr.msk.f32.mxu1 %vm208_vm1, %v2195_v45 }
 0xaa2   : > { %v2193_v46 = vsel %vm203_vm2, %v2189_v51, %v2166_v59 }
 0xaa3   : > { %3971 = vmatprep.mubr.msk.f32.mxu0 %vm208_vm1, %v2193_v46  ;;  %v5471_v49 = vpop.permute.xlu1 %5470 }
 0xaa4   : > { %v5473_v27 = vunpack.i.h.bf16 %v5471_v49  ;;  %v5472_v31 = vunpack.i.l.bf16 %v5471_v49 }
 0xaa5   : > { %v5466_v9 = vpop.permute.xlu0 %5465 }
 0xaa6   : > { %v5468_v56 = vunpack.i.h.bf16 %v5466_v9  ;;  %v5467_v57 = vunpack.i.l.bf16 %v5466_v9  ;;  %v2178_v20 = vsel %vm45_vm0, %v2070_v52, %v5472_v31  ;;  %v2180_v21 = vsel %vm45_vm0, %v2072_v14, %v5473_v27  ;;  %v2356_v31 = vld [vmem:[%s7523_s9 + $0x40] sm:$0xff] (%p2025_p5) }
 0xaa7   : > { %v2156_v58 = vpop.permute.xlu1 %2155 }
 0xaa8   : > { %v2185_v1 = vsel %vm208_vm1, %v2181_v61, %v5467_v57  ;;  %v2187_v3 = vsel %vm208_vm1, %v2183_v63, %v5468_v56  ;;  %v2192_v29 = vsel %vm45_vm0, %v2088_v8, %v2156_v58  ;;  %v2348_v56 = vld [vmem:[%s7523_s9] sm:$0xff] (%p2025_p5)  ;;  %v2349_v57 = vld [vmem:[%s7523_s9 + $0x8] sm:$0xff] (%p2025_p5)  ;;  %v2350_v58 = vld [vmem:[%s7523_s9 + $0x10] sm:$0xff] (%p2025_p5) }
 0xaa9   : > { %v2152_v4 = vpop.permute.xlu0 %2151  ;;  %2280 = vmatmul.mubr.f32.vlgmr.msra.gmra.mrb[0].mxu0 %v2185_v1  ;;  %2290 = vmatmul.mubr.f32.vlgmr.msra.gmra.mrb[0].mxu1 %v2187_v3  ;;  %v2351_v61 = vld [vmem:[%s7523_s9 + $0x18] sm:$0xff] (%p2025_p5) }
 0xaaa   : > { %v2190_v23 = vsel %vm45_vm0, %v2086_v36, %v2152_v4  ;;  %v4695_v36 = vpack.c.bf16 (%p2025_p5), %v2349_v57, %v2348_v56  ;;  %v7217_v56 = vld [vmem:[%s7525_s11 + $0xb0] sm:$0xff] (%p2025_p5)  ;;  %v7222_v57 = vld [vmem:[%s7525_s11 + $0xb8] sm:$0xff] (%p2025_p5) }
 0xaab   : > { %v2168_v6 = vpop.permute.xlu1 %2167 }
 0xaac   : > { %v2194_v7 = vsel %vm203_vm2, %v2190_v23, %v2168_v6  ;;  %4696 = vmatprep.subr.bf16.mxu0 (%p2025_p5), %v4695_v36  ;;  %v2357_v6 = vld [vmem:[%s7523_s9 + $0x48] sm:$0xff] (%p2025_p5) }
 0xaad   : > { %v5476_v17 = vpop.permute.xlu0 %5475  ;;  %3972 = vmatprep.mubr.msk.f32.mxu0 %vm208_vm1, %v2194_v7  ;;  %4698 = vmatpush3.bf16.msra.mxu0 (%p2025_p5), %v4695_v36  ;;  %v4711_v12 = vpack.c.bf16 (%p2025_p5), %v2357_v6, %v2356_v31 }
 0xaae   : > { %v5478_v15 = vunpack.i.h.bf16 %v5476_v17  ;;  %v5477_v16 = vunpack.i.l.bf16 %v5476_v17 }
 0xaaf   : > { %v5481_v18 = vpop.permute.xlu1 %5480 }
 0xab0   : > { %v5483_v24 = vunpack.i.h.bf16 %v5481_v18  ;;  %v5482_v25 = vunpack.i.l.bf16 %v5481_v18  ;;  %v2182_v26 = vsel %vm203_vm2, %v2178_v20, %v5477_v16  ;;  %v2184_v28 = vsel %vm203_vm2, %v2180_v21, %v5478_v15 }
 0xab1   : > { %v2172_v30 = vpop.permute.xlu0 %2171 }
 0xab2   : > { %v2196_v32 = vsel %vm203_vm2, %v2192_v29, %v2172_v30  ;;  %v2186_v33 = vsel %vm208_vm1, %v2182_v26, %v5482_v25  ;;  %v2188_v34 = vsel %vm208_vm1, %v2184_v28, %v5483_v24  ;;  %v3980_v29 = vld [vmem:[%s7525_s11 + $0x20] sm:$0xff] (%p2025_p5) }
 0xab3   : > { %2285 = vmatmul.mubr.f32.gmra.mrb[2].mxu0 %v2186_v33  ;;  %3974 = vmatprep.mubr.msk.f32.mxu1 %vm208_vm1, %v2196_v32  ;;  %v3992_v32 = vld [vmem:[%s7525_s11 + $0x68] sm:$0xff] (%p2025_p5) }
 0xab4   : > { %2295 = vmatmul.mubr.f32.gmra.mrb[2].mxu1 %v2188_v34  ;;  %v3982_v34 = vld [vmem:[%s7525_s11 + $0x30] sm:$0xff] (%p2025_p5) }
 0xab5   :  { %v2313_v7 = vpop.permute.xlu0 (%p2025_p5), %2312  ;;  %4191 = vmatprep.mubr.msk.f32.mxu1 (%p2025_p5), %vm5777_vm3, %v5748_v2 }
 0xab6   :  { %v2340_v52 = vsel (%p2025_p5), %vm45_vm0, %v6470_v39, %v2313_v7 }
 0xab9   :  { %v2315_v8 = vpop.permute.xlu0 (%p2025_p5), %2314 }
 0xaba   :  { %v2341_v15 = vsel (%p2025_p5), %vm45_vm0, %v6473_v40, %v2315_v8 }
 0xabd   :  { %v2317_v20 = vpop.permute.xlu0 (%p2025_p5), %2316 }
 0xabe   :  { %v2342_v24 = vsel (%p2025_p5), %vm45_vm0, %v6476_v41, %v2317_v20  ;;  %v3981_v41 = vld [vmem:[%s7525_s11 + $0x28] sm:$0xff] (%p2025_p5) }
 0xabf   :  { %v4720_v30 = vpack.c.bf16 (%p2025_p5), %v3981_v41, %v3980_v29 }
 0xac1   :  { %4721 = vmatpush3.bf16.msra.mxu1 (%p2025_p5), %v4720_v30 }
 0xac2   :  { %4722 = vmatprep.subr.bf16.mxu1 (%p2025_p5), %v5749_v5 }
 0xb7c   : > { %v2281_v35 = vpop.f32.mrb[0].mxu0  ;;  %v2291_v37 = vpop.f32.mrb[0].mxu1 }
 0xb7d   : > { %v2282_v38 = vadd.f32 %v3970_v0, %v2281_v35  ;;  %v2292_v43 = vadd.f32 %v3970_v0, %v2291_v37  ;;  %v2283_v44 = vpop.f32.mrb[1].mxu0  ;;  %v2293_v45 = vpop.f32.mrb[1].mxu1  ;;  %v3993_v37 = vld [vmem:[%s7525_s11 + $0x70] sm:$0xff] (%p2025_p5) }
 0xb7e   :  { %v3975_v44 = vld [vmem:[%s7524_s10] ss:$0 sm:$0xff] (%p2025_p5) }
 0xb7f   : > { %v2300_v51 = vmax.f32 %v2282_v38, 0.0   ;;  %v2302_v59 = vmax.f32 %v2292_v43, 0.0   ;;  %v3994_v38 = vld [vmem:[%s7525_s11 + $0x78] sm:$0xff] (%p2025_p5) }
 0xb80   :  { %v4741_v43 = vpack.c.bf16 (%p2025_p5), %v3994_v38, %v3993_v37 }
 0xb81   : > { %v7573_v3 = vmov %v2302_v59  ;;  %v7575_v63 = vmov %v2300_v51  ;;  %v2304_v9 = vadd.f32 (%p2025_p5), %v2300_v51, %v7564_v54  ;;  %v4699_v54 = vpack.c.bf16 (%p2025_p5), %v2351_v61, %v2350_v58 }
 0xb82   :  { %v2352_v63 = vld [vmem:[%s7523_s9 + $0x20] sm:$0xff] (%p2025_p5)  ;;  %v2306_v23 = vadd.f32 (%p2025_p5), %v2302_v59, %v7565_v55  ;;  %v2359_v55 = vld [vmem:[%s7523_s9 + $0x58] sm:$0xff] (%p2025_p5) }
 0xb83   :  { %2328 = vrot.lane.b32.xlu1 (%p2025_p5), %v2304_v9, %s5751_s15  ;;  %4700 = vmatprep.subr.bf16.mxu0 (%p2025_p5), %v4699_v54  ;;  %v7212_v9 = vld [vmem:[%s7525_s11 + $0x18] sm:$0xff] (%p2025_p5) }
 0xb84   :  { %4702 = vmatpush3.bf16.msra.mxu0 (%p2025_p5), %v4699_v54  ;;  %2332 = vrot.lane.b32.xlu0 (%p2025_p5), %v2306_v23, %s5751_s15  ;;  %v4753_v54 = vpack.c.bf16 (%p2025_p5), %v7222_v57, %v7217_v56  ;;  %v3996_v56 = vld [vmem:[%s7525_s11 + $0x80] sm:$0xff] (%p2025_p5)  ;;  %v3997_v57 = vld [vmem:[%s7525_s11 + $0x88] sm:$0xff] (%p2025_p5) }
 0xb86   : > { %v2286_v19 = vpop.f32.mrb[2].mxu0  ;;  %2027 = sbr.rel (!%p2025_p5) target bundleno = 2587 (0xa1b), region = 198 }
 0xb87   : > { %v2287_v60 = vadd.f32 %v3970_v0, %v2286_v19  ;;  %v2288_v46 = vpop.f32.mrb[3].mxu0  ;;  %v2296_v47 = vpop.f32.mrb[2].mxu1 }
 0xb88   : > { %v2297_v48 = vadd.f32 %v3970_v0, %v2296_v47  ;;  %v2298_v49 = vpop.f32.mrb[3].mxu1  ;;  %v3983_v0 = vld [vmem:[%s7525_s11 + $0x38] sm:$0xff] (%p2025_p5)  ;;  %v2469_v46 = vld [vmem:[%s7525_s11 + $0x8] sm:$0xff] (%p2025_p5) }
 0xb89   : > { %v2301_v50 = vmax.f32 %v2287_v60, 0.0   ;;  %v4723_v35 = vpack.c.bf16 (%p2025_p5), %v3983_v0, %v3982_v34  ;;  %v2468_v60 = vld [vmem:[%s7525_s11] sm:$0xff] (%p2025_p5)  ;;  %v4002_v49 = vld [vmem:[%s7525_s11 + $0xa8] sm:$0xff] (%p2025_p5) }
 0xb8a   : > { %v2303_v53 = vmax.f32 %v2297_v48, 0.0   ;;  %v4001_v48 = vld [vmem:[%s7525_s11 + $0xa0] sm:$0xff] (%p2025_p5)  ;;  %v4726_v58 = vpack.c.bf16 (%p2025_p5), %v2469_v46, %v2468_v60  ;;  %v3987_v34 = vld [vmem:[%s7525_s11 + $0x48] sm:$0xff] (%p2025_p5) }
 0xb8b   : > { %v7574_v1 = vmov %v2301_v50  ;;  %v2305_v10 = vadd.f32 (%p2025_p5), %v2301_v50, %v7566_v22  ;;  %v2354_v22 = vld [vmem:[%s7523_s9 + $0x30] sm:$0xff] (%p2025_p5)  ;;  %4724 = vmatpush3.bf16.msra.mxu1 (%p2025_p5), %v4723_v35  ;;  %v4750_v36 = vpack.c.bf16 (%p2025_p5), %v4002_v49, %v4001_v48 }
 0xb8c   : > { %v7572_v4 = vmov %v2303_v53  ;;  %v2353_v1 = vld [vmem:[%s7523_s9 + $0x28] sm:$0xff] (%p2025_p5)  ;;  %v2307_v27 = vadd.f32 (%p2025_p5), %v2303_v53, %v7567_v62  ;;  %4725 = vmatprep.subr.bf16.mxu1 (%p2025_p5), %v5749_v5  ;;  %v7207_v50 = vld [vmem:[%s7525_s11 + $0x10] sm:$0xff] (%p2025_p5) }
 0xb8d   :  { %v4703_v3 = vpack.c.bf16 %v2353_v1, %v2352_v63  ;;  %2330 = vrot.lane.b32.xlu1 %v2305_v10, %s5751_s15  ;;  %v2355_v4 = vld [vmem:[%s7523_s9 + $0x38] sm:$0xff]  ;;  %v4729_v10 = vpack.c.bf16 %v7212_v9, %v7207_v50 }
 0xb8e   :  { %v4707_v11 = vpack.c.bf16 %v2355_v4, %v2354_v22  ;;  %v3989_v9 = vld [vmem:[%s7525_s11 + $0x58] sm:$0xff] }
 0xb8f   :  { %4704 = vmatprep.subr.bf16.mxu0 %v4703_v3 }
 0xb90   :  { %4706 = vmatpush3.bf16.msra.mxu0 %v4703_v3 }
 0xb91   :  { %2318 = vrot.lane.b32.xlu1 %v6787_v13, %s5750_s14  ;;  %4708 = vmatprep.subr.bf16.mxu0 %v4707_v11  ;;  %v2358_v13 = vld [vmem:[%s7523_s9 + $0x50] sm:$0xff] }
 0xb92   :  { %v4715_v62 = vpack.c.bf16 %v2359_v55, %v2358_v13 }
 0xb94   :  { %4710 = vmatpush3.bf16.msra.mxu0 %v4707_v11 }
 0xb95   :  { %2334 = vrot.lane.b32.xlu1 %v2307_v27, %s5751_s15  ;;  %4712 = vmatprep.subr.bf16.mxu0 %v4711_v12 }
 0xb98   :  { %4714 = vmatpush3.bf16.msra.mxu0 %v4711_v12 }
 0xb99   :  { %4716 = vmatprep.subr.bf16.mxu0 %v4715_v62 }
 0xb9c   :  { %4718 = vmatpush3.bf16.msra.mxu0 %v4715_v62 }
 0xb9d   :  { %4737 = vmatprep.subr.bf16.mxu0 %v5749_v5 }
 0xbf5   :  { %v2329_v14 = vpop.permute.xlu1 %2328 }
 0xbf6   :  { %v2344_v17 = vsel %vm203_vm2, %v2340_v52, %v2329_v14  ;;  %v2333_v39 = vpop.permute.xlu0 %2332 }
 0xbf7   :  { %4177 = vmatprep.mubr.msk.f32.mxu0 %vm208_vm1, %v2344_v17  ;;  %v2346_v25 = vsel %vm203_vm2, %v2342_v24, %v2333_v39 }
 0xbff   :  { %v2331_v16 = vpop.permute.xlu1 %2330 }
 0xc00   :  { %v2345_v18 = vsel %vm203_vm2, %v2341_v15, %v2331_v16 }
 0xc01   :  { %4178 = vmatmul.mubr.msk.f32.vlgmr.msra.gmra.mrb[0].mxu0 %vm208_vm1, %v2345_v18 }
 0xc02   :  { %4180 = vmatprep.mubr.msk.f32.mxu0 %vm208_vm1, %v2346_v25 }
 0xc03   :  { %v2319_v21 = vpop.permute.xlu1 %2318 }
 0xc04   :  { %v2343_v26 = vsel %vm45_vm0, %v6479_v42, %v2319_v21  ;;  %v3991_v42 = vld [vmem:[%s7525_s11 + $0x60] sm:$0xff] }
 0xc05   :  { %v4738_v33 = vpack.c.bf16 %v3992_v32, %v3991_v42 }
 0xc07   :  { %v2335_v28 = vpop.permute.xlu1 %2334  ;;  %4739 = vmatpush3.bf16.msra.mxu0 %v4738_v33  ;;  %v3986_v33 = vld [vmem:[%s7525_s11 + $0x40] sm:$0xff] }
 0xc08   :  { %v2347_v40 = vsel %vm203_vm2, %v2343_v26, %v2335_v28  ;;  %4740 = vmatprep.subr.bf16.mxu0 %v5749_v5  ;;  %v4732_v49 = vpack.c.bf16 %v3987_v34, %v3986_v33  ;;  %v4027_v33 = vld [vmem:[%s7525_s11 + $0x148] sm:$0xff] }
 0xc09   :  { %4181 = vmatmul.mubr.msk.f32.gmra.mrb[2].mxu0 %vm208_vm1, %v2347_v40 }
 0xc0a   :  { %4224 = vmatprep.mubr.msk.f32.mxu0 %vm5777_vm3, %v5748_v2 }
 0xc0b   :  { %4742 = vmatpush3.bf16.msra.mxu0 %v4741_v43 }
 0xc0c   :  { %4749 = vmatprep.subr.bf16.mxu0 %v5749_v5 }
 0xcd4   :  { %v4179_v45 = vpop.f32.mrb[0].mxu0 }
 0xcd5   :  { %v2451_v51 = vadd.f32 %v4179_v45, %v3975_v44  ;;  %v2445_v59 = vpop.f32.mrb[1].mxu0 }
 0xcd6   :  { %v2446_v19 = vadd.f32 %v3975_v44, %v2445_v59  ;;  %v4011_v59 = vld [vmem:[%s7525_s11 + $0xe0] sm:$0xff] }
 0xcd7   :  { %v7196_v47 = vmax.f32 %v2451_v51, 0.0 }
 0xcd8   :  { %v2464_v53 = vmax.f32 %v2446_v19, 0.0  ;;  %v4012_v19 = vld [vmem:[%s7525_s11 + $0xe8] sm:$0xff] }
 0xcd9   :  { %v3201_v63 = vrot.slane %v7196_v47, 1  ;;  %v3362_v1 = vrot.slane %v7196_v47, 3  ;;  %v3524_v23 = vrot.slane %v7196_v47, 5  ;;  %v3281_v11 = vrot.slane %v7196_v47, 2 }
 0xcda   :  { %v2479_v4 = vrot.slane %v2464_v53, 1  ;;  %v2714_v31 = vrot.slane %v2464_v53, 3  ;;  %v2876_v6 = vrot.slane %v2464_v53, 5  ;;  %v2633_v12 = vrot.slane %v2464_v53, 2 }
 0xcdb   :  { %v3038_v55 = vrot.slane %v2464_v53, 7  ;;  %v2795_v62 = vrot.slane %v2464_v53, 4  ;;  %v2957_v7 = vrot.slane %v2464_v53, 6  ;;  %v3686_v14 = vrot.slane %v7196_v47, 7 }
 0xcdc   :  { %v4182_v61 = vpop.f32.mrb[2].mxu0  ;;  %v3443_v17 = vrot.slane %v7196_v47, 4  ;;  %v3605_v8 = vrot.slane %v7196_v47, 6 }
 0xcdd   :  { %v2461_v3 = vadd.f32 %v4182_v61, %v3975_v44  ;;  %v2455_v22 = vpop.f32.mrb[3].mxu0  ;;  %v4013_v61 = vld [vmem:[%s7525_s11 + $0xf0] sm:$0xff] }
 0xcde   :  { %v2456_v27 = vadd.f32 %v3975_v44, %v2455_v22  ;;  %v4744_v22 = vpack.c.bf16 %v3997_v57, %v3996_v56 }
 0xcdf   :  { %v2467_v13 = vmax.f32 %v2461_v3, 0.0  ;;  %v4022_v3 = vld [vmem:[%s7525_s11 + $0x128] sm:$0xff] }
 0xce0   :  { %v2466_v52 = vmax.f32 %v2456_v27, 0.0  ;;  %v4023_v27 = vld [vmem:[%s7525_s11 + $0x130] sm:$0xff] }
 0xce1   :  { %v7236_v15 = vsel %vm2480_vm4, %v2467_v13, %v3201_v63  ;;  %v3363_v16 = vrot.slane %v2467_v13, 2  ;;  %v3121_v18 = vrot.slane %v2467_v13, 7  ;;  %v3525_v20 = vrot.slane %v2467_v13, 4 }
 0xce2   :  { %v2481_v21 = vsel %vm2480_vm4, %v2466_v52, %v2479_v4  ;;  %v2715_v24 = vrot.slane %v2466_v52, 2  ;;  %v2554_v39 = vrot.slane %v2466_v52, 7  ;;  %v2877_v25 = vrot.slane %v2466_v52, 4  ;;  %v3998_v4 = vld [vmem:[%s7525_s11 + $0x90] sm:$0xff] }
 0xce3   :  { %4192 = vmatmul.mubr.msk.f32.vlgmr.msra.gmra.mrb[0].mxu1 %vm45_vm0, %v2481_v21  ;;  %v2634_v26 = vrot.slane %v2466_v52, 1  ;;  %v3039_v28 = vrot.slane %v2466_v52, 6  ;;  %v2796_v40 = vrot.slane %v2466_v52, 3  ;;  %v2958_v29 = vrot.slane %v2466_v52, 5  ;;  %v4016_v21 = vld [vmem:[%s7525_s11 + $0x100] sm:$0xff] }
 0xce4   :  { %4727 = vmatpush3.bf16.msra.mxu1 %v4726_v58  ;;  %v2716_v41 = vsel %vm2480_vm4, %v2715_v24, %v2714_v31  ;;  %4202 = vmatprep.mubr.msk.f32.mxu1 %vm5777_vm3, %v5748_v2  ;;  %v2555_v30 = vsel %vm2480_vm4, %v2554_v39, %v2464_v53  ;;  %v2878_v42 = vsel %vm2480_vm4, %v2877_v25, %v2876_v6  ;;  %v3282_v32 = vrot.slane %v2467_v13, 1  ;;  %v3988_v53 = vld [vmem:[%s7525_s11 + $0x50] sm:$0xff]  ;;  %v4024_v31 = vld [vmem:[%s7525_s11 + $0x138] sm:$0xff]  ;;  %v4017_v24 = vld [vmem:[%s7525_s11 + $0x108] sm:$0xff] }
 0xce5   :  { %4225 = vmatmul.mubr.msk.f32.vlgmr.msra.gmra.mrb[4].mxu0 %vm45_vm0, %v2716_v41  ;;  %4728 = vmatprep.subr.bf16.mxu1 %v5749_v5  ;;  %v2635_v0 = vsel %vm2480_vm4, %v2634_v26, %v2633_v12  ;;  %v3040_v35 = vsel %vm2480_vm4, %v3039_v28, %v3038_v55  ;;  %v7256_v37 = vsel %vm2480_vm4, %v2796_v40, %v2795_v62  ;;  %v3687_v38 = vrot.slane %v2467_v13, 6  ;;  %v4006_v12 = vld [vmem:[%s7525_s11 + $0xc0] sm:$0xff]  ;;  %v4042_v25 = vld [vmem:[%s7525_s11 + $0x1a8] sm:$0xff]  ;;  %v4018_v28 = vld [vmem:[%s7525_s11 + $0x110] sm:$0xff] }
 0xce6   :  { %4751 = vmatpush3.bf16.msra.mxu0 %v4750_v36  ;;  %4246 = vmatprep.mubr.msk.f32.mxu0 %vm5777_vm3, %v5748_v2  ;;  %v7261_v43 = vsel %vm2480_vm4, %v2958_v29, %v2957_v7  ;;  %v7264_v44 = vsel %vm2480_vm4, %v3363_v16, %v3362_v1  ;;  %v7268_v45 = vsel %vm2480_vm4, %v3121_v18, %v7196_v47  ;;  %v3444_v51 = vrot.slane %v2467_v13, 3  ;;  %v4021_v1 = vld [vmem:[%s7525_s11 + $0x120] sm:$0xff]  ;;  %v4032_v7 = vld [vmem:[%s7525_s11 + $0x168] sm:$0xff]  ;;  %v4033_v16 = vld [vmem:[%s7525_s11 + $0x170] sm:$0xff] }
 0xce7   :  { %4752 = vmatprep.subr.bf16.mxu0 %v5749_v5  ;;  %v7278_v60 = vsel %vm2480_vm4, %v3525_v20, %v3524_v23  ;;  %v7281_v46 = vsel %vm2480_vm4, %v3282_v32, %v3281_v11  ;;  %v7284_v47 = vsel %vm2480_vm4, %v3687_v38, %v3686_v14  ;;  %v3606_v48 = vrot.slane %v2467_v13, 5  ;;  %v3999_v23 = vld [vmem:[%s7525_s11 + $0x98] sm:$0xff]  ;;  %v4007_v13 = vld [vmem:[%s7525_s11 + $0xc8] sm:$0xff]  ;;  %v4031_v62 = vld [vmem:[%s7525_s11 + $0x160] sm:$0xff] }
 0xce8   :  { %4730 = vmatpush3.bf16.msra.mxu1 %v4729_v10  ;;  %v7287_v50 = vsel %vm2480_vm4, %v3444_v51, %v3443_v17  ;;  %v4762_v36 = vpack.c.bf16 %v4012_v19, %v4011_v59  ;;  %v4014_v10 = vld [vmem:[%s7525_s11 + $0xf8] sm:$0xff]  ;;  %v4735_v63 = vpack.c.bf16 %v3989_v9, %v3988_v53  ;;  %v4774_v11 = vpack.c.bf16 %v4022_v3, %v4021_v1  ;;  %v4008_v14 = vld [vmem:[%s7525_s11 + $0xd0] sm:$0xff]  ;;  %v4026_v32 = vld [vmem:[%s7525_s11 + $0x140] sm:$0xff] }
 0xce9   :  { %4731 = vmatprep.subr.bf16.mxu1 %v5749_v5  ;;  %v7297_v58 = vsel %vm2480_vm4, %v3606_v48, %v3605_v8  ;;  %v4747_v6 = vpack.c.bf16 %v3999_v23, %v3998_v4  ;;  %v4777_v55 = vpack.c.bf16 %v4024_v31, %v4023_v27  ;;  %v4756_v52 = vpack.c.bf16 %v4007_v13, %v4006_v12  ;;  %v4009_v17 = vld [vmem:[%s7525_s11 + $0xd8] sm:$0xff]  ;;  %v4043_v41 = vld [vmem:[%s7525_s11 + $0x1b0] sm:$0xff]  ;;  %v4037_v48 = vld [vmem:[%s7525_s11 + $0x188] sm:$0xff] }
 0xcea   :  { %4754 = vmatpush3.bf16.msra.mxu0 %v4753_v54  ;;  %v4765_v54 = vpack.c.bf16 %v4014_v10, %v4013_v61  ;;  %v4786_v8 = vpack.c.bf16 %v4032_v7, %v4031_v62  ;;  %v4034_v18 = vld [vmem:[%s7525_s11 + $0x178] sm:$0xff]  ;;  %v4759_v20 = vpack.c.bf16 %v4009_v17, %v4008_v14  ;;  %v4768_v26 = vpack.c.bf16 %v4017_v24, %v4016_v21  ;;  %v4028_v38 = vld [vmem:[%s7525_s11 + $0x150] sm:$0xff]  ;;  %v4046_v61 = vld [vmem:[%s7525_s11 + $0x1c0] sm:$0xff] }
 0xceb   :  { %4203 = vmatmul.mubr.msk.f32.vlgmr.msra.gmra.mrb[2].mxu1 %vm45_vm0, %v2555_v30  ;;  %4761 = vmatprep.subr.bf16.mxu0 %v5749_v5  ;;  %v4789_v39 = vpack.c.bf16 %v4034_v18, %v4033_v16  ;;  %v4019_v40 = vld [vmem:[%s7525_s11 + $0x118] sm:$0xff]  ;;  %v4053_v51 = vld [vmem:[%s7525_s11 + $0x1f0] sm:$0xff]  ;;  %v4047_v10 = vld [vmem:[%s7525_s11 + $0x1c8] sm:$0xff] }
 0xcec   :  { %4733 = vmatpush3.bf16.msra.mxu1 %v4732_v49  ;;  %4213 = vmatprep.mubr.msk.f32.mxu1 %vm5777_vm3, %v5748_v2  ;;  %v4044_v30 = vld [vmem:[%s7525_s11 + $0x1b8] sm:$0xff] }
 0xced   :  { %4247 = vmatmul.mubr.msk.f32.vlgmr.msra.gmra.mrb[6].mxu0 %vm45_vm0, %v2878_v42  ;;  %4734 = vmatprep.subr.bf16.mxu1 %v5749_v5  ;;  %v4771_v42 = vpack.c.bf16 %v4019_v40, %v4018_v28  ;;  %v4801_v34 = vpack.c.bf16 %v4044_v30, %v4043_v41  ;;  %v4054_v59 = vld [vmem:[%s7525_s11 + $0x1f8] sm:$0xff] }
 0xcee   :  { %4763 = vmatpush3.bf16.msra.mxu0 %v4762_v36  ;;  %4268 = vmatprep.mubr.msk.f32.mxu0 %vm5777_vm3, %v5748_v2  ;;  %v4813_v49 = vpack.c.bf16 %v4054_v59, %v4053_v51  ;;  %v4039_v9 = vld [vmem:[%s7525_s11 + $0x198] sm:$0xff] }
 0xcef   :  { %4764 = vmatprep.subr.bf16.mxu0 %v5749_v5 }
 0xcf0   :  { %4736 = vmatpush3.bf16.msra.mxu1 %v4735_v63  ;;  %v4048_v63 = vld [vmem:[%s7525_s11 + $0x1d0] sm:$0xff] }
 0xcf1   :  { %4743 = vmatprep.subr.bf16.mxu1 %v5749_v5 }
 0xcf2   :  { %4766 = vmatpush3.bf16.msra.mxu0 %v4765_v54 }
 0xcf3   :  { %4214 = vmatmul.mubr.msk.f32.vlgmr.msra.gmra.mrb[4].mxu1 %vm45_vm0, %v2635_v0  ;;  %4773 = vmatprep.subr.bf16.mxu0 %v5749_v5  ;;  %v4051_v0 = vld [vmem:[%s7525_s11 + $0x1e0] sm:$0xff] }
 0xcf4   :  { %4745 = vmatpush3.bf16.msra.mxu1 %v4744_v22  ;;  %4235 = vmatprep.mubr.msk.f32.mxu1 %vm5777_vm3, %v5748_v2 }
 0xcf5   :  { %4269 = vmatmul.mubr.msk.f32.vlgmr.msra.gmra.mrb[8].mxu0 %vm45_vm0, %v3040_v35  ;;  %4746 = vmatprep.subr.bf16.mxu1 %v5749_v5  ;;  %v4052_v35 = vld [vmem:[%s7525_s11 + $0x1e8] sm:$0xff] }
 0xcf6   :  { %4775 = vmatpush3.bf16.msra.mxu0 %v4774_v11  ;;  %4290 = vmatprep.mubr.msk.f32.mxu0 %vm5777_vm3, %v5748_v2 }
 0xcf7   :  { %4776 = vmatprep.subr.bf16.mxu0 %v5749_v5 }
 0xcf8   :  { %4748 = vmatpush3.bf16.msra.mxu1 %v4747_v6 }
 0xcf9   :  { %4755 = vmatprep.subr.bf16.mxu1 %v5749_v5 }
 0xcfa   :  { %4778 = vmatpush3.bf16.msra.mxu0 %v4777_v55 }
 0xcfb   :  { %4236 = vmatmul.mubr.msk.f32.vlgmr.msra.gmra.mrb[6].mxu1 %vm45_vm0, %v7256_v37  ;;  %4785 = vmatprep.subr.bf16.mxu0 %v5749_v5  ;;  %v4780_v37 = vpack.c.bf16 %v4027_v33, %v4026_v32 }
 0xcfc   :  { %4757 = vmatpush3.bf16.msra.mxu1 %v4756_v52  ;;  %4257 = vmatprep.mubr.msk.f32.mxu1 %vm5777_vm3, %v5748_v2 }
 0xcfd   :  { %4291 = vmatmul.mubr.msk.f32.vlgmr.msra.gmra.mrb[10].mxu0 %vm45_vm0, %v7236_v15  ;;  %4758 = vmatprep.subr.bf16.mxu1 %v5749_v5  ;;  %v4041_v15 = vld [vmem:[%s7525_s11 + $0x1a0] sm:$0xff] }
 0xcfe   :  { %4787 = vmatpush3.bf16.msra.mxu0 %v4786_v8  ;;  %4312 = vmatprep.mubr.msk.f32.mxu0 %vm5777_vm3, %v5748_v2  ;;  %v4798_v29 = vpack.c.bf16 %v4042_v25, %v4041_v15 }
 0xcff   :  { %4788 = vmatprep.subr.bf16.mxu0 %v5749_v5 }
 0xd00   :  { %4760 = vmatpush3.bf16.msra.mxu1 %v4759_v20 }
 0xd01   :  { %4767 = vmatprep.subr.bf16.mxu1 %v5749_v5 }
 0xd02   :  { %4790 = vmatpush3.bf16.msra.mxu0 %v4789_v39 }
 0xd03   :  { %4258 = vmatmul.mubr.msk.f32.vlgmr.msra.gmra.mrb[8].mxu1 %vm45_vm0, %v7261_v43  ;;  %4797 = vmatprep.subr.bf16.mxu0 %v5749_v5  ;;  %v4029_v43 = vld [vmem:[%s7525_s11 + $0x158] sm:$0xff] }
 0xd04   :  { %4769 = vmatpush3.bf16.msra.mxu1 %v4768_v26  ;;  %4279 = vmatprep.mubr.msk.f32.mxu1 %vm5777_vm3, %v5748_v2  ;;  %v4783_v19 = vpack.c.bf16 %v4029_v43, %v4028_v38  ;;  %v4056_v43 = vld [vmem:[%s7526_s12] ss:$0 sm:$0xff] }
 0xd05   :  { %4313 = vmatmul.mubr.msk.f32.vlgmr.msra.gmra.mrb[12].mxu0 %vm45_vm0, %v7264_v44  ;;  %4770 = vmatprep.subr.bf16.mxu1 %v5749_v5  ;;  %v4810_v44 = vpack.c.bf16 %v4052_v35, %v4051_v0 }
 0xd06   :  { %4799 = vmatpush3.bf16.msra.mxu0 %v4798_v29  ;;  %4334 = vmatprep.mubr.msk.f32.mxu0 %vm5777_vm3, %v5748_v2 }
 0xd07   :  { %4800 = vmatprep.subr.bf16.mxu0 %v5749_v5 }
 0xd08   :  { %4772 = vmatpush3.bf16.msra.mxu1 %v4771_v42 }
 0xd09   :  { %4779 = vmatprep.subr.bf16.mxu1 %v5749_v5 }
 0xd0a   :  { %4802 = vmatpush3.bf16.msra.mxu0 %v4801_v34 }
 0xd0b   :  { %4280 = vmatmul.mubr.msk.f32.vlgmr.msra.gmra.mrb[10].mxu1 %vm45_vm0, %v7268_v45  ;;  %4809 = vmatprep.subr.bf16.mxu0 %v5749_v5  ;;  %v4036_v45 = vld [vmem:[%s7525_s11 + $0x180] sm:$0xff] }
 0xd0c   :  { %4781 = vmatpush3.bf16.msra.mxu1 %v4780_v37  ;;  %4301 = vmatprep.mubr.msk.f32.mxu1 %vm5777_vm3, %v5748_v2  ;;  %v4792_v53 = vpack.c.bf16 %v4037_v48, %v4036_v45 }
 0xd0d   :  { %4335 = vmatmul.mubr.msk.f32.vlgmr.msra.gmra.mrb[14].mxu0 %vm45_vm0, %v7278_v60  ;;  %4782 = vmatprep.subr.bf16.mxu1 %v5749_v5  ;;  %v4038_v60 = vld [vmem:[%s7525_s11 + $0x190] sm:$0xff] }
 0xd0e   :  { %4811 = vmatpush3.bf16.msra.mxu0 %v4810_v44  ;;  %4356 = vmatprep.mubr.msk.f32.mxu0 %vm5777_vm3, %v5748_v2  ;;  %v4795_v36 = vpack.c.bf16 %v4039_v9, %v4038_v60 }
 0xd0f   :  { %4812 = vmatprep.subr.bf16.mxu0 %v5749_v5 }
 0xd10   :  { %4784 = vmatpush3.bf16.msra.mxu1 %v4783_v19 }
 0xd11   :  { %4791 = vmatprep.subr.bf16.mxu1 %v5749_v5 }
 0xd12   :  { %4814 = vmatpush3.bf16.msra.mxu0 %v4813_v49 }
 0xd13   :  { %4302 = vmatmul.mubr.msk.f32.vlgmr.msra.gmra.mrb[12].mxu1 %vm45_vm0, %v7281_v46  ;;  %v4804_v46 = vpack.c.bf16 %v4047_v10, %v4046_v61 }
 0xd14   :  { %4793 = vmatpush3.bf16.msra.mxu1 %v4792_v53  ;;  %4323 = vmatprep.mubr.msk.f32.mxu1 %vm5777_vm3, %v5748_v2 }
 0xd15   :  { %4357 = vmatmul.mubr.msk.f32.vlgmr.msra.gmra.mrb[16].mxu0 %vm45_vm0, %v7284_v47  ;;  %4794 = vmatprep.subr.bf16.mxu1 %v5749_v5  ;;  %v4049_v47 = vld [vmem:[%s7525_s11 + $0x1d8] sm:$0xff] }
 0xd16   :  { %v4807_v56 = vpack.c.bf16 %v4049_v47, %v4048_v63 }
 0xd18   :  { %4796 = vmatpush3.bf16.msra.mxu1 %v4795_v36 }
 0xd19   :  { %4803 = vmatprep.subr.bf16.mxu1 %v5749_v5 }
 0xd1b   :  { %4324 = vmatmul.mubr.msk.f32.vlgmr.msra.gmra.mrb[14].mxu1 %vm45_vm0, %v7287_v50 }
 0xd1c   :  { %4805 = vmatpush3.bf16.msra.mxu1 %v4804_v46  ;;  %4345 = vmatprep.mubr.msk.f32.mxu1 %vm5777_vm3, %v5748_v2 }
 0xd1d   :  { %4806 = vmatprep.subr.bf16.mxu1 %v5749_v5 }
 0xd20   :  { %4808 = vmatpush3.bf16.msra.mxu1 %v4807_v56 }
 0xd23   :  { %4346 = vmatmul.mubr.msk.f32.vlgmr.msra.gmra.mrb[16].mxu1 %vm45_vm0, %v7297_v58 }
 0xdb6   :  { %v2550_v57 = vpop.f32.mrb[0].mxu1 }
 0xdb7   :  { %v4193_v54 = vpop.f32.mrb[1].mxu1 }
 0xdb8   :  { %v2785_v1 = vpop.f32.mrb[4].mxu0 }
 0xdb9   :  { %v4226_v3 = vpop.f32.mrb[5].mxu0 }
 0xdbe   :  { %v2624_v22 = vpop.f32.mrb[2].mxu1 }
 0xdbf   :  { %v2625_v4 = vadd.f32 %v2624_v22, %v2550_v57  ;;  %v4204_v23 = vpop.f32.mrb[3].mxu1 }
 0xdc0   :  { %v2947_v11 = vpop.f32.mrb[6].mxu0 }
 0xdc1   :  { %v4248_v50 = vpop.f32.mrb[7].mxu0 }
 0xdc6   :  { %v2704_v27 = vpop.f32.mrb[4].mxu1 }
 0xdc7   :  { %v2708_v31 = vadd.f32 %v2704_v27, %v2625_v4  ;;  %v4215_v6 = vpop.f32.mrb[5].mxu1 }
 0xdc8   :  { %v3109_v12 = vpop.f32.mrb[8].mxu0 }
 0xdc9   :  { %v4270_v2 = vpop.f32.mrb[9].mxu0  ;;  %v2789_v13 = vadd.f32 %v2785_v1, %v2708_v31 }
 0xdce   :  { %v2866_v5 = vpop.f32.mrb[6].mxu1 }
 0xdcf   :  { %v2870_v55 = vadd.f32 %v2866_v5, %v2789_v13  ;;  %v4237_v62 = vpop.f32.mrb[7].mxu1 }
 0xdd0   :  { %v3271_v7 = vpop.f32.mrb[10].mxu0 }
 0xdd1   :  { %v4292_v58 = vpop.f32.mrb[11].mxu0  ;;  %v2951_v52 = vadd.f32 %v2947_v11, %v2870_v55 }
 0xdd6   :  { %v3028_v14 = vpop.f32.mrb[8].mxu1 }
 0xdd7   :  { %v3032_v17 = vadd.f32 %v3028_v14, %v2951_v52  ;;  %v4259_v8 = vpop.f32.mrb[9].mxu1 }
 0xdd8   :  { %v3433_v16 = vpop.f32.mrb[12].mxu0 }
 0xdd9   :  { %v4314_v18 = vpop.f32.mrb[13].mxu0  ;;  %v3113_v20 = vadd.f32 %v3109_v12, %v3032_v17 }
 0xdde   :  { %v3191_v21 = vpop.f32.mrb[10].mxu1 }
 0xddf   :  { %v3195_v24 = vadd.f32 %v3191_v21, %v3113_v20  ;;  %v4281_v39 = vpop.f32.mrb[11].mxu1 }
 0xde0   :  { %v3595_v15 = vpop.f32.mrb[14].mxu0 }
 0xde1   :  { %v4336_v25 = vpop.f32.mrb[15].mxu0  ;;  %v3275_v26 = vadd.f32 %v3271_v7, %v3195_v24 }
 0xde6   :  { %v3352_v28 = vpop.f32.mrb[12].mxu1 }
 0xde7   :  { %v3356_v40 = vadd.f32 %v3352_v28, %v3275_v26  ;;  %v4303_v29 = vpop.f32.mrb[13].mxu1 }
 0xde8   :  { %v3757_v41 = vpop.f32.mrb[16].mxu0 }
 0xde9   :  { %v4358_v30 = vpop.f32.mrb[17].mxu0  ;;  %v3437_v42 = vadd.f32 %v3433_v16, %v3356_v40 }
 0xdee   :  { %v3514_v32 = vpop.f32.mrb[14].mxu1 }
 0xdef   :  { %v3518_v33 = vadd.f32 %v3514_v32, %v3437_v42  ;;  %v4325_v34 = vpop.f32.mrb[15].mxu1 }
 0xdf1   :  { %v3599_v0 = vadd.f32 %v3595_v15, %v3518_v33 }
 0xdf6   :  { %v3676_v35 = vpop.f32.mrb[16].mxu1 }
 0xdf7   :  { %v3680_v37 = vadd.f32 %v3676_v35, %v3599_v0  ;;  %v4347_v38 = vpop.f32.mrb[17].mxu1 }
 0xdf9   :  { %v3761_v44 = vadd.f32 %v3757_v41, %v3680_v37 }
 0xdfb   :  { %v3769_v51 = vadd.f32 %v4056_v43, %v3761_v44 }
 0xdfd   :  { %3771 = vst.msk [vmem:[#allocation3] sm:$0x3] %vm3770_vm5, %v3769_v51 }
 0xdfe   :  { %5495 = shalt.err (!%p5492_p10)
}
 0xdff   :  { %s5496_s26 = scalar_lea.hbm %s7527_s13, 32 }
 0xe00   :  { %p5497_p11 = scmp.ne.s32.totalorder %s7527_s13, %s5496_s26  ;;  %p5500_p12 = scmp.lt.u32.totalorder %s5496_s26, %s7527_s13 }
 0xe02   :  { %p5502_p13 = pnand %p5500_p12, %p5497_p11 }
 0xe04   :  { %5505 = shalt.err (!%p5502_p13)
}
 0xe05   :  { %3781 = dma.vmem_to_hbm [thread:$0]  %s3779_s23, 32, %s7527_s13, [#allocation4]  }
 0xe06   :  { %5626 = dma.done.wait [#allocation4], 32  }
 0xe07   :  { %5627 = vsyncadd [#allocation4], 4294967264 }
 0xe08   :  { %3785 = vsyncpa [#allocation4], 1 }

</bundles_post_ra>
